<compile_context>
chip_gen: v7x
topology: tpu7x:2x2x1
jax: 0.10.0
libtpu: 0.0.40
codegen_flags: <defaults>
</compile_context>

<pallas_src>
import math

import jax
import jax.numpy as jnp
from jax.experimental import pallas as pl
from jax.experimental.pallas import tpu as pltpu


_RMS_EPS = 1e-5


def _silu(x):
    # 1/(1+exp(-x)) is overflow-safe in f32 (exp -> inf resolves to 0 or 1).
    return x * (1.0 / (1.0 + jnp.exp(-x)))


def _softplus(x):
    # numerically robust softplus: max(x, 0) + log(1 + exp(-|x|))
    return jnp.maximum(x, 0.0) + jnp.log(1.0 + jnp.exp(-jnp.abs(x)))


def _rmsnorm(x, w):
    ms = jnp.mean(x * x, axis=-1, keepdims=True)
    return x * jax.lax.rsqrt(ms + _RMS_EPS) * w


def _vmem_limit_bytes(default=64 * 1024 * 1024):
    # Adapt the scoped-VMEM cap to the chip: physical minus ~16 MiB headroom,
    # capped at 112 MiB (v5e/v6e: 128 MiB physical, v7x: 64 MiB physical).
    try:
        cap = int(pltpu.get_tpu_info().vmem_capacity_bytes)
        return max(min(cap - 16 * 1024 * 1024, 112 * 1024 * 1024),
                   32 * 1024 * 1024)
    except Exception:
        return default


def mamba_layer_kernel(x_ref, normw_ref, inw_ref, convw_ref, convb_ref,
                       xpw_ref, dtw_ref, dtb_ref, a_ref, dpar_ref, outw_ref,
                       o_ref,
                       conv_dx_buf, z_buf, delta_buf, y_buf, b_buf, c_buf,
                       hh_buf, h_ref, carry_ref):
    Lc, Bb, D = x_ref.shape
    N, ED = a_ref.shape                  # d_state, d_inner
    K = convw_ref.shape[0]               # d_conv
    R = dtw_ref.shape[0]                 # dt_rank
    Ts = hh_buf.shape[0]                 # scan sub-block length

    c = pl.program_id(1)                 # time-chunk index (batch block = axis 0)

    @pl.when(c == 0)
    def _():                             # sequence start for this batch block
        h_ref[...] = jnp.zeros_like(h_ref)
        carry_ref[...] = jnp.zeros_like(carry_ref)

    # --- RMSNorm + fused in_proj (x branch | z gate) in one MXU pass ---
    xn_b = _rmsnorm(x_ref[...], normw_ref[...]).reshape(Lc * Bb, D).astype(jnp.bfloat16)
    xz = jnp.dot(xn_b, inw_ref[...], preferred_element_type=jnp.float32)   # (Lc*Bb, 2*ED)
    xc = xz[:, :ED].reshape(Lc, Bb, ED)
    z_buf[...] = xz[:, ED:].reshape(Lc, Bb, ED).astype(jnp.bfloat16)

    # --- causal depthwise conv1d over the chunk (K shifted chunk-wide adds) ---
    conv_dx_buf[0:K - 1] = carry_ref[...]           # K-1 steps from prev chunk
    conv_dx_buf[K - 1:K - 1 + Lc] = xc
    carry_ref[...] = xc[Lc - (K - 1):]              # tail -> carry for next chunk
    convw = convw_ref[...]                          # (K, ED)
    acc = jnp.zeros((Lc, Bb, ED), jnp.float32)
    for k in range(K):
        acc = acc + conv_dx_buf[k:k + Lc] * convw[k:k + 1]
    xt = _silu(acc + convb_ref[...])                # (Lc, Bb, ED)

    # --- fused x_proj (dt | B | C) + dt_proj + softplus, chunk-vectorized ---
    xt_b = xt.reshape(Lc * Bb, ED).astype(jnp.bfloat16)
    dbc = jnp.dot(xt_b, xpw_ref[...], preferred_element_type=jnp.float32)  # (Lc*Bb, R+2N)
    dlin = jnp.dot(dbc[:, :R].astype(jnp.bfloat16), dtw_ref[...],
                   preferred_element_type=jnp.float32) + dtb_ref[...]
    delta = _softplus(dlin).reshape(Lc, Bb, ED)

    delta_buf[...] = delta
    conv_dx_buf[0:Lc] = delta * xt                  # conv staging dead -> reuse for delta*x
    b_buf[...] = dbc[:, R:R + N].reshape(Lc, Bb, N)
    c_buf[...] = dbc[:, R + N:R + 2 * N].reshape(Lc, Bb, N)
    y_buf[...] = dpar_ref[...] * xt                 # D*x skip term (stays out of the scan)

    # --- selective scan: exp / B*x / C.h all vectorized per Ts-step sub-block,
    #     the serial chain is one FMA + one h store per step ---
    A = a_ref[...]                                  # (N, ED), already -exp(A_log)

    @pl.loop(0, Lc // Ts)
    def _(sb):
        t0 = pl.multiple_of(sb * Ts, Ts)
        d_blk = delta_buf[pl.ds(t0, Ts)]            # (Ts, Bb, ED)
        dx_blk = conv_dx_buf[pl.ds(t0, Ts)]         # (Ts, Bb, ED)  = delta*x
        bc = b_buf[pl.ds(t0, Ts)][:, :, :, None]    # (Ts, Bb, N, 1)
        # EUP exp hoisted off the serial chain (vectorized over Ts steps).
        # TODO(synk): cast the product to bf16 before exp on v6e/v7x (~2x EUP rate).
        dA = jnp.exp(d_blk[:, :, None, :] * A)      # (Ts, Bb, N, ED)
        dBx = dx_blk[:, :, None, :] * bc            # (Ts, Bb, N, ED)

        h = h_ref[...]                              # (Bb, N, ED)
        for t in range(Ts):                         # unrolled: FMA + store only
            h = dA[t] * h + dBx[t]
            hh_buf[t] = h
        h_ref[...] = h

        cc = c_buf[pl.ds(t0, Ts)][:, :, :, None]    # (Ts, Bb, N, 1)
        y_blk = jnp.sum(hh_buf[...] * cc, axis=2)   # (Ts, Bb, ED)  = C.h
        y_buf[pl.ds(t0, Ts)] = y_buf[pl.ds(t0, Ts)] + y_blk

    # --- gate with SiLU(z), out_proj, residual add (per chunk) ---
    gated = y_buf[...] * _silu(z_buf[...].astype(jnp.float32))
    out = jnp.dot(gated.reshape(Lc * Bb, ED).astype(jnp.bfloat16), outw_ref[...],
                  preferred_element_type=jnp.float32)
    o_ref[...] = x_ref[...] + out.reshape(Lc, Bb, D)


def head_kernel(x_ref, normw_ref, wt_ref, o_ref, xn_buf):
    # final RMSNorm (computed once per row chunk) + tied lm_head per vocab tile
    Lr, B, D = x_ref.shape
    Vb = wt_ref.shape[1]

    @pl.when(pl.program_id(1) == 0)
    def _():
        xn = _rmsnorm(x_ref[...], normw_ref[...])
        xn_buf[...] = xn.reshape(Lr * B, D).astype(jnp.bfloat16)

    logits = jnp.dot(xn_buf[...], wt_ref[...], preferred_element_type=jnp.float32)
    o_ref[...] = logits.reshape(Lr, B, Vb)


def mamba_layer(x, p, *, chunk, batch_block=None, scan_block=8):
    L, B, D = x.shape
    N, ED = p["A"].shape
    K = p["conv_w"].shape[0]
    Bb = B if batch_block is None else batch_block
    assert L % chunk == 0 and chunk >= K - 1 and B % Bb == 0
    Ts = min(scan_block, chunk)
    while chunk % Ts:
        Ts -= 1
    nb, nc = B // Bb, L // chunk

    weights = [p["norm_w"], p["in_w"], p["conv_w"], p["conv_b"], p["xp_w"],
               p["dt_w"], p["dt_b"], p["A"], p["D"], p["out_w"]]

    def wspec(arr):
        nd = arr.ndim
        # resident weights: constant index map, never re-fetched.
        # TODO(synk): pipeline_mode=pl.Buffered(1) to drop their double buffers.
        return pl.BlockSpec(arr.shape, lambda b, c, _nd=nd: (0,) * _nd)

    grid_spec = pltpu.PrefetchScalarGridSpec(
        num_scalar_prefetch=0,
        grid=(nb, nc),                                   # (batch blocks, time chunks)
        in_specs=[pl.BlockSpec((chunk, Bb, D), lambda b, c: (c, b, 0))]
                 + [wspec(w) for w in weights],
        out_specs=pl.BlockSpec((chunk, Bb, D), lambda b, c: (c, b, 0)),
        scratch_shapes=[
            pltpu.VMEM((chunk + K - 1, Bb, ED), jnp.float32),  # conv staging, then delta*x
            pltpu.VMEM((chunk, Bb, ED), jnp.bfloat16),         # z gate
            pltpu.VMEM((chunk, Bb, ED), jnp.float32),          # delta
            pltpu.VMEM((chunk, Bb, ED), jnp.float32),          # y = D*x + C.h
            pltpu.VMEM((chunk, Bb, N), jnp.float32),           # B coefficients
            pltpu.VMEM((chunk, Bb, N), jnp.float32),           # C coefficients
            pltpu.VMEM((Ts, Bb, N, ED), jnp.float32),          # per-sub-block h history
            pltpu.VMEM((Bb, N, ED), jnp.float32),              # h (persistent)
            pltpu.VMEM((K - 1, Bb, ED), jnp.float32),          # conv carry (persistent)
        ],
    )
    return pl.pallas_call(
        mamba_layer_kernel,
        out_shape=jax.ShapeDtypeStruct((L, B, D), jnp.float32),
        grid_spec=grid_spec,
        compiler_params=pltpu.CompilerParams(
            dimension_semantics=("parallel", "arbitrary"),
            vmem_limit_bytes=_vmem_limit_bytes()),
    )(x, *weights)


def lm_head(x, norm_w, head_w, *, row_chunk, vocab_chunk=512):
    L, B, D = x.shape
    Vp = head_w.shape[1]                       # pre-padded to a multiple of vocab_chunk
    assert L % row_chunk == 0 and Vp % vocab_chunk == 0
    grid_spec = pltpu.PrefetchScalarGridSpec(
        num_scalar_prefetch=0,
        grid=(L // row_chunk, Vp // vocab_chunk),
        in_specs=[
            pl.BlockSpec((row_chunk, B, D), lambda i, j: (i, 0, 0)),
            pl.BlockSpec(norm_w.shape, lambda i, j: (0, 0)),
            pl.BlockSpec((D, vocab_chunk), lambda i, j: (0, j)),
        ],
        out_specs=pl.BlockSpec((row_chunk, B, vocab_chunk), lambda i, j: (i, 0, j)),
        scratch_shapes=[pltpu.VMEM((row_chunk * B, D), jnp.bfloat16)],  # cached xn
    )
    return pl.pallas_call(
        head_kernel,
        out_shape=jax.ShapeDtypeStruct((L, B, Vp), jnp.float32),
        grid_spec=grid_spec,
        compiler_params=pltpu.CompilerParams(
            dimension_semantics=("parallel", "arbitrary"),
            vmem_limit_bytes=_vmem_limit_bytes()),
    )(x, norm_w, head_w)


def mamba_lm_forward(tokens, params, *, time_chunk=128, batch_block=None):
    # tokens: (B, L) int32 -> logits (B, L, vocab)
    emb = params["embedding"]                               # (V, D) f32
    V = emb.shape[0]
    # embedding gather is glue (not a matmul/conv/reduction hot path)
    x = jnp.take(emb, tokens, axis=0).astype(jnp.float32)   # (B, L, D)
    x = jnp.transpose(x, (1, 0, 2))                         # (L, B, D) time-major
    L = x.shape[0]
    Lc = min(time_chunk, L)
    Lpad = pl.cdiv(L, Lc) * Lc
    if Lpad != L:                                           # causal: pad tail only
        x = jnp.pad(x, ((0, Lpad - L), (0, 0), (0, 0)))
    for p in params["layers"]:
        x = mamba_layer(x, p, chunk=Lc, batch_block=batch_block)
    logits = lm_head(x, params["norm_f_w"], params["head_w"], row_chunk=Lc)
    return jnp.transpose(logits[:L, :, :V], (1, 0, 2))       # (B, L, V)


def init_params(key, *, vocab_size, d_model, n_layers, d_state, d_conv, expand):
    # pad_vocab_size_multiple = 8 (as in MambaLMConfig.__post_init__)
    pad = 8
    if vocab_size % pad != 0:
        vocab_size += pad - vocab_size % pad
    d_inner = expand * d_model
    dt_rank = math.ceil(d_model / 16)

    keys = jax.random.split(key, 1 + n_layers)
    emb = 0.02 * jax.random.normal(keys[0], (vocab_size, d_model), jnp.float32)
    bf16 = jnp.bfloat16

    layers = []
    for li in range(n_layers):
        lk = jax.random.split(keys[1 + li], 8)
        s_in = 1.0 / math.sqrt(d_model)
        s_ed = 1.0 / math.sqrt(d_inner)
        s_cv = 1.0 / math.sqrt(d_conv)
        # dt bias = inverse-softplus of dt sampled in [dt_min, dt_max]
        dt = jnp.exp(jax.random.uniform(lk[4], (d_inner,), jnp.float32)
                     * (math.log(0.1) - math.log(0.001)) + math.log(0.001))
        dt = jnp.maximum(dt, 1e-4)
        inv_dt = dt + jnp.log(-jnp.expm1(-dt))
        layers.append(dict(
            norm_w=jnp.ones((1, d_model), jnp.float32),
            # fused in_proj weight [x branch | z gate] (matches torch's single Linear)
            in_w=(s_in * jax.random.normal(lk[0], (d_model, 2 * d_inner),
                                           jnp.float32)).astype(bf16),
            conv_w=s_cv * jax.random.normal(lk[1], (d_conv, d_inner), jnp.float32),
            conv_b=s_cv * jax.random.normal(lk[2], (1, d_inner), jnp.float32),
            # fused x_proj weight [dt | B | C] (matches torch's single Linear)
            xp_w=(s_ed * jax.random.normal(lk[3], (d_inner, dt_rank + 2 * d_state),
                                           jnp.float32)).astype(bf16),
            dt_w=((dt_rank ** -0.5) * jax.random.normal(lk[5], (dt_rank, d_inner),
                                                        jnp.float32)).astype(bf16),
            dt_b=inv_dt.reshape(1, d_inner),
            # A = -exp(A_log) precomputed on host, state-major (d_state, d_inner)
            A=-jnp.tile(jnp.arange(1, d_state + 1, dtype=jnp.float32)[:, None],
                        (1, d_inner)),
            D=jnp.ones((1, d_inner), jnp.float32),
            out_w=(s_ed * jax.random.normal(lk[6], (d_inner, d_model),
                                            jnp.float32)).astype(bf16),
        ))

    # tied lm_head weight, pre-transposed once and zero-padded to a multiple of
    # the 512-wide vocab tile so the head never falls back to a whole-V block.
    vp = ((vocab_size + 511) // 512) * 512
    head_w = jnp.pad(jnp.transpose(emb), ((0, 0), (0, vp - vocab_size))).astype(bf16)

    return dict(embedding=emb, layers=layers,
                norm_f_w=jnp.ones((1, d_model), jnp.float32),
                head_w=head_w)
    # TODO(synk): step()/generate() (autoregressive sampling with caches) is
    # host-side control flow and is not part of the forward pass implemented here.


if __name__ == "__main__":
    key = jax.random.PRNGKey(0)
    pkey, tkey = jax.random.split(key)

    B, L = 2, 16
    params = init_params(pkey, vocab_size=100, d_model=32, n_layers=2,
                         d_state=16, d_conv=4, expand=2)
    vocab_padded = params["embedding"].shape[0]   # 104 (padded to multiple of 8)

    tokens = jax.random.randint(tkey, (B, L), 0, vocab_padded, dtype=jnp.int32)

    # time_chunk=8 -> 2 time chunks: exercises the persistent h / conv-carry path.
    fwd = jax.jit(lambda t, p: mamba_lm_forward(t, p, time_chunk=8))
    logits = jax.block_until_ready(fwd(tokens, params))

    assert logits.shape == (B, L, vocab_padded), logits.shape
    assert bool(jnp.all(jnp.isfinite(logits)))
    print("KERNEL_OK")
</pallas_src>

<mosaic_0001>
module attributes {stable_mosaic.version = 11 : i64} {
  func.func @head_kernel(%arg0: i32, %arg1: i32, %arg2: memref<8x2x32xf32, #tpu.memory_space<vmem>>, %arg3: memref<1x32xf32, #tpu.memory_space<vmem>>, %arg4: memref<32x512xbf16, #tpu.memory_space<vmem>>, %arg5: memref<8x2x512xf32, #tpu.memory_space<vmem>>, %arg6: memref<16x32xbf16, #tpu.memory_space<vmem>>) attributes {dimension_semantics = [#tpu.dimension_semantics<parallel>, #tpu.dimension_semantics<arbitrary>], iteration_bounds = array<i64: 2, 1>, scalar_prefetch = 0 : i64, scratch_operands = 1 : i64, tpu.core_type = #tpu.core_type<tc>, window_params = [{transform_indices = @transform_0, window_bounds = array<i64: 8, 2, 32>}, {pipeline_mode = #tpu.pipeline_mode<synchronous>, transform_indices = @transform_1, window_bounds = array<i64: 1, 32>}, {transform_indices = @transform_2, window_bounds = array<i64: 32, 512>}, {transform_indices = @transform_3, window_bounds = array<i64: 8, 2, 512>}]} {
    %c0_i32 = arith.constant 0 : i32
    %0 = arith.cmpi eq, %arg1, %c0_i32 : i32
    %1 = arith.extui %0 : i1 to i32
    %c0_i32_0 = arith.constant 0 : i32
    %2 = arith.cmpi ne, %1, %c0_i32_0 : i32
    scf.if %2 {
      %c0_7 = arith.constant 0 : index
      %c0_8 = arith.constant 0 : index
      %c0_9 = arith.constant 0 : index
      %8 = vector.load %arg2[%c0_7, %c0_8, %c0_9] : memref<8x2x32xf32, #tpu.memory_space<vmem>>, vector<8x2x32xf32>
      %c0_10 = arith.constant 0 : index
      %c0_11 = arith.constant 0 : index
      %9 = vector.load %arg3[%c0_10, %c0_11] : memref<1x32xf32, #tpu.memory_space<vmem>>, vector<1x32xf32>
      %10 = arith.mulf %8, %8 : vector<8x2x32xf32>
      %cst_12 = arith.constant dense<0.000000e+00> : vector<8x2xf32>
      %11 = vector.multi_reduction <add>, %10, %cst_12 [2] : vector<8x2x32xf32> to vector<8x2xf32>
      %12 = vector.shape_cast %11 : vector<8x2xf32> to vector<8x2x1xf32>
      %cst_13 = arith.constant 3.200000e+01 : f32
      %13 = vector.broadcast %cst_13 : f32 to vector<8x2x1xf32>
      %14 = arith.divf %12, %13 : vector<8x2x1xf32>
      %cst_14 = arith.constant 9.99999974E-6 : f32
      %15 = vector.broadcast %cst_14 : f32 to vector<8x2x1xf32>
      %16 = arith.addf %14, %15 : vector<8x2x1xf32>
      %17 = math.rsqrt %16 : vector<8x2x1xf32>
      %18 = vector.broadcast %17 : vector<8x2x1xf32> to vector<8x2x32xf32>
      %19 = arith.mulf %8, %18 : vector<8x2x32xf32>
      %20 = vector.shape_cast %9 : vector<1x32xf32> to vector<1x1x32xf32>
      %21 = vector.broadcast %20 : vector<1x1x32xf32> to vector<8x2x32xf32>
      %22 = arith.mulf %19, %21 : vector<8x2x32xf32>
      %23 = vector.shape_cast %22 : vector<8x2x32xf32> to vector<16x32xf32>
      %24 = arith.truncf %23 : vector<16x32xf32> to vector<16x32xbf16>
      %c0_15 = arith.constant 0 : index
      %c0_16 = arith.constant 0 : index
      %25 = vector.load %arg6[%c0_15, %c0_16] : memref<16x32xbf16, #tpu.memory_space<vmem>>, vector<16x32xbf16>
      tpu.vector_store %arg6[%c0_15, %c0_16], %24 {strides = array<i32>} : memref<16x32xbf16, #tpu.memory_space<vmem>>, vector<16x32xbf16>,
    } else {
    }
    %c0 = arith.constant 0 : index
    %c0_1 = arith.constant 0 : index
    %3 = vector.load %arg6[%c0, %c0_1] : memref<16x32xbf16, #tpu.memory_space<vmem>>, vector<16x32xbf16>
    %c0_2 = arith.constant 0 : index
    %c0_3 = arith.constant 0 : index
    %4 = vector.load %arg4[%c0_2, %c0_3] : memref<32x512xbf16, #tpu.memory_space<vmem>>, vector<32x512xbf16>
    %cst = arith.constant dense<0.000000e+00> : vector<16x512xf32>
    %5 = tpu.matmul %3, %4, %cst {dimension_numbers = #tpu.dot_dimension_numbers<[1], [0], [0], [1], [0, 0, 1, 1], [], []>} : vector<16x32xbf16>, vector<32x512xbf16>, vector<16x512xf32> -> vector<16x512xf32>
    %6 = vector.shape_cast %5 : vector<16x512xf32> to vector<8x2x512xf32>
    %c0_4 = arith.constant 0 : index
    %c0_5 = arith.constant 0 : index
    %c0_6 = arith.constant 0 : index
    %7 = vector.load %arg5[%c0_4, %c0_5, %c0_6] : memref<8x2x512xf32, #tpu.memory_space<vmem>>, vector<8x2x512xf32>
    tpu.vector_store %arg5[%c0_4, %c0_5, %c0_6], %6 {strides = array<i32>} : memref<8x2x512xf32, #tpu.memory_space<vmem>>, vector<8x2x512xf32>,
    return
  }
  func.func @transform_0(%arg0: i32, %arg1: i32) -> (i32, i32, i32) {
    %c0_i32 = arith.constant 0 : i32
    %c0_i32_0 = arith.constant 0 : i32
    %c0_i32_1 = arith.constant 0 : i32
    return %arg0, %c0_i32, %c0_i32_0 : i32, i32, i32
  }
  func.func @transform_1(%arg0: i32, %arg1: i32) -> (i32, i32) {
    %c0_i32 = arith.constant 0 : i32
    %c0_i32_0 = arith.constant 0 : i32
    %c0_i32_1 = arith.constant 0 : i32
    return %c0_i32, %c0_i32_0 : i32, i32
  }
  func.func @transform_2(%arg0: i32, %arg1: i32) -> (i32, i32) {
    %c0_i32 = arith.constant 0 : i32
    %c0_i32_0 = arith.constant 0 : i32
    return %c0_i32, %arg1 : i32, i32
  }
  func.func @transform_3(%arg0: i32, %arg1: i32) -> (i32, i32, i32) {
    %c0_i32 = arith.constant 0 : i32
    %c0_i32_0 = arith.constant 0 : i32
    return %arg0, %c0_i32, %arg1 : i32, i32, i32
  }
}

module attributes {stable_mosaic.version = 11 : i64} {
  func.func @mamba_layer_kernel(%arg0: i32, %arg1: i32, %arg2: memref<8x2x32xf32, #tpu.memory_space<vmem>>, %arg3: memref<1x32xf32, #tpu.memory_space<vmem>>, %arg4: memref<32x128xbf16, #tpu.memory_space<vmem>>, %arg5: memref<4x64xf32, #tpu.memory_space<vmem>>, %arg6: memref<1x64xf32, #tpu.memory_space<vmem>>, %arg7: memref<64x34xbf16, #tpu.memory_space<vmem>>, %arg8: memref<2x64xbf16, #tpu.memory_space<vmem>>, %arg9: memref<1x64xf32, #tpu.memory_space<vmem>>, %arg10: memref<16x64xf32, #tpu.memory_space<vmem>>, %arg11: memref<1x64xf32, #tpu.memory_space<vmem>>, %arg12: memref<64x32xbf16, #tpu.memory_space<vmem>>, %arg13: memref<8x2x32xf32, #tpu.memory_space<vmem>>, %arg14: memref<11x2x64xf32, #tpu.memory_space<vmem>>, %arg15: memref<8x2x64xbf16, #tpu.memory_space<vmem>>, %arg16: memref<8x2x64xf32, #tpu.memory_space<vmem>>, %arg17: memref<8x2x64xf32, #tpu.memory_space<vmem>>, %arg18: memref<8x2x16xf32, #tpu.memory_space<vmem>>, %arg19: memref<8x2x16xf32, #tpu.memory_space<vmem>>, %arg20: memref<8x2x16x64xf32, #tpu.memory_space<vmem>>, %arg21: memref<2x16x64xf32, #tpu.memory_space<vmem>>, %arg22: memref<3x2x64xf32, #tpu.memory_space<vmem>>) attributes {dimension_semantics = [#tpu.dimension_semantics<parallel>, #tpu.dimension_semantics<arbitrary>], iteration_bounds = array<i64: 1, 2>, scalar_prefetch = 0 : i64, scratch_operands = 9 : i64, tpu.core_type = #tpu.core_type<tc>, window_params = [{transform_indices = @transform_0, window_bounds = array<i64: 8, 2, 32>}, {pipeline_mode = #tpu.pipeline_mode<synchronous>, transform_indices = @transform_1, window_bounds = array<i64: 1, 32>}, {pipeline_mode = #tpu.pipeline_mode<synchronous>, transform_indices = @transform_2, window_bounds = array<i64: 32, 128>}, {pipeline_mode = #tpu.pipeline_mode<synchronous>, transform_indices = @transform_3, window_bounds = array<i64: 4, 64>}, {pipeline_mode = #tpu.pipeline_mode<synchronous>, transform_indices = @transform_4, window_bounds = array<i64: 1, 64>}, {pipeline_mode = #tpu.pipeline_mode<synchronous>, transform_indices = @transform_5, window_bounds = array<i64: 64, 34>}, {pipeline_mode = #tpu.pipeline_mode<synchronous>, transform_indices = @transform_6, window_bounds = array<i64: 2, 64>}, {pipeline_mode = #tpu.pipeline_mode<synchronous>, transform_indices = @transform_7, window_bounds = array<i64: 1, 64>}, {pipeline_mode = #tpu.pipeline_mode<synchronous>, transform_indices = @transform_8, window_bounds = array<i64: 16, 64>}, {pipeline_mode = #tpu.pipeline_mode<synchronous>, transform_indices = @transform_9, window_bounds = array<i64: 1, 64>}, {pipeline_mode = #tpu.pipeline_mode<synchronous>, transform_indices = @transform_10, window_bounds = array<i64: 64, 32>}, {transform_indices = @transform_11, window_bounds = array<i64: 8, 2, 32>}]} {
    %c0_i32 = arith.constant 0 : i32
    %0 = arith.cmpi eq, %arg1, %c0_i32 : i32
    %1 = arith.extui %0 : i1 to i32
    %c0_i32_0 = arith.constant 0 : i32
    %2 = arith.cmpi ne, %1, %c0_i32_0 : i32
    scf.if %2 {
      %cst_144 = arith.constant 0.000000e+00 : f32
      %235 = vector.broadcast %cst_144 : f32 to vector<2x16x64xf32>
      %c0_145 = arith.constant 0 : index
      %c0_146 = arith.constant 0 : index
      %c0_147 = arith.constant 0 : index
      %236 = vector.load %arg21[%c0_145, %c0_146, %c0_147] : memref<2x16x64xf32, #tpu.memory_space<vmem>>, vector<2x16x64xf32>
      tpu.vector_store %arg21[%c0_145, %c0_146, %c0_147], %235 {strides = array<i32>} : memref<2x16x64xf32, #tpu.memory_space<vmem>>, vector<2x16x64xf32>,
      %cst_148 = arith.constant 0.000000e+00 : f32
      %237 = vector.broadcast %cst_148 : f32 to vector<3x2x64xf32>
      %c0_149 = arith.constant 0 : index
      %c0_150 = arith.constant 0 : index
      %c0_151 = arith.constant 0 : index
      %238 = vector.load %arg22[%c0_149, %c0_150, %c0_151] : memref<3x2x64xf32, #tpu.memory_space<vmem>>, vector<3x2x64xf32>
      tpu.vector_store %arg22[%c0_149, %c0_150, %c0_151], %237 {strides = array<i32>} : memref<3x2x64xf32, #tpu.memory_space<vmem>>, vector<3x2x64xf32>,
    } else {
    }
    %c0 = arith.constant 0 : index
    %c0_1 = arith.constant 0 : index
    %c0_2 = arith.constant 0 : index
    %3 = vector.load %arg2[%c0, %c0_1, %c0_2] : memref<8x2x32xf32, #tpu.memory_space<vmem>>, vector<8x2x32xf32>
    %c0_3 = arith.constant 0 : index
    %c0_4 = arith.constant 0 : index
    %4 = vector.load %arg3[%c0_3, %c0_4] : memref<1x32xf32, #tpu.memory_space<vmem>>, vector<1x32xf32>
    %5 = arith.mulf %3, %3 : vector<8x2x32xf32>
    %cst = arith.constant dense<0.000000e+00> : vector<8x2xf32>
    %6 = vector.multi_reduction <add>, %5, %cst [2] : vector<8x2x32xf32> to vector<8x2xf32>
    %7 = vector.shape_cast %6 : vector<8x2xf32> to vector<8x2x1xf32>
    %cst_5 = arith.constant 3.200000e+01 : f32
    %8 = vector.broadcast %cst_5 : f32 to vector<8x2x1xf32>
    %9 = arith.divf %7, %8 : vector<8x2x1xf32>
    %cst_6 = arith.constant 9.99999974E-6 : f32
    %10 = vector.broadcast %cst_6 : f32 to vector<8x2x1xf32>
    %11 = arith.addf %9, %10 : vector<8x2x1xf32>
    %12 = math.rsqrt %11 : vector<8x2x1xf32>
    %13 = vector.broadcast %12 : vector<8x2x1xf32> to vector<8x2x32xf32>
    %14 = arith.mulf %3, %13 : vector<8x2x32xf32>
    %15 = vector.shape_cast %4 : vector<1x32xf32> to vector<1x1x32xf32>
    %16 = vector.broadcast %15 : vector<1x1x32xf32> to vector<8x2x32xf32>
    %17 = arith.mulf %14, %16 : vector<8x2x32xf32>
    %18 = vector.shape_cast %17 : vector<8x2x32xf32> to vector<16x32xf32>
    %19 = arith.truncf %18 : vector<16x32xf32> to vector<16x32xbf16>
    %c0_7 = arith.constant 0 : index
    %c0_8 = arith.constant 0 : index
    %20 = vector.load %arg4[%c0_7, %c0_8] : memref<32x128xbf16, #tpu.memory_space<vmem>>, vector<32x128xbf16>
    %cst_9 = arith.constant dense<0.000000e+00> : vector<16x128xf32>
    %21 = tpu.matmul %19, %20, %cst_9 {dimension_numbers = #tpu.dot_dimension_numbers<[1], [0], [0], [1], [0, 0, 1, 1], [], []>} : vector<16x32xbf16>, vector<32x128xbf16>, vector<16x128xf32> -> vector<16x128xf32>
    %22 = vector.extract_strided_slice %21 {offsets = [0, 0], sizes = [16, 64], strides = [1, 1]} : vector<16x128xf32> to vector<16x64xf32>
    %23 = vector.shape_cast %22 : vector<16x64xf32> to vector<8x2x64xf32>
    %24 = vector.extract_strided_slice %21 {offsets = [0, 64], sizes = [16, 64], strides = [1, 1]} : vector<16x128xf32> to vector<16x64xf32>
    %25 = vector.shape_cast %24 : vector<16x64xf32> to vector<8x2x64xf32>
    %26 = arith.truncf %25 : vector<8x2x64xf32> to vector<8x2x64xbf16>
    %c0_10 = arith.constant 0 : index
    %c0_11 = arith.constant 0 : index
    %c0_12 = arith.constant 0 : index
    %27 = vector.load %arg15[%c0_10, %c0_11, %c0_12] : memref<8x2x64xbf16, #tpu.memory_space<vmem>>, vector<8x2x64xbf16>
    tpu.vector_store %arg15[%c0_10, %c0_11, %c0_12], %26 {strides = array<i32>} : memref<8x2x64xbf16, #tpu.memory_space<vmem>>, vector<8x2x64xbf16>,
    %c0_13 = arith.constant 0 : index
    %c0_14 = arith.constant 0 : index
    %c0_15 = arith.constant 0 : index
    %28 = vector.load %arg22[%c0_13, %c0_14, %c0_15] : memref<3x2x64xf32, #tpu.memory_space<vmem>>, vector<3x2x64xf32>
    %c0_16 = arith.constant 0 : index
    %c0_17 = arith.constant 0 : index
    %c0_18 = arith.constant 0 : index
    %29 = vector.load %arg14[%c0_16, %c0_17, %c0_18] : memref<11x2x64xf32, #tpu.memory_space<vmem>>, vector<3x2x64xf32>
    tpu.vector_store %arg14[%c0_16, %c0_17, %c0_18], %28 {strides = array<i32>} : memref<11x2x64xf32, #tpu.memory_space<vmem>>, vector<3x2x64xf32>,
    %c3 = arith.constant 3 : index
    %c0_19 = arith.constant 0 : index
    %c0_20 = arith.constant 0 : index
    %30 = vector.load %arg14[%c3, %c0_19, %c0_20] : memref<11x2x64xf32, #tpu.memory_space<vmem>>, vector<8x2x64xf32>
    tpu.vector_store %arg14[%c3, %c0_19, %c0_20], %23 {strides = array<i32>} : memref<11x2x64xf32, #tpu.memory_space<vmem>>, vector<8x2x64xf32>,
    %31 = vector.extract_strided_slice %23 {offsets = [5, 0, 0], sizes = [3, 2, 64], strides = [1, 1, 1]} : vector<8x2x64xf32> to vector<3x2x64xf32>
    %c0_21 = arith.constant 0 : index
    %c0_22 = arith.constant 0 : index
    %c0_23 = arith.constant 0 : index
    %32 = vector.load %arg22[%c0_21, %c0_22, %c0_23] : memref<3x2x64xf32, #tpu.memory_space<vmem>>, vector<3x2x64xf32>
    tpu.vector_store %arg22[%c0_21, %c0_22, %c0_23], %31 {strides = array<i32>} : memref<3x2x64xf32, #tpu.memory_space<vmem>>, vector<3x2x64xf32>,
    %c0_24 = arith.constant 0 : index
    %c0_25 = arith.constant 0 : index
    %33 = vector.load %arg5[%c0_24, %c0_25] : memref<4x64xf32, #tpu.memory_space<vmem>>, vector<4x64xf32>
    %cst_26 = arith.constant 0.000000e+00 : f32
    %34 = vector.broadcast %cst_26 : f32 to vector<8x2x64xf32>
    %c0_27 = arith.constant 0 : index
    %c0_28 = arith.constant 0 : index
    %c0_29 = arith.constant 0 : index
    %35 = vector.load %arg14[%c0_27, %c0_28, %c0_29] : memref<11x2x64xf32, #tpu.memory_space<vmem>>, vector<8x2x64xf32>
    %36 = vector.extract_strided_slice %33 {offsets = [0, 0], sizes = [1, 64], strides = [1, 1]} : vector<4x64xf32> to vector<1x64xf32>
    %37 = vector.shape_cast %36 : vector<1x64xf32> to vector<1x1x64xf32>
    %38 = vector.broadcast %37 : vector<1x1x64xf32> to vector<8x2x64xf32>
    %39 = arith.mulf %35, %38 : vector<8x2x64xf32>
    %40 = arith.addf %34, %39 : vector<8x2x64xf32>
    %c1 = arith.constant 1 : index
    %c0_30 = arith.constant 0 : index
    %c0_31 = arith.constant 0 : index
    %41 = vector.load %arg14[%c1, %c0_30, %c0_31] : memref<11x2x64xf32, #tpu.memory_space<vmem>>, vector<8x2x64xf32>
    %42 = vector.extract_strided_slice %33 {offsets = [1, 0], sizes = [1, 64], strides = [1, 1]} : vector<4x64xf32> to vector<1x64xf32>
    %43 = vector.shape_cast %42 : vector<1x64xf32> to vector<1x1x64xf32>
    %44 = vector.broadcast %43 : vector<1x1x64xf32> to vector<8x2x64xf32>
    %45 = arith.mulf %41, %44 : vector<8x2x64xf32>
    %46 = arith.addf %40, %45 : vector<8x2x64xf32>
    %c2 = arith.constant 2 : index
    %c0_32 = arith.constant 0 : index
    %c0_33 = arith.constant 0 : index
    %47 = vector.load %arg14[%c2, %c0_32, %c0_33] : memref<11x2x64xf32, #tpu.memory_space<vmem>>, vector<8x2x64xf32>
    %48 = vector.extract_strided_slice %33 {offsets = [2, 0], sizes = [1, 64], strides = [1, 1]} : vector<4x64xf32> to vector<1x64xf32>
    %49 = vector.shape_cast %48 : vector<1x64xf32> to vector<1x1x64xf32>
    %50 = vector.broadcast %49 : vector<1x1x64xf32> to vector<8x2x64xf32>
    %51 = arith.mulf %47, %50 : vector<8x2x64xf32>
    %52 = arith.addf %46, %51 : vector<8x2x64xf32>
    %c3_34 = arith.constant 3 : index
    %c0_35 = arith.constant 0 : index
    %c0_36 = arith.constant 0 : index
    %53 = vector.load %arg14[%c3_34, %c0_35, %c0_36] : memref<11x2x64xf32, #tpu.memory_space<vmem>>, vector<8x2x64xf32>
    %54 = vector.extract_strided_slice %33 {offsets = [3, 0], sizes = [1, 64], strides = [1, 1]} : vector<4x64xf32> to vector<1x64xf32>
    %55 = vector.shape_cast %54 : vector<1x64xf32> to vector<1x1x64xf32>
    %56 = vector.broadcast %55 : vector<1x1x64xf32> to vector<8x2x64xf32>
    %57 = arith.mulf %53, %56 : vector<8x2x64xf32>
    %58 = arith.addf %52, %57 : vector<8x2x64xf32>
    %c0_37 = arith.constant 0 : index
    %c0_38 = arith.constant 0 : index
    %59 = vector.load %arg6[%c0_37, %c0_38] : memref<1x64xf32, #tpu.memory_space<vmem>>, vector<1x64xf32>
    %60 = vector.shape_cast %59 : vector<1x64xf32> to vector<1x1x64xf32>
    %61 = vector.broadcast %60 : vector<1x1x64xf32> to vector<8x2x64xf32>
    %62 = arith.addf %58, %61 : vector<8x2x64xf32>
    %cst_39 = arith.constant 0.000000e+00 : f32
    %63 = vector.broadcast %cst_39 : f32 to vector<8x2x64xf32>
    %64 = arith.subf %63, %62 : vector<8x2x64xf32>
    %65 = math.exp %64 : vector<8x2x64xf32>
    %cst_40 = arith.constant 1.000000e+00 : f32
    %66 = vector.broadcast %cst_40 : f32 to vector<8x2x64xf32>
    %67 = arith.addf %66, %65 : vector<8x2x64xf32>
    %cst_41 = arith.constant 1.000000e+00 : f32
    %68 = vector.broadcast %cst_41 : f32 to vector<8x2x64xf32>
    %69 = arith.divf %68, %67 : vector<8x2x64xf32>
    %70 = arith.mulf %62, %69 : vector<8x2x64xf32>
    %71 = vector.shape_cast %70 : vector<8x2x64xf32> to vector<16x64xf32>
    %72 = arith.truncf %71 : vector<16x64xf32> to vector<16x64xbf16>
    %c0_42 = arith.constant 0 : index
    %c0_43 = arith.constant 0 : index
    %73 = vector.load %arg7[%c0_42, %c0_43] : memref<64x34xbf16, #tpu.memory_space<vmem>>, vector<64x34xbf16>
    %cst_44 = arith.constant dense<0.000000e+00> : vector<16x34xf32>
    %74 = tpu.matmul %72, %73, %cst_44 {dimension_numbers = #tpu.dot_dimension_numbers<[1], [0], [0], [1], [0, 0, 1, 1], [], []>} : vector<16x64xbf16>, vector<64x34xbf16>, vector<16x34xf32> -> vector<16x34xf32>
    %75 = vector.extract_strided_slice %74 {offsets = [0, 0], sizes = [16, 2], strides = [1, 1]} : vector<16x34xf32> to vector<16x2xf32>
    %76 = arith.truncf %75 : vector<16x2xf32> to vector<16x2xbf16>
    %c0_45 = arith.constant 0 : index
    %c0_46 = arith.constant 0 : index
    %77 = vector.load %arg8[%c0_45, %c0_46] : memref<2x64xbf16, #tpu.memory_space<vmem>>, vector<2x64xbf16>
    %cst_47 = arith.constant dense<0.000000e+00> : vector<16x64xf32>
    %78 = tpu.matmul %76, %77, %cst_47 {dimension_numbers = #tpu.dot_dimension_numbers<[1], [0], [0], [1], [0, 0, 1, 1], [], []>} : vector<16x2xbf16>, vector<2x64xbf16>, vector<16x64xf32> -> vector<16x64xf32>
    %c0_48 = arith.constant 0 : index
    %c0_49 = arith.constant 0 : index
    %79 = vector.load %arg9[%c0_48, %c0_49] : memref<1x64xf32, #tpu.memory_space<vmem>>, vector<1x64xf32>
    %80 = vector.broadcast %79 : vector<1x64xf32> to vector<16x64xf32>
    %81 = arith.addf %78, %80 : vector<16x64xf32>
    %cst_50 = arith.constant 0.000000e+00 : f32
    %82 = vector.broadcast %cst_50 : f32 to vector<16x64xf32>
    %83 = arith.maximumf %81, %82 : vector<16x64xf32>
    %84 = math.absf %81 : vector<16x64xf32>
    %cst_51 = arith.constant 0.000000e+00 : f32
    %85 = vector.broadcast %cst_51 : f32 to vector<16x64xf32>
    %86 = arith.subf %85, %84 : vector<16x64xf32>
    %87 = math.exp %86 : vector<16x64xf32>
    %cst_52 = arith.constant 1.000000e+00 : f32
    %88 = vector.broadcast %cst_52 : f32 to vector<16x64xf32>
    %89 = arith.addf %88, %87 : vector<16x64xf32>
    %90 = math.log %89 : vector<16x64xf32>
    %91 = arith.addf %83, %90 : vector<16x64xf32>
    %92 = vector.shape_cast %91 : vector<16x64xf32> to vector<8x2x64xf32>
    %c0_53 = arith.constant 0 : index
    %c0_54 = arith.constant 0 : index
    %c0_55 = arith.constant 0 : index
    %93 = vector.load %arg16[%c0_53, %c0_54, %c0_55] : memref<8x2x64xf32, #tpu.memory_space<vmem>>, vector<8x2x64xf32>
    tpu.vector_store %arg16[%c0_53, %c0_54, %c0_55], %92 {strides = array<i32>} : memref<8x2x64xf32, #tpu.memory_space<vmem>>, vector<8x2x64xf32>,
    %94 = arith.mulf %92, %70 : vector<8x2x64xf32>
    %c0_56 = arith.constant 0 : index
    %c0_57 = arith.constant 0 : index
    %c0_58 = arith.constant 0 : index
    %95 = vector.load %arg14[%c0_56, %c0_57, %c0_58] : memref<11x2x64xf32, #tpu.memory_space<vmem>>, vector<8x2x64xf32>
    tpu.vector_store %arg14[%c0_56, %c0_57, %c0_58], %94 {strides = array<i32>} : memref<11x2x64xf32, #tpu.memory_space<vmem>>, vector<8x2x64xf32>,
    %96 = vector.extract_strided_slice %74 {offsets = [0, 2], sizes = [16, 16], strides = [1, 1]} : vector<16x34xf32> to vector<16x16xf32>
    %97 = vector.shape_cast %96 : vector<16x16xf32> to vector<8x2x16xf32>
    %c0_59 = arith.constant 0 : index
    %c0_60 = arith.constant 0 : index
    %c0_61 = arith.constant 0 : index
    %98 = vector.load %arg18[%c0_59, %c0_60, %c0_61] : memref<8x2x16xf32, #tpu.memory_space<vmem>>, vector<8x2x16xf32>
    tpu.vector_store %arg18[%c0_59, %c0_60, %c0_61], %97 {strides = array<i32>} : memref<8x2x16xf32, #tpu.memory_space<vmem>>, vector<8x2x16xf32>,
    %99 = vector.extract_strided_slice %74 {offsets = [0, 18], sizes = [16, 16], strides = [1, 1]} : vector<16x34xf32> to vector<16x16xf32>
    %100 = vector.shape_cast %99 : vector<16x16xf32> to vector<8x2x16xf32>
    %c0_62 = arith.constant 0 : index
    %c0_63 = arith.constant 0 : index
    %c0_64 = arith.constant 0 : index
    %101 = vector.load %arg19[%c0_62, %c0_63, %c0_64] : memref<8x2x16xf32, #tpu.memory_space<vmem>>, vector<8x2x16xf32>
    tpu.vector_store %arg19[%c0_62, %c0_63, %c0_64], %100 {strides = array<i32>} : memref<8x2x16xf32, #tpu.memory_space<vmem>>, vector<8x2x16xf32>,
    %c0_65 = arith.constant 0 : index
    %c0_66 = arith.constant 0 : index
    %102 = vector.load %arg11[%c0_65, %c0_66] : memref<1x64xf32, #tpu.memory_space<vmem>>, vector<1x64xf32>
    %103 = vector.shape_cast %102 : vector<1x64xf32> to vector<1x1x64xf32>
    %104 = vector.broadcast %103 : vector<1x1x64xf32> to vector<8x2x64xf32>
    %105 = arith.mulf %104, %70 : vector<8x2x64xf32>
    %c0_67 = arith.constant 0 : index
    %c0_68 = arith.constant 0 : index
    %c0_69 = arith.constant 0 : index
    %106 = vector.load %arg17[%c0_67, %c0_68, %c0_69] : memref<8x2x64xf32, #tpu.memory_space<vmem>>, vector<8x2x64xf32>
    tpu.vector_store %arg17[%c0_67, %c0_68, %c0_69], %105 {strides = array<i32>} : memref<8x2x64xf32, #tpu.memory_space<vmem>>, vector<8x2x64xf32>,
    %c0_70 = arith.constant 0 : index
    %c0_71 = arith.constant 0 : index
    %107 = vector.load %arg10[%c0_70, %c0_71] : memref<16x64xf32, #tpu.memory_space<vmem>>, vector<16x64xf32>
    %c0_i32_72 = arith.constant 0 : i32
    %c1_i32 = arith.constant 1 : i32
    %108 = arith.muli %c0_i32_72, %c1_i32 : i32
    %c0_i32_73 = arith.constant 0 : i32
    %109 = arith.addi %c0_i32_73, %108 : i32
    %c8_i32 = arith.constant 8 : i32
    %110 = arith.muli %109, %c8_i32 : i32
    %111 = tpu.assume_multiple %110, 8 : i32
    %112 = arith.index_cast %111 : i32 to index
    %c0_74 = arith.constant 0 : index
    %c0_75 = arith.constant 0 : index
    %113 = vector.load %arg16[%112, %c0_74, %c0_75] : memref<8x2x64xf32, #tpu.memory_space<vmem>>, vector<8x2x64xf32>
    %114 = arith.index_cast %111 : i32 to index
    %c0_76 = arith.constant 0 : index
    %c0_77 = arith.constant 0 : index
    %115 = vector.load %arg14[%114, %c0_76, %c0_77] : memref<11x2x64xf32, #tpu.memory_space<vmem>>, vector<8x2x64xf32>
    %116 = arith.index_cast %111 : i32 to index
    %c0_78 = arith.constant 0 : index
    %c0_79 = arith.constant 0 : index
    %117 = vector.load %arg18[%116, %c0_78, %c0_79] : memref<8x2x16xf32, #tpu.memory_space<vmem>>, vector<8x2x16xf32>
    %118 = vector.shape_cast %117 : vector<8x2x16xf32> to vector<8x2x16x1xf32>
    %119 = vector.shape_cast %113 : vector<8x2x64xf32> to vector<8x2x1x64xf32>
    %120 = vector.shape_cast %107 : vector<16x64xf32> to vector<1x1x16x64xf32>
    %121 = vector.broadcast %119 : vector<8x2x1x64xf32> to vector<8x2x16x64xf32>
    %122 = vector.broadcast %120 : vector<1x1x16x64xf32> to vector<8x2x16x64xf32>
    %123 = arith.mulf %121, %122 : vector<8x2x16x64xf32>
    %124 = math.exp %123 : vector<8x2x16x64xf32>
    %125 = vector.shape_cast %115 : vector<8x2x64xf32> to vector<8x2x1x64xf32>
    %126 = vector.broadcast %125 : vector<8x2x1x64xf32> to vector<8x2x16x64xf32>
    %127 = vector.broadcast %118 : vector<8x2x16x1xf32> to vector<8x2x16x64xf32>
    %128 = arith.mulf %126, %127 : vector<8x2x16x64xf32>
    %c0_80 = arith.constant 0 : index
    %c0_81 = arith.constant 0 : index
    %c0_82 = arith.constant 0 : index
    %129 = vector.load %arg21[%c0_80, %c0_81, %c0_82] : memref<2x16x64xf32, #tpu.memory_space<vmem>>, vector<2x16x64xf32>
    %130 = vector.extract_strided_slice %124 {offsets = [0, 0, 0, 0], sizes = [1, 2, 16, 64], strides = [1, 1, 1, 1]} : vector<8x2x16x64xf32> to vector<1x2x16x64xf32>
    %131 = vector.shape_cast %130 : vector<1x2x16x64xf32> to vector<2x16x64xf32>
    %132 = arith.mulf %131, %129 : vector<2x16x64xf32>
    %133 = vector.extract_strided_slice %128 {offsets = [0, 0, 0, 0], sizes = [1, 2, 16, 64], strides = [1, 1, 1, 1]} : vector<8x2x16x64xf32> to vector<1x2x16x64xf32>
    %134 = vector.shape_cast %133 : vector<1x2x16x64xf32> to vector<2x16x64xf32>
    %135 = arith.addf %132, %134 : vector<2x16x64xf32>
    %c0_83 = arith.constant 0 : index
    %c0_84 = arith.constant 0 : index
    %c0_85 = arith.constant 0 : index
    %c0_86 = arith.constant 0 : index
    %136 = vector.load %arg20[%c0_83, %c0_84, %c0_85, %c0_86] : memref<8x2x16x64xf32, #tpu.memory_space<vmem>>, vector<1x2x16x64xf32>
    %137 = vector.shape_cast %136 : vector<1x2x16x64xf32> to vector<2x16x64xf32>
    %138 = vector.shape_cast %135 : vector<2x16x64xf32> to vector<1x2x16x64xf32>
    tpu.vector_store %arg20[%c0_83, %c0_84, %c0_85, %c0_86], %138 {strides = array<i32>} : memref<8x2x16x64xf32, #tpu.memory_space<vmem>>, vector<1x2x16x64xf32>,
    %139 = vector.extract_strided_slice %124 {offsets = [1, 0, 0, 0], sizes = [1, 2, 16, 64], strides = [1, 1, 1, 1]} : vector<8x2x16x64xf32> to vector<1x2x16x64xf32>
    %140 = vector.shape_cast %139 : vector<1x2x16x64xf32> to vector<2x16x64xf32>
    %141 = arith.mulf %140, %135 : vector<2x16x64xf32>
    %142 = vector.extract_strided_slice %128 {offsets = [1, 0, 0, 0], sizes = [1, 2, 16, 64], strides = [1, 1, 1, 1]} : vector<8x2x16x64xf32> to vector<1x2x16x64xf32>
    %143 = vector.shape_cast %142 : vector<1x2x16x64xf32> to vector<2x16x64xf32>
    %144 = arith.addf %141, %143 : vector<2x16x64xf32>
    %c1_87 = arith.constant 1 : index
    %c0_88 = arith.constant 0 : index
    %c0_89 = arith.constant 0 : index
    %c0_90 = arith.constant 0 : index
    %145 = vector.load %arg20[%c1_87, %c0_88, %c0_89, %c0_90] : memref<8x2x16x64xf32, #tpu.memory_space<vmem>>, vector<1x2x16x64xf32>
    %146 = vector.shape_cast %145 : vector<1x2x16x64xf32> to vector<2x16x64xf32>
    %147 = vector.shape_cast %144 : vector<2x16x64xf32> to vector<1x2x16x64xf32>
    tpu.vector_store %arg20[%c1_87, %c0_88, %c0_89, %c0_90], %147 {strides = array<i32>} : memref<8x2x16x64xf32, #tpu.memory_space<vmem>>, vector<1x2x16x64xf32>,
    %148 = vector.extract_strided_slice %124 {offsets = [2, 0, 0, 0], sizes = [1, 2, 16, 64], strides = [1, 1, 1, 1]} : vector<8x2x16x64xf32> to vector<1x2x16x64xf32>
    %149 = vector.shape_cast %148 : vector<1x2x16x64xf32> to vector<2x16x64xf32>
    %150 = arith.mulf %149, %144 : vector<2x16x64xf32>
    %151 = vector.extract_strided_slice %128 {offsets = [2, 0, 0, 0], sizes = [1, 2, 16, 64], strides = [1, 1, 1, 1]} : vector<8x2x16x64xf32> to vector<1x2x16x64xf32>
    %152 = vector.shape_cast %151 : vector<1x2x16x64xf32> to vector<2x16x64xf32>
    %153 = arith.addf %150, %152 : vector<2x16x64xf32>
    %c2_91 = arith.constant 2 : index
    %c0_92 = arith.constant 0 : index
    %c0_93 = arith.constant 0 : index
    %c0_94 = arith.constant 0 : index
    %154 = vector.load %arg20[%c2_91, %c0_92, %c0_93, %c0_94] : memref<8x2x16x64xf32, #tpu.memory_space<vmem>>, vector<1x2x16x64xf32>
    %155 = vector.shape_cast %154 : vector<1x2x16x64xf32> to vector<2x16x64xf32>
    %156 = vector.shape_cast %153 : vector<2x16x64xf32> to vector<1x2x16x64xf32>
    tpu.vector_store %arg20[%c2_91, %c0_92, %c0_93, %c0_94], %156 {strides = array<i32>} : memref<8x2x16x64xf32, #tpu.memory_space<vmem>>, vector<1x2x16x64xf32>,
    %157 = vector.extract_strided_slice %124 {offsets = [3, 0, 0, 0], sizes = [1, 2, 16, 64], strides = [1, 1, 1, 1]} : vector<8x2x16x64xf32> to vector<1x2x16x64xf32>
    %158 = vector.shape_cast %157 : vector<1x2x16x64xf32> to vector<2x16x64xf32>
    %159 = arith.mulf %158, %153 : vector<2x16x64xf32>
    %160 = vector.extract_strided_slice %128 {offsets = [3, 0, 0, 0], sizes = [1, 2, 16, 64], strides = [1, 1, 1, 1]} : vector<8x2x16x64xf32> to vector<1x2x16x64xf32>
    %161 = vector.shape_cast %160 : vector<1x2x16x64xf32> to vector<2x16x64xf32>
    %162 = arith.addf %159, %161 : vector<2x16x64xf32>
    %c3_95 = arith.constant 3 : index
    %c0_96 = arith.constant 0 : index
    %c0_97 = arith.constant 0 : index
    %c0_98 = arith.constant 0 : index
    %163 = vector.load %arg20[%c3_95, %c0_96, %c0_97, %c0_98] : memref<8x2x16x64xf32, #tpu.memory_space<vmem>>, vector<1x2x16x64xf32>
    %164 = vector.shape_cast %163 : vector<1x2x16x64xf32> to vector<2x16x64xf32>
    %165 = vector.shape_cast %162 : vector<2x16x64xf32> to vector<1x2x16x64xf32>
    tpu.vector_store %arg20[%c3_95, %c0_96, %c0_97, %c0_98], %165 {strides = array<i32>} : memref<8x2x16x64xf32, #tpu.memory_space<vmem>>, vector<1x2x16x64xf32>,
    %166 = vector.extract_strided_slice %124 {offsets = [4, 0, 0, 0], sizes = [1, 2, 16, 64], strides = [1, 1, 1, 1]} : vector<8x2x16x64xf32> to vector<1x2x16x64xf32>
    %167 = vector.shape_cast %166 : vector<1x2x16x64xf32> to vector<2x16x64xf32>
    %168 = arith.mulf %167, %162 : vector<2x16x64xf32>
    %169 = vector.extract_strided_slice %128 {offsets = [4, 0, 0, 0], sizes = [1, 2, 16, 64], strides = [1, 1, 1, 1]} : vector<8x2x16x64xf32> to vector<1x2x16x64xf32>
    %170 = vector.shape_cast %169 : vector<1x2x16x64xf32> to vector<2x16x64xf32>
    %171 = arith.addf %168, %170 : vector<2x16x64xf32>
    %c4 = arith.constant 4 : index
    %c0_99 = arith.constant 0 : index
    %c0_100 = arith.constant 0 : index
    %c0_101 = arith.constant 0 : index
    %172 = vector.load %arg20[%c4, %c0_99, %c0_100, %c0_101] : memref<8x2x16x64xf32, #tpu.memory_space<vmem>>, vector<1x2x16x64xf32>
    %173 = vector.shape_cast %172 : vector<1x2x16x64xf32> to vector<2x16x64xf32>
    %174 = vector.shape_cast %171 : vector<2x16x64xf32> to vector<1x2x16x64xf32>
    tpu.vector_store %arg20[%c4, %c0_99, %c0_100, %c0_101], %174 {strides = array<i32>} : memref<8x2x16x64xf32, #tpu.memory_space<vmem>>, vector<1x2x16x64xf32>,
    %175 = vector.extract_strided_slice %124 {offsets = [5, 0, 0, 0], sizes = [1, 2, 16, 64], strides = [1, 1, 1, 1]} : vector<8x2x16x64xf32> to vector<1x2x16x64xf32>
    %176 = vector.shape_cast %175 : vector<1x2x16x64xf32> to vector<2x16x64xf32>
    %177 = arith.mulf %176, %171 : vector<2x16x64xf32>
    %178 = vector.extract_strided_slice %128 {offsets = [5, 0, 0, 0], sizes = [1, 2, 16, 64], strides = [1, 1, 1, 1]} : vector<8x2x16x64xf32> to vector<1x2x16x64xf32>
    %179 = vector.shape_cast %178 : vector<1x2x16x64xf32> to vector<2x16x64xf32>
    %180 = arith.addf %177, %179 : vector<2x16x64xf32>
    %c5 = arith.constant 5 : index
    %c0_102 = arith.constant 0 : index
    %c0_103 = arith.constant 0 : index
    %c0_104 = arith.constant 0 : index
    %181 = vector.load %arg20[%c5, %c0_102, %c0_103, %c0_104] : memref<8x2x16x64xf32, #tpu.memory_space<vmem>>, vector<1x2x16x64xf32>
    %182 = vector.shape_cast %181 : vector<1x2x16x64xf32> to vector<2x16x64xf32>
    %183 = vector.shape_cast %180 : vector<2x16x64xf32> to vector<1x2x16x64xf32>
    tpu.vector_store %arg20[%c5, %c0_102, %c0_103, %c0_104], %183 {strides = array<i32>} : memref<8x2x16x64xf32, #tpu.memory_space<vmem>>, vector<1x2x16x64xf32>,
    %184 = vector.extract_strided_slice %124 {offsets = [6, 0, 0, 0], sizes = [1, 2, 16, 64], strides = [1, 1, 1, 1]} : vector<8x2x16x64xf32> to vector<1x2x16x64xf32>
    %185 = vector.shape_cast %184 : vector<1x2x16x64xf32> to vector<2x16x64xf32>
    %186 = arith.mulf %185, %180 : vector<2x16x64xf32>
    %187 = vector.extract_strided_slice %128 {offsets = [6, 0, 0, 0], sizes = [1, 2, 16, 64], strides = [1, 1, 1, 1]} : vector<8x2x16x64xf32> to vector<1x2x16x64xf32>
    %188 = vector.shape_cast %187 : vector<1x2x16x64xf32> to vector<2x16x64xf32>
    %189 = arith.addf %186, %188 : vector<2x16x64xf32>
    %c6 = arith.constant 6 : index
    %c0_105 = arith.constant 0 : index
    %c0_106 = arith.constant 0 : index
    %c0_107 = arith.constant 0 : index
    %190 = vector.load %arg20[%c6, %c0_105, %c0_106, %c0_107] : memref<8x2x16x64xf32, #tpu.memory_space<vmem>>, vector<1x2x16x64xf32>
    %191 = vector.shape_cast %190 : vector<1x2x16x64xf32> to vector<2x16x64xf32>
    %192 = vector.shape_cast %189 : vector<2x16x64xf32> to vector<1x2x16x64xf32>
    tpu.vector_store %arg20[%c6, %c0_105, %c0_106, %c0_107], %192 {strides = array<i32>} : memref<8x2x16x64xf32, #tpu.memory_space<vmem>>, vector<1x2x16x64xf32>,
    %193 = vector.extract_strided_slice %124 {offsets = [7, 0, 0, 0], sizes = [1, 2, 16, 64], strides = [1, 1, 1, 1]} : vector<8x2x16x64xf32> to vector<1x2x16x64xf32>
    %194 = vector.shape_cast %193 : vector<1x2x16x64xf32> to vector<2x16x64xf32>
    %195 = arith.mulf %194, %189 : vector<2x16x64xf32>
    %196 = vector.extract_strided_slice %128 {offsets = [7, 0, 0, 0], sizes = [1, 2, 16, 64], strides = [1, 1, 1, 1]} : vector<8x2x16x64xf32> to vector<1x2x16x64xf32>
    %197 = vector.shape_cast %196 : vector<1x2x16x64xf32> to vector<2x16x64xf32>
    %198 = arith.addf %195, %197 : vector<2x16x64xf32>
    %c7 = arith.constant 7 : index
    %c0_108 = arith.constant 0 : index
    %c0_109 = arith.constant 0 : index
    %c0_110 = arith.constant 0 : index
    %199 = vector.load %arg20[%c7, %c0_108, %c0_109, %c0_110] : memref<8x2x16x64xf32, #tpu.memory_space<vmem>>, vector<1x2x16x64xf32>
    %200 = vector.shape_cast %199 : vector<1x2x16x64xf32> to vector<2x16x64xf32>
    %201 = vector.shape_cast %198 : vector<2x16x64xf32> to vector<1x2x16x64xf32>
    tpu.vector_store %arg20[%c7, %c0_108, %c0_109, %c0_110], %201 {strides = array<i32>} : memref<8x2x16x64xf32, #tpu.memory_space<vmem>>, vector<1x2x16x64xf32>,
    %c0_111 = arith.constant 0 : index
    %c0_112 = arith.constant 0 : index
    %c0_113 = arith.constant 0 : index
    %202 = vector.load %arg21[%c0_111, %c0_112, %c0_113] : memref<2x16x64xf32, #tpu.memory_space<vmem>>, vector<2x16x64xf32>
    tpu.vector_store %arg21[%c0_111, %c0_112, %c0_113], %198 {strides = array<i32>} : memref<2x16x64xf32, #tpu.memory_space<vmem>>, vector<2x16x64xf32>,
    %203 = arith.index_cast %111 : i32 to index
    %c0_114 = arith.constant 0 : index
    %c0_115 = arith.constant 0 : index
    %204 = vector.load %arg19[%203, %c0_114, %c0_115] : memref<8x2x16xf32, #tpu.memory_space<vmem>>, vector<8x2x16xf32>
    %205 = vector.shape_cast %204 : vector<8x2x16xf32> to vector<8x2x16x1xf32>
    %c0_116 = arith.constant 0 : index
    %c0_117 = arith.constant 0 : index
    %c0_118 = arith.constant 0 : index
    %c0_119 = arith.constant 0 : index
    %206 = vector.load %arg20[%c0_116, %c0_117, %c0_118, %c0_119] : memref<8x2x16x64xf32, #tpu.memory_space<vmem>>, vector<8x2x16x64xf32>
    %207 = vector.broadcast %205 : vector<8x2x16x1xf32> to vector<8x2x16x64xf32>
    %208 = arith.mulf %206, %207 : vector<8x2x16x64xf32>
    %cst_120 = arith.constant dense<0.000000e+00> : vector<8x2x64xf32>
    %209 = vector.multi_reduction <add>, %208, %cst_120 [2] : vector<8x2x16x64xf32> to vector<8x2x64xf32>
    %210 = arith.index_cast %111 : i32 to index
    %c0_121 = arith.constant 0 : index
    %c0_122 = arith.constant 0 : index
    %211 = vector.load %arg17[%210, %c0_121, %c0_122] : memref<8x2x64xf32, #tpu.memory_space<vmem>>, vector<8x2x64xf32>
    %212 = arith.addf %211, %209 : vector<8x2x64xf32>
    %213 = arith.index_cast %111 : i32 to index
    %c0_123 = arith.constant 0 : index
    %c0_124 = arith.constant 0 : index
    %214 = vector.load %arg17[%213, %c0_123, %c0_124] : memref<8x2x64xf32, #tpu.memory_space<vmem>>, vector<8x2x64xf32>
    tpu.vector_store %arg17[%213, %c0_123, %c0_124], %212 {strides = array<i32>} : memref<8x2x64xf32, #tpu.memory_space<vmem>>, vector<8x2x64xf32>,
    %c1_i32_125 = arith.constant 1 : i32
    %c0_126 = arith.constant 0 : index
    %c0_127 = arith.constant 0 : index
    %c0_128 = arith.constant 0 : index
    %215 = vector.load %arg17[%c0_126, %c0_127, %c0_128] : memref<8x2x64xf32, #tpu.memory_space<vmem>>, vector<8x2x64xf32>
    %c0_129 = arith.constant 0 : index
    %c0_130 = arith.constant 0 : index
    %c0_131 = arith.constant 0 : index
    %216 = vector.load %arg15[%c0_129, %c0_130, %c0_131] : memref<8x2x64xbf16, #tpu.memory_space<vmem>>, vector<8x2x64xbf16>
    %217 = arith.extf %216 : vector<8x2x64xbf16> to vector<8x2x64xf32>
    %cst_132 = arith.constant 0.000000e+00 : f32
    %218 = vector.broadcast %cst_132 : f32 to vector<8x2x64xf32>
    %219 = arith.subf %218, %217 : vector<8x2x64xf32>
    %220 = math.exp %219 : vector<8x2x64xf32>
    %cst_133 = arith.constant 1.000000e+00 : f32
    %221 = vector.broadcast %cst_133 : f32 to vector<8x2x64xf32>
    %222 = arith.addf %221, %220 : vector<8x2x64xf32>
    %cst_134 = arith.constant 1.000000e+00 : f32
    %223 = vector.broadcast %cst_134 : f32 to vector<8x2x64xf32>
    %224 = arith.divf %223, %222 : vector<8x2x64xf32>
    %225 = arith.mulf %217, %224 : vector<8x2x64xf32>
    %226 = arith.mulf %215, %225 : vector<8x2x64xf32>
    %227 = vector.shape_cast %226 : vector<8x2x64xf32> to vector<16x64xf32>
    %228 = arith.truncf %227 : vector<16x64xf32> to vector<16x64xbf16>
    %c0_135 = arith.constant 0 : index
    %c0_136 = arith.constant 0 : index
    %229 = vector.load %arg12[%c0_135, %c0_136] : memref<64x32xbf16, #tpu.memory_space<vmem>>, vector<64x32xbf16>
    %cst_137 = arith.constant dense<0.000000e+00> : vector<16x32xf32>
    %230 = tpu.matmul %228, %229, %cst_137 {dimension_numbers = #tpu.dot_dimension_numbers<[1], [0], [0], [1], [0, 0, 1, 1], [], []>} : vector<16x64xbf16>, vector<64x32xbf16>, vector<16x32xf32> -> vector<16x32xf32>
    %c0_138 = arith.constant 0 : index
    %c0_139 = arith.constant 0 : index
    %c0_140 = arith.constant 0 : index
    %231 = vector.load %arg2[%c0_138, %c0_139, %c0_140] : memref<8x2x32xf32, #tpu.memory_space<vmem>>, vector<8x2x32xf32>
    %232 = vector.shape_cast %230 : vector<16x32xf32> to vector<8x2x32xf32>
    %233 = arith.addf %231, %232 : vector<8x2x32xf32>
    %c0_141 = arith.constant 0 : index
    %c0_142 = arith.constant 0 : index
    %c0_143 = arith.constant 0 : index
    %234 = vector.load %arg13[%c0_141, %c0_142, %c0_143] : memref<8x2x32xf32, #tpu.memory_space<vmem>>, vector<8x2x32xf32>
    tpu.vector_store %arg13[%c0_141, %c0_142, %c0_143], %233 {strides = array<i32>} : memref<8x2x32xf32, #tpu.memory_space<vmem>>, vector<8x2x32xf32>,
    return
  }
  func.func @transform_0(%arg0: i32, %arg1: i32) -> (i32, i32, i32) {
    %c0_i32 = arith.constant 0 : i32
    %c0_i32_0 = arith.constant 0 : i32
    return %arg1, %arg0, %c0_i32 : i32, i32, i32
  }
  func.func @transform_1(%arg0: i32, %arg1: i32) -> (i32, i32) {
    %c0_i32 = arith.constant 0 : i32
    %c0_i32_0 = arith.constant 0 : i32
    %c0_i32_1 = arith.constant 0 : i32
    return %c0_i32, %c0_i32_0 : i32, i32
  }
  func.func @transform_2(%arg0: i32, %arg1: i32) -> (i32, i32) {
    %c0_i32 = arith.constant 0 : i32
    %c0_i32_0 = arith.constant 0 : i32
    %c0_i32_1 = arith.constant 0 : i32
    return %c0_i32, %c0_i32_0 : i32, i32
  }
  func.func @transform_3(%arg0: i32, %arg1: i32) -> (i32, i32) {
    %c0_i32 = arith.constant 0 : i32
    %c0_i32_0 = arith.constant 0 : i32
    %c0_i32_1 = arith.constant 0 : i32
    return %c0_i32, %c0_i32_0 : i32, i32
  }
  func.func @transform_4(%arg0: i32, %arg1: i32) -> (i32, i32) {
    %c0_i32 = arith.constant 0 : i32
    %c0_i32_0 = arith.constant 0 : i32
    %c0_i32_1 = arith.constant 0 : i32
    return %c0_i32, %c0_i32_0 : i32, i32
  }
  func.func @transform_5(%arg0: i32, %arg1: i32) -> (i32, i32) {
    %c0_i32 = arith.constant 0 : i32
    %c0_i32_0 = arith.constant 0 : i32
    %c0_i32_1 = arith.constant 0 : i32
    return %c0_i32, %c0_i32_0 : i32, i32
  }
  func.func @transform_6(%arg0: i32, %arg1: i32) -> (i32, i32) {
    %c0_i32 = arith.constant 0 : i32
    %c0_i32_0 = arith.constant 0 : i32
    %c0_i32_1 = arith.constant 0 : i32
    return %c0_i32, %c0_i32_0 : i32, i32
  }
  func.func @transform_7(%arg0: i32, %arg1: i32) -> (i32, i32) {
    %c0_i32 = arith.constant 0 : i32
    %c0_i32_0 = arith.constant 0 : i32
    %c0_i32_1 = arith.constant 0 : i32
    return %c0_i32, %c0_i32_0 : i32, i32
  }
  func.func @transform_8(%arg0: i32, %arg1: i32) -> (i32, i32) {
    %c0_i32 = arith.constant 0 : i32
    %c0_i32_0 = arith.constant 0 : i32
    %c0_i32_1 = arith.constant 0 : i32
    return %c0_i32, %c0_i32_0 : i32, i32
  }
  func.func @transform_9(%arg0: i32, %arg1: i32) -> (i32, i32) {
    %c0_i32 = arith.constant 0 : i32
    %c0_i32_0 = arith.constant 0 : i32
    %c0_i32_1 = arith.constant 0 : i32
    return %c0_i32, %c0_i32_0 : i32, i32
  }
  func.func @transform_10(%arg0: i32, %arg1: i32) -> (i32, i32) {
    %c0_i32 = arith.constant 0 : i32
    %c0_i32_0 = arith.constant 0 : i32
    %c0_i32_1 = arith.constant 0 : i32
    return %c0_i32, %c0_i32_0 : i32, i32
  }
  func.func @transform_11(%arg0: i32, %arg1: i32) -> (i32, i32, i32) {
    %c0_i32 = arith.constant 0 : i32
    %c0_i32_0 = arith.constant 0 : i32
    return %arg1, %arg0, %c0_i32 : i32, i32, i32
  }
}

</mosaic_0001>

<bundles_post_ra>
// kernel: _lambda_.5
= control target key start
LH: loop header
LB: loop body
LE: loop exit
PB: predicated region body
PF: predicated region fallthrough
CT: control target
= control target key end

     0   :  { %8 = vsyncpa [#allocation4], 0  ;;  %s1402_s0 = inlined_call_operand.hbm [shape: f32[16,2,32], index: 0, kind: input, shape index: {}]   ;;  %s1403_s1 = inlined_call_operand.hbm [shape: f32[1,32], index: 1, kind: input, shape index: {}]   ;;  %s1404_s2 = inlined_call_operand.hbm [shape: bf16[32,512], index: 2, kind: input, shape index: {}]   ;;  %s1405_s3 = inlined_call_operand.hbm [shape: f32[16,2,512], index: 3, kind: output, shape index: {}]  }
   0x1   :  { %10 = vsyncpa [#allocation4 + $0x1], 0 }
   0x2   :  { %11 = vsyncpa [#allocation7], 0 }
   0x3   :  { %12 = vsyncpa [#allocation5], 0 }
   0x4   :  { %14 = vsyncpa [#allocation5 + $0x1], 0  ;;  %s1099_s12 = smov 0   ;;  %s1101_s13 = smov 0  }
   0x5   :  { %s1103_s14 = smov 0   ;;  %s1105_s15 = smov 0  }
   0x6   :  { %s1107_s16 = smov 0   ;;  %s1109_s17 = smov 0  }
   0x7 LB: > { %s740_s18 = sadd.s32 4294967295, %s1065_s17   ;;  %s741_s19 = sadd.s32 4294967294, %s1065_s17   ;;  %s1065_s17 = sphi %s1109_s17, %s20_s17   ;;  %s1061_s16 = sphi %s1107_s16, %s1432_s16   ;;  %s1057_s15 = sphi %s1105_s15, %s1431_s15   ;;  %s1053_s14 = sphi %s1103_s14, %s1430_s14   ;;  %s1049_s13 = sphi %s1101_s13, %s1429_s13   ;;  %s1045_s12 = sphi %s1099_s12, %s1428_s12  }
   0x8   : > { %s39_s20 = sadd.s32 1, %s1053_s14  ;;  %p46_p0 = scmp.ne.s32.totalorder %s1053_s14, %s1049_s13 }
   0x9   : > { %p47_p1 = scmp.eq.s32.totalorder %s1065_s17, 0  ;;  %p52_p2 = scmp.ne.s32.totalorder %s1049_s13, %s1045_s12 }
   0xa   : > { %p1137_p3 = scmp.eq.s32.totalorder %s740_s18, 0  ;;  %p125_p4 = scmp.eq.s32.totalorder %s740_s18, 1 }
   0xb   : > { %p1141_p5 = por %p47_p1, %p46_p0  ;;  %p131_p6 = scmp.eq.s32.totalorder %s741_s19, 1 }
   0xc   : > { %s1412_s21 = scalar_select %p1137_p3, 1, 0 }
   0xd   : > { %p1147_p7 = por %p1137_p3, %p52_p2  ;;  %p1151_p8 = por %p125_p4, %p46_p0 }
   0xe   : > { %p1155_p9 = por %p131_p6, %p52_p2  ;;  %p742_p10 = scmp.ge.s32.totalorder %s1065_s17, 1 }
   0xf   : > { %s1414_s23 = scalar_select %p1147_p7, 1, 0 }
  0x10   : > { %s1415_s24 = scalar_select %p1151_p8, 1, 0 }
  0x11   : > { %s1416_s25 = scalar_select %p1155_p9, 1, 0 }
  0x12   : > { %p138_p11 = scmp.lt.s32.totalorder %s1065_s17, 3  ;;  %s1067_s27 = smov [#allocation6]  }
  0x13   : > { %s151_s28 = sshll.u32 %s1067_s27, 4  ;;  %p803_p1 = scmp.lt.s32.totalorder %s1065_s17, 2  ;;  %s152_s28 = int_to_ptr.vmem [resolvable:$true] %s151_s28 }
  0x14   : > { %p1162_p13 = pnand %p742_p10, %p138_p11  ;;  %s1068_s30 = smov [#allocation8]  }
  0x15   : > { %p1171_p4 = pnand %p803_p1, %p1141_p5  ;;  %s164_s4 = sshll.u32 %s1068_s30, 4  ;;  %s1181_s4 = int_to_ptr.vmem [resolvable:$true] %s164_s4 }
  0x16   : > { %s1417_s26 = scalar_select %p1162_p13, 1, 0 }
  0x17   : > { %p786_p0 = pneg %p1162_p13  ;;  %s893_s8 = scalar_lea.hbm %s1403_s1, 16 }
  0x18   : > { %s1418_s29 = scalar_select %p1171_p4, 1, 0 }
  0x19   : > { %p1177_p2 = pnand %p786_p0, %p1137_p3  ;;  %p894_p5 = scmp.ne.s32.totalorder %s1403_s1, %s893_s8 }
  0x1a   : > { %p900_p1 = scmp.lt.u32.totalorder %s893_s8, %s1403_s1 }
  0x1b   : > { %p895_p6 = pneg %p1177_p2 }
  0x1d   : > { %p896_p10 = pnand %p895_p6, %p894_p5 }
  0x1f   : > { %p897_p11 = pneg %p896_p10 }
  0x21   : > { %p902_p0 = pnand %p900_p1, %p897_p11 }
  0x23   : > { %905 = shalt.err (!%p902_p0)
}
  0x24   : > { %s906_s19 = scalar_lea.vmem %s152_s28, 16  ;;  %s913_s22 = scalar_lea.vmem %s152_s28, 32 }
  0x25   : > { %p907_p12 = scmp.ne.s32.totalorder %s152_s28, %s906_s19  ;;  %p914_p3 = scmp.lt.s32.totalorder %s152_s28, %s152_s28 }
  0x26   : > { %p915_p7 = scmp.lt.s32.totalorder %s913_s22, %s906_s19 }
  0x27   : > { %p909_p9 = pnand %p907_p12, %p895_p6 }
  0x28   : > { %p916_p13 = por %p915_p7, %p914_p3 }
  0x29   : > { %p910_p8 = pneg %p909_p9 }
  0x2b   : > { %p917_p4 = pnand %p916_p13, %p910_p8 }
  0x2d   : > { %920 = shalt.err (!%p917_p4)
}
  0x2e   : > { %789 = dma.hbm_to_vmem [thread:$0]  (!%p1177_p2), %s1403_s1, 16, %s152_s28, [#allocation7]  }
  0x2f   : > { %s921_s8 = scalar_lea.hbm %s1404_s2, 1024 }
  0x30   : > { %p922_p9 = scmp.ne.s32.totalorder %s1404_s2, %s921_s8  ;;  %p928_p8 = scmp.lt.u32.totalorder %s921_s8, %s1404_s2 }
  0x32   : > { %p924_p3 = pnand %p922_p9, %p895_p6 }
  0x34   : > { %p925_p7 = pneg %p924_p3 }
  0x36   : > { %p930_p12 = pnand %p928_p8, %p925_p7 }
  0x38   : > { %933 = shalt.err (!%p930_p12)
}
  0x39   : > { %s934_s28 = scalar_lea.vmem %s1181_s4, 1024  ;;  %p942_p10 = scmp.lt.s32.totalorder %s1181_s4, %s1181_s4 }
  0x3a   : > { %p935_p13 = scmp.ne.s32.totalorder %s1181_s4, %s934_s28  ;;  %p943_p11 = scmp.lt.s32.totalorder %s934_s28, %s934_s28 }
  0x3c   : > { %p937_p4 = pnand %p935_p13, %p895_p6  ;;  %p944_p1 = por %p943_p11, %p942_p10 }
  0x3e   : > { %p938_p5 = pneg %p937_p4 }
  0x40   : > { %p945_p0 = pnand %p944_p1, %p938_p5 }
  0x42   : > { %948 = shalt.err (!%p945_p0)
}
  0x43   : > { %s1069_s19 = smov 256   ;;  %s1070_s22 = smov 16  }
  0x44   : > { %792 = dma.hbm_to_vmem [thread:$0]  (!%p1177_p2), %s1404_s2, 1024, %s1181_s4, [#allocation7], %s1069_s19, %s1069_s19, %s1070_s22  }
  0x45   : > { %s178_s6 = sand.u32 1, %s1053_s14   ;;  %s32_s7 = sadd.s32 1, %s1061_s16 }
  0x46   : > { %s746_s8 = sshll.u32 %s178_s6, 4  ;;  %p34_p6 = scmp.ge.s32.totalorder %s32_s7, 2 }
  0x47   : > { %s771_s9 = sshll.u32 %s1061_s16, 8  ;;  %s182_s10 = scalar_lea.vmem [#allocation3], %s746_s8 }
  0x48   : > { %s189_s11 = sshll.u32 %s182_s10, 4  ;;  %s1434_s7 = smov (%p34_p6, %s32_s7), 0  ;;  %s1240_s11 = int_to_ptr.vmem [resolvable:$true] %s189_s11 }
  0x49   : > { %s1238_s5 = scalar_lea.hbm %s1402_s0, %s771_s9  ;;  %s36_s4 = ssub.s32 %s1061_s16, %s1434_s7 }
  0x4a   : > { %p1244_p2 = scmp.eq.s32.totalorder %s36_s4, 0  ;;  %s1248_s22 = scalar_lea.sflag [#allocation4], %s178_s6 }
  0x4b   : > { %s949_s27 = scalar_lea.hbm %s1238_s5, 256  ;;  %p1421_p3 = scmp.ne.s32.totalorder %s1418_s29, 0 }
  0x4c   : > { %p950_p9 = scmp.ne.s32.totalorder %s1238_s5, %s949_s27  ;;  %s954_s9 = scalar_lea.hbm %s1402_s0, 512 }
  0x4d   : > { %p951_p7 = pneg %p1421_p3  ;;  %p955_p13 = scmp.lt.u32.totalorder %s1238_s5, %s1402_s0 }
  0x4e   : > { %p956_p4 = scmp.lt.u32.totalorder %s954_s9, %s949_s27  ;;  %p958_p10 = scmp.lt.u32.totalorder %s949_s27, %s1238_s5 }
  0x4f   : > { %p952_p8 = pnand %p951_p7, %p950_p9 }
  0x50   : > { %p957_p5 = por %p956_p4, %p955_p13 }
  0x51   : > { %p953_p12 = pneg %p952_p8 }
  0x52   : > { %p959_p11 = por %p958_p10, %p957_p5 }
  0x54   : > { %p960_p1 = pnand %p959_p11, %p953_p12 }
  0x56   : > { %963 = shalt.err (!%p960_p1)
}
  0x57   : > { %s964_s6 = scalar_lea.vmem %s1240_s11, 256  ;;  %s1071_s28 = smov [#allocation3]  }
  0x58   : > { %p965_p0 = scmp.ne.s32.totalorder %s1240_s11, %s964_s6  ;;  %s969_s4 = sshll.u32 %s1071_s28, 4  ;;  %s970_s4 = int_to_ptr.vmem [resolvable:$false] %s969_s4 }
  0x59   : > { %s971_s30 = scalar_lea.vmem %s970_s4, 512  ;;  %p972_p8 = scmp.lt.s32.totalorder %s1240_s11, %s970_s4 }
  0x5a   : > { %p967_p6 = pnand %p965_p0, %p951_p7  ;;  %p973_p13 = scmp.lt.s32.totalorder %s971_s30, %s964_s6 }
  0x5c   : > { %p968_p9 = pneg %p967_p6  ;;  %p974_p4 = por %p973_p13, %p972_p8 }
  0x5e   : > { %p975_p5 = pnand %p974_p4, %p968_p9 }
  0x60   : > { %978 = shalt.err (!%p975_p5)
}
  0x61   : > { %s1072_s27 = smov 32   ;;  %s1073_s8 = smov 2  }
  0x62   : > { %796 = dma.hbm_to_vmem [thread:$0]  (!%p1421_p3), %s1238_s5, 256, %s1240_s11, %s1248_s22, %s1072_s27, %s1072_s27, %s1073_s8  }
  0x63   : > { %s1281_s9 = scalar_select %p1244_p2, %s1053_s14, %s39_s20  }
  0x64   : > { %p1422_p7 = scmp.ne.s32.totalorder %s1417_s26, 0 }
  0x65   : > { %s1286_s10 = sand.u32 (!%p1422_p7), 1, %s1049_s13   ;;  %p1423_p12 = scmp.ne.s32.totalorder (!%p1422_p7), %s1414_s23, 0 }
  0x66   : > { %201 = sbr.rel (%p1422_p7) target bundleno = 545 (0x221), region = 32  ;;  %s750_s18 = sshll.u32 (!%p1422_p7), %s1286_s10, 4 }
  0x67   : > { %s204_s6 = scalar_lea.sflag (!%p1422_p7), [#allocation4], %s1286_s10  ;;  %s207_s28 = scalar_lea.vmem (!%p1422_p7), [#allocation3], %s750_s18 }
  0x6d   : > { %1032 = dma.done.wait (%p1423_p12), %s204_s6, 256  }
  0x6e   : > { %1034 = vsyncadd (%p1423_p12), %s204_s6, 4294967040  ;;  %p1424_p2 = scmp.ne.s32.totalorder %s1412_s21, 0 }
  0x70   : > { %1036 = dma.done.wait (%p1424_p2), [#allocation7], 1040  }
  0x71   : > { %1038 = vsyncadd (%p1424_p2), [#allocation7], 4294966256  ;;  %vm264_vm0 = vcmask 254976   ;;  %v1298_v0 = vld [vmem:[%s207_s28 + $0x4] sm:$0x3]  ;;  %v1074_v32 = vmov 0  }
  0x72   : > { %v1300_v1 = vld [vmem:[%s207_s28] sm:$0x3]  ;;  %v1302_v2 = vld [vmem:[%s207_s28 + $0x6] sm:$0x3]  ;;  %v258_v3 = vmul.f32 %v1298_v0, %v1298_v0  ;;  %v1310_v6 = vld [vmem:[%s207_s28 + $0x2] sm:$0x3]  ;;  %468 = vmatprep.mubr.bf16.mxu0 %v1074_v32  ;;  %511 = vmatprep.mubr.bf16.mxu1 %v1074_v32 }
  0x73   : > { %v256_v4 = vmul.f32 %v1300_v1, %v1300_v1  ;;  %v259_v5 = vmul.f32 %v1302_v2, %v1302_v2  ;;  %v257_v7 = vmul.f32 %v1310_v6, %v1310_v6  ;;  %v1314_v8 = vld [vmem:[%s207_s28 + $0xa] sm:$0x3]  ;;  %v1316_v9 = vld [vmem:[%s207_s28 + $0x8] sm:$0x3]  ;;  %v1326_v16 = vld [vmem:[%s207_s28 + $0xe] sm:$0x3] }
  0x74   : > { %v271_v10 = vsel %vm264_vm0, %v258_v3, 0.0  ;;  %v261_v14 = vmul.f32 %v1314_v8, %v1314_v8  ;;  %v260_v15 = vmul.f32 %v1316_v9, %v1316_v9  ;;  %v1328_v17 = vld [vmem:[%s207_s28 + $0xc] sm:$0x3]  ;;  %v263_v20 = vmul.f32 %v1326_v16, %v1326_v16  ;;  %v865_v24 = vld [vmem:[#allocation8 + $0x4] ss:$16 sps:$4 sm:$0xff]   ;;  %s753_s20 = sshll.u32 %s1286_s10, 6 }
  0x75   : > { %v265_v11 = vsel %vm264_vm0, %v256_v4, 0.0  ;;  %272 = vadd.xlane.f32.xlu1 %v271_v10  ;;  %v274_v12 = vsel %vm264_vm0, %v259_v5, 0.0  ;;  %v268_v13 = vsel %vm264_vm0, %v257_v7, 0.0  ;;  %v262_v21 = vmul.f32 %v1328_v17, %v1328_v17  ;;  %v867_v25 = vld [vmem:[#allocation8 + $0xc] ss:$16 sps:$4 sm:$0xff]   ;;  %436 = vmatprep.subr.bf16.mxu0 %v865_v24  ;;  %s773_s21 = sshll.u32 %s1057_s15, 10 }
  0x76   : > { %266 = vadd.xlane.f32.xlu0 %v265_v11  ;;  %v280_v18 = vsel %vm264_vm0, %v261_v14, 0.0  ;;  %v277_v19 = vsel %vm264_vm0, %v260_v15, 0.0  ;;  %v286_v22 = vsel %vm264_vm0, %v263_v20, 0.0  ;;  %v869_v26 = vld [vmem:[#allocation8] ss:$16 sps:$4 sm:$0xff]   ;;  %479 = vmatprep.subr.bf16.mxu1 %v867_v25  ;;  %v349_v4 = vlaneseq  ;;  %s237_s23 = scalar_lea.vmem [#allocation9], %s753_s20  ;;  %s1351_s15 = scalar_lea.hbm %s1405_s3, %s773_s21 }
  0x77   : > { %v283_v23 = vsel %vm264_vm0, %v262_v21, 0.0  ;;  %v870_v27 = vld [vmem:[#allocation8 + $0x8] ss:$16 sps:$4 sm:$0xff]   ;;  %v871_v28 = vld [vmem:[#allocation8 + $0x24] ss:$16 sps:$4 sm:$0xff]   ;;  %437 = vmatpush1.bf16.msra.mxu0 %v869_v26  ;;  %vm381_vm1 = vcmask 261120  }
  0x78   : > { %v873_v29 = vld [vmem:[#allocation8 + $0x2c] ss:$16 sps:$4 sm:$0xff]   ;;  %480 = vmatpush1.bf16.msra.mxu1 %v870_v27  ;;  %v875_v30 = vld [vmem:[#allocation8 + $0x20] ss:$16 sps:$4 sm:$0xff]   ;;  %v876_v31 = vld [vmem:[#allocation8 + $0x28] ss:$16 sps:$4 sm:$0xff]   ;;  %438 = vmatprep.subr.bf16.mxu0 %v871_v28 }
  0x79   : > { %275 = vadd.xlane.f32.xlu1 %v274_v12  ;;  %481 = vmatprep.subr.bf16.mxu1 %v873_v29  ;;  %v1075_v61 = vmov 1983009808   ;;  %v754_v12 = vld [vmem:[#allocation6] ss:$0 sm:$0xff]  ;;  %v350_v20 = vshrl.u32 %v349_v4, 7  ;;  %s635_s26 = sshll.u32 %s237_s23, 4  ;;  %s1353_s26 = int_to_ptr.vmem [resolvable:$true] %s635_s26 }
  0x7a   : > { %269 = vadd.xlane.f32.xlu0 %v268_v13  ;;  %v347_v62 = vunpack.c.l.s4 %v1075_v61  ;;  %s619_s5 = scalar_lea.sflag [#allocation5], %s1286_s10  ;;  %s979_s19 = scalar_lea.vmem %s1353_s26, 1024 }
  0x7b   : > { %439 = vmatpush1.bf16.msra.mxu0 %v875_v30  ;;  %p980_p3 = scmp.ne.s32.totalorder %s1353_s26, %s979_s19  ;;  %p1425_p10 = scmp.ne.s32.totalorder %s1415_s24, 0 }
  0x7c   : > { %482 = vmatpush1.bf16.msra.mxu1 %v876_v31  ;;  %v348_v14 = vunpack.c.0.s8 %v347_v62  ;;  %s1076_s22 = smov [#allocation9]  }
  0x7d   : > { %281 = vadd.xlane.f32.xlu1 %v280_v18  ;;  %p981_p11 = pnand %p980_p3, %p1425_p10  ;;  %s983_s4 = sshll.u32 %s1076_s22, 4  ;;  %s984_s4 = int_to_ptr.vmem [resolvable:$false] %s983_s4 }
  0x7e   : > { %278 = vadd.xlane.f32.xlu0 %v277_v19  ;;  %v351_v27 = vsub.s32 %v348_v14, %v350_v20  ;;  %s985_s30 = scalar_lea.vmem %s984_s4, 2048  ;;  %p986_p0 = scmp.lt.s32.totalorder %s1353_s26, %s984_s4 }
  0x7f   : > { %p982_p1 = pneg %p981_p11  ;;  %p987_p6 = scmp.lt.s32.totalorder %s985_s30, %s979_s19 }
  0x81   : > { %287 = vadd.xlane.f32.xlu1 %v286_v22  ;;  %p988_p9 = por %p987_p6, %p986_p0 }
  0x82   : > { %284 = vadd.xlane.f32.xlu0 %v283_v23 }
  0x83   : > { %p989_p8 = pnand %p988_p9, %p982_p1 }
 0x102   : > { %v273_v33 = vpop.xlane.xlu1 %272 }
 0x103   : > { %v267_v34 = vpop.xlane.xlu0 %266  ;;  %v292_v35 = vmul.f32 0.03125, %v273_v33 }
 0x104   : > { %v290_v36 = vmul.f32 0.03125, %v267_v34 }
 0x105   : > { %v300_v37 = vadd.f32 1e-05, %v292_v35 }
 0x106   : > { %v298_v38 = vadd.f32 1e-05, %v290_v36  ;;  %v276_v39 = vpop.xlane.xlu1 %275 }
 0x107   : > { %v270_v40 = vpop.xlane.xlu0 %269  ;;  %v293_v41 = vmul.f32 0.03125, %v276_v39  ;;  %877 = vrsqrt.f32 %v300_v37 }
 0x108   : > { %v291_v42 = vmul.f32 0.03125, %v270_v40  ;;  %879 = vrsqrt.f32 %v298_v38 }
 0x109   : > { %v301_v43 = vadd.f32 1e-05, %v293_v41 }
 0x10a   : > { %v299_v44 = vadd.f32 1e-05, %v291_v42  ;;  %v282_v45 = vpop.xlane.xlu1 %281 }
 0x10b   : > { %v279_v46 = vpop.xlane.xlu0 %278  ;;  %881 = vrsqrt.f32 %v301_v43  ;;  %v295_v47 = vmul.f32 0.03125, %v282_v45 }
 0x10c   : > { %v294_v48 = vmul.f32 0.03125, %v279_v46  ;;  %883 = vrsqrt.f32 %v299_v44 }
 0x10d   : > { %v303_v49 = vadd.f32 1e-05, %v295_v47 }
 0x10e   : > { %v302_v50 = vadd.f32 1e-05, %v294_v48  ;;  %v288_v51 = vpop.xlane.xlu1 %287 }
 0x10f   : > { %v285_v52 = vpop.xlane.xlu0 %284  ;;  %885 = vrsqrt.f32 %v303_v49  ;;  %v297_v53 = vmul.f32 0.03125, %v288_v51 }
 0x110   : > { %v296_v54 = vmul.f32 0.03125, %v285_v52  ;;  %887 = vrsqrt.f32 %v302_v50 }
 0x111   : > { %v305_v55 = vadd.f32 1e-05, %v297_v53  ;;  %v878_v57 = vpop.eup %877 }
 0x112   : > { %v304_v56 = vadd.f32 1e-05, %v296_v54  ;;  %v880_v58 = vpop.eup %879  ;;  %v316_v7 = vmul.f32 %v878_v57, %v1298_v0 }
 0x113   : > { %889 = vrsqrt.f32 %v305_v55  ;;  %v314_v10 = vmul.f32 %v880_v58, %v1300_v1 }
 0x114   : > { %891 = vrsqrt.f32 %v304_v56 }
 0x115   : > { %v882_v59 = vpop.eup %881  ;;  %v328_v22 = vmul.f32 %v754_v12, %v314_v10 }
 0x116   : > { %v884_v60 = vpop.eup %883  ;;  %v317_v63 = vmul.f32 %v882_v59, %v1302_v2  ;;  %v330_v2 = vmul.f32 %v754_v12, %v316_v7 }
 0x117   : > { %v315_v3 = vmul.f32 %v884_v60, %v1310_v6 }
 0x118   : > { %v331_v15 = vmul.f32 %v754_v12, %v317_v63 }
 0x119   : > { %v886_v5 = vpop.eup %885  ;;  %v329_v18 = vmul.f32 %v754_v12, %v315_v3 }
 0x11a   : > { %v888_v11 = vpop.eup %887  ;;  %v319_v13 = vmul.f32 %v886_v5, %v1314_v8  ;;  %v345_v26 = vcombine.low %v330_v2, %v331_v15 }
 0x11b   : > { %v318_v19 = vmul.f32 %v888_v11, %v1316_v9  ;;  %v344_v25 = vcombine.low %v328_v22, %v329_v18 }
 0x11c   : > { %v333_v6 = vmul.f32 %v754_v12, %v319_v13  ;;  %v359_v31 = vrot.slane %v345_v26, %v351_v27 }
 0x11d   : > { %v890_v21 = vpop.eup %889  ;;  %v332_v23 = vmul.f32 %v754_v12, %v318_v19  ;;  %v352_v9 = vrot.slane %v344_v25, %v351_v27 }
 0x11e   : > { %v892_v24 = vpop.eup %891  ;;  %v321_v0 = vmul.f32 %v890_v21, %v1326_v16 }
 0x11f   : > { %v320_v1 = vmul.f32 %v892_v24, %v1328_v17  ;;  %v361_v29 = vcombine.low %v332_v23, %v333_v6  ;;  %v360_v34 = vcombine.low %v352_v9, %v359_v31 }
 0x120   : > { %v335_v8 = vmul.f32 %v754_v12, %v321_v0 }
 0x121   : > { %v334_v28 = vmul.f32 %v754_v12, %v320_v1  ;;  %v369_v32 = vrot.slane %v361_v29, %v351_v27 }
 0x123   : > { %v362_v30 = vcombine.low %v334_v28, %v335_v8 }
 0x125   : > { %v376_v33 = vrot.slane %v362_v30, %v351_v27 }
 0x127   : > { %v377_v35 = vcombine.low %v369_v32, %v376_v33 }
 0x129   : > { %v380_v36 = vpack.c.bf16 %v377_v35, %v360_v34 }
 0x12b   : > { %382 = vst.msk [vmem:[#allocation2] sm:$0xff] %vm381_vm1, %v380_v36 }
 0x132   : > { %v383_v16 = vld [vmem:[#allocation2] sm:$0xff] }
 0x133   : > { %763 = vmatmul.mubr.msk.bf16.vlgmr.msra.gmra.mrb[0].mxu0 %vm381_vm1, %v383_v16  ;;  %764 = vmatmul.mubr.msk.bf16.vlgmr.msra.gmra.mrb[0].mxu1 %vm381_vm1, %v383_v16 }
 0x206   : > { %v470_v17 = vpop.f32.mrb[0].mxu0  ;;  %v513_v37 = vpop.f32.mrb[0].mxu1 }
 0x207   : > { %v472_v38 = vpop.f32.mrb[1].mxu0  ;;  %v515_v39 = vpop.f32.mrb[1].mxu1 }
 0x208   : > { %v530_v40 = vcombine.low %v470_v17, %v472_v38  ;;  %v531_v41 = vcombine.high %v470_v17, %v472_v38  ;;  %v532_v42 = vcombine.low %v513_v37, %v515_v39  ;;  %v533_v43 = vcombine.high %v513_v37, %v515_v39  ;;  %v474_v44 = vpop.f32.mrb[2].mxu0  ;;  %v517_v45 = vpop.f32.mrb[2].mxu1 }
 0x209   : > { %v476_v46 = vpop.f32.mrb[3].mxu0  ;;  %v519_v47 = vpop.f32.mrb[3].mxu1 }
 0x20a   : > { %v540_v48 = vrot.slane %v530_v40, %v351_v27  ;;  %v547_v49 = vrot.slane %v531_v41, %v351_v27  ;;  %v554_v50 = vrot.slane %v532_v42, %v351_v27  ;;  %v561_v51 = vrot.slane %v533_v43, %v351_v27 }
 0x20b   : > { %v566_v52 = vcombine.low %v474_v44, %v476_v46  ;;  %v567_v53 = vcombine.high %v474_v44, %v476_v46  ;;  %v568_v54 = vcombine.low %v517_v45, %v519_v47  ;;  %v569_v55 = vcombine.high %v517_v45, %v519_v47 }
 0x20c   : > { %v562_v56 = vcombine.low %v540_v48, %v554_v50  ;;  %v563_v57 = vcombine.high %v540_v48, %v554_v50  ;;  %v564_v58 = vcombine.low %v547_v49, %v561_v51  ;;  %v565_v59 = vcombine.high %v547_v49, %v561_v51 }
 0x20d   : > { %v576_v60 = vrot.slane %v566_v52, %v351_v27  ;;  %v583_v61 = vrot.slane %v567_v53, %v351_v27  ;;  %v590_v62 = vrot.slane %v568_v54, %v351_v27  ;;  %v597_v63 = vrot.slane %v569_v55, %v351_v27 }
 0x20e   : > { %610 = vst [vmem:[%s237_s23] sm:$0xff] %v562_v56  ;;  %611 = vst [vmem:[%s237_s23 + $0x8] sm:$0xff] %v563_v57 }
 0x20f   : > { %612 = vst [vmem:[%s237_s23 + $0x10] sm:$0xff] %v564_v58  ;;  %613 = vst [vmem:[%s237_s23 + $0x18] sm:$0xff] %v565_v59  ;;  %v598_v3 = vcombine.low %v576_v60, %v590_v62  ;;  %v599_v4 = vcombine.high %v576_v60, %v590_v62  ;;  %v600_v5 = vcombine.low %v583_v61, %v597_v63 }
 0x210   : > { %v601_v7 = vcombine.high %v583_v61, %v597_v63 }
 0x211   : > { %614 = vst [vmem:[%s237_s23 + $0x20] sm:$0xff] %v598_v3  ;;  %615 = vst [vmem:[%s237_s23 + $0x28] sm:$0xff] %v599_v4 }
 0x212   : > { %616 = vst [vmem:[%s237_s23 + $0x30] sm:$0xff] %v600_v5  ;;  %617 = vst [vmem:[%s237_s23 + $0x38] sm:$0xff] %v601_v7 }
 0x213   : > { %992 = shalt.err (!%p989_p8)
}
 0x214   : > { %s993_s27 = scalar_lea.hbm %s1351_s15, 1024  ;;  %s997_s6 = scalar_lea.hbm %s1405_s3, 2048 }
 0x215   : > { %p994_p13 = scmp.ne.s32.totalorder %s1351_s15, %s993_s27  ;;  %p998_p7 = scmp.lt.u32.totalorder %s1351_s15, %s1405_s3 }
 0x216   : > { %p999_p12 = scmp.lt.u32.totalorder %s997_s6, %s993_s27  ;;  %p1001_p3 = scmp.lt.u32.totalorder %s993_s27, %s1351_s15 }
 0x217   : > { %p995_p4 = pnand %p994_p13, %p1425_p10 }
 0x218   : > { %p1000_p2 = por %p999_p12, %p998_p7 }
 0x219   : > { %p996_p5 = pneg %p995_p4 }
 0x21a   : > { %p1002_p11 = por %p1001_p3, %p1000_p2 }
 0x21c   : > { %p1003_p1 = pnand %p1002_p11, %p996_p5 }
 0x21e   : > { %1006 = shalt.err (!%p1003_p1)
}
 0x21f   : > { %s1077_s21 = smov 128   ;;  %s1078_s23 = smov 8  }
 0x220   : > { %784 = dma.vmem_to_hbm [thread:$0]  (%p1425_p10), %s1353_s26, 1024, %s1351_s15, %s619_s5, %s1077_s21, %s1077_s21, %s1078_s23  }
 0x221 PF: > { %s650_s29 = sand.u32 1, %s1045_s12   ;;  %p1426_p0 = scmp.ne.s32.totalorder %s1416_s25, 0 }
 0x222   : > { %p1427_p6 = scmp.ge.s32.totalorder %s1065_s17, 2  ;;  %s651_s11 = scalar_lea.sflag [#allocation5], %s650_s29 }
 0x224   : > { %p798_p9 = pnand %p1427_p6, %p1426_p0 }
 0x226   : > { %1040 = dma.done.wait (!%p798_p9), %s651_s11, 1024  }
 0x227   : > { %1042 = vsyncadd (!%p798_p9), %s651_s11, 4294966272  ;;  %s20_s17 = sadd.s32 1, %s1065_s17   ;;  %s1428_s12 = smov %s1049_s13 }
 0x228   : > { %p17_p8 = scmp.ge.s32.totalorder %s20_s17, 4   ;;  %s1429_s13 = smov %s1053_s14 }
 0x229   : > { %s1430_s14 = smov %s1281_s9  ;;  %s1431_s15 = smov %s1061_s16 }
 0x22a   : > { %s1432_s16 = smov %s1434_s7  ;;  %19 = sbr.rel (!%p17_p8) target bundleno = 7 (0x7), region = 90 }
 0x231   :  { %656 = vsyncpa [#allocation4], 1 }
 0x232   :  { %658 = vsyncpa [#allocation4 + $0x1], 1 }
 0x233   :  { %659 = vsyncpa [#allocation7], 1 }
 0x234   :  { %660 = vsyncpa [#allocation5], 1 }
 0x235   :  { %662 = vsyncpa [#allocation5 + $0x1], 1 }

// kernel: _lambda_.3
= control target key start
LH: loop header
LB: loop body
LE: loop exit
PB: predicated region body
PF: predicated region fallthrough
CT: control target
= control target key end

     0   :  { %s5818_s0 = inlined_call_operand.hbm [shape: f32[16,2,32], index: 0, kind: input, shape index: {}]   ;;  %s5819_s1 = inlined_call_operand.hbm [shape: f32[1,32], index: 1, kind: input, shape index: {}]   ;;  %s5820_s2 = inlined_call_operand.hbm [shape: bf16[32,128], index: 2, kind: input, shape index: {}]   ;;  %s5821_s3 = inlined_call_operand.hbm [shape: f32[4,64], index: 3, kind: input, shape index: {}]   ;;  %s5822_s4 = inlined_call_operand.hbm [shape: f32[1,64], index: 4, kind: input, shape index: {}]   ;;  %s5823_s5 = inlined_call_operand.hbm [shape: bf16[64,34], index: 5, kind: input, shape index: {}]   ;;  %s5824_s6 = inlined_call_operand.hbm [shape: bf16[2,64], index: 6, kind: input, shape index: {}]   ;;  %s5825_s7 = inlined_call_operand.hbm [shape: f32[1,64], index: 7, kind: input, shape index: {}]   ;;  %s5826_s8 = inlined_call_operand.hbm [shape: f32[16,64], index: 8, kind: input, shape index: {}]   ;;  %s5827_s9 = inlined_call_operand.hbm [shape: f32[1,64], index: 9, kind: input, shape index: {}]   ;;  %s5828_s10 = inlined_call_operand.hbm [shape: bf16[64,32], index: 10, kind: input, shape index: {}]   ;;  %s5829_s11 = inlined_call_operand.hbm [shape: f32[16,2,32], index: 11, kind: output, shape index: {}]  }
   0x1   :  { %5840 = sst [smem:[#allocation40_spill]] %s5818_s0 }
   0x2   :  { %5841 = sst [smem:[#allocation41_spill]] %s5819_s1 }
   0x3   :  { %5842 = sst [smem:[#allocation42_spill]] %s5821_s3 }
   0x4   :  { %5843 = sst [smem:[#allocation43_spill]] %s5829_s11 }
   0x5   :  { %16 = vsyncpa [#allocation12], 0 }
   0x6   :  { %18 = vsyncpa [#allocation12 + $0x1], 0 }
   0x7   :  { %19 = vsyncpa [#allocation15], 0 }
   0x8   :  { %20 = vsyncpa [#allocation18], 0 }
   0x9   :  { %21 = vsyncpa [#allocation21], 0 }
   0xa   :  { %22 = vsyncpa [#allocation24], 0 }
   0xb   :  { %23 = vsyncpa [#allocation27], 0 }
   0xc   :  { %24 = vsyncpa [#allocation13], 0 }
   0xd   :  { %26 = vsyncpa [#allocation13 + $0x1], 0  ;;  %s4488_s17 = smov 0   ;;  %s4490_s18 = smov 0  }
   0xe   :  { %s4492_s19 = smov 0   ;;  %s4494_s20 = smov 0  }
   0xf   :  { %s4496_s21 = smov 0   ;;  %s4498_s22 = smov 0  }
  0x10 LB: > { %5844 = sst [smem:[#allocation37_spill]] %s4390_s20  ;;  %s5830_s23 = sadd.s32 4294967295, %s4398_s22   ;;  %s4398_s22 = sphi %s4498_s22, %s32_s22   ;;  %s4394_s21 = sphi %s4496_s21, %s5876_s21   ;;  %s4390_s20 = sphi %s4494_s20, %s5875_s20   ;;  %s4386_s19 = sphi %s4492_s19, %s5874_s19   ;;  %s4382_s18 = sphi %s4490_s18, %s5873_s18   ;;  %s4378_s17 = sphi %s4488_s17, %s5872_s17  }
  0x11   : > { %p3520_p0 = scmp.ge.s32.totalorder %s4398_s22, 1  ;;  %p4522_p1 = scmp.eq.s32.totalorder %s5830_s23, 0 }
  0x12   : > { %p315_p2 = scmp.lt.s32.totalorder %s4398_s22, 3  ;;  %s4400_s26 = smov [#allocation14]  }
  0x13   : > { %s5845_s24 = scalar_select %p4522_p1, 1, 0 }
  0x14   : > { %p4527_p3 = pnand %p3520_p0, %p315_p2  ;;  %s328_s27 = sshll.u32 %s4400_s26, 4  ;;  %s329_s27 = int_to_ptr.vmem [resolvable:$true] %s328_s27 }
  0x15   : > { %5846 = sst [smem:[#allocation38_spill]] %s5845_s24  ;;  %s4401_s28 = smov [#allocation17]  }
  0x16   : > { %s5847_s25 = scalar_select %p4527_p3, 1, 0 }
  0x17   : > { %p3687_p5 = pneg %p4527_p3  ;;  %s352_s29 = sshll.u32 %s4401_s28, 4  ;;  %s4540_s29 = int_to_ptr.vmem [resolvable:$true] %s352_s29 }
  0x18   : > { %5848 = sst [smem:[#allocation39_spill]] %s5847_s25  ;;  %s4402_s12 = smov [#allocation20]  }
  0x19   : > { %p4536_p6 = pnand %p3687_p5, %p4522_p1  ;;  %s4542_s13 = sshll.u32 %s4402_s12, 4  ;;  %s374_s13 = int_to_ptr.vmem [resolvable:$true] %s4542_s13 }
  0x1a   : > { %s5850_s1 = sld [smem:[#allocation41_spill]] }
  0x1b   : > { %p4552_p8 = pneg %p4536_p6 }
  0x20   : > { %s3986_s16 = scalar_lea.hbm %s5850_s1, 16 }
  0x21   : > { %p3987_p7 = scmp.ne.s32.totalorder %s5850_s1, %s3986_s16  ;;  %p3993_p11 = scmp.lt.u32.totalorder %s3986_s16, %s5850_s1 }
  0x23   : > { %p3989_p9 = pnand %p4552_p8, %p3987_p7 }
  0x25   : > { %p3990_p10 = pneg %p3989_p9 }
  0x27   : > { %p3995_p12 = pnand %p3993_p11, %p3990_p10 }
  0x29   : > { %3998 = shalt.err (!%p3995_p12)
}
  0x2a   : > { %s3999_s14 = scalar_lea.vmem %s329_s27, 16  ;;  %s4006_s23 = scalar_lea.vmem %s329_s27, 32 }
  0x2b   : > { %p4000_p13 = scmp.ne.s32.totalorder %s329_s27, %s3999_s14  ;;  %p4007_p5 = scmp.lt.s32.totalorder %s329_s27, %s329_s27 }
  0x2c   : > { %p4008_p4 = scmp.lt.s32.totalorder %s4006_s23, %s3999_s14 }
  0x2d   : > { %p4002_p0 = pnand %p4000_p13, %p4552_p8 }
  0x2e   : > { %p4009_p3 = por %p4008_p4, %p4007_p5 }
  0x2f   : > { %p4003_p2 = pneg %p4002_p0 }
  0x31   : > { %p4010_p1 = pnand %p4009_p3, %p4003_p2 }
  0x33   : > { %4013 = shalt.err (!%p4010_p1)
}
  0x34   : > { %3690 = dma.hbm_to_vmem [thread:$0]  (!%p4536_p6), %s5850_s1, 16, %s329_s27, [#allocation15]  }
  0x35   : > { %s5852_s3 = sld [smem:[#allocation42_spill]] }
  0x3b   : > { %s4014_s12 = scalar_lea.hbm %s5852_s3, 64 }
  0x3c   : > { %p4015_p7 = scmp.ne.s32.totalorder %s5852_s3, %s4014_s12  ;;  %p4021_p1 = scmp.lt.u32.totalorder %s4014_s12, %s5852_s3 }
  0x3e   : > { %p4017_p9 = pnand %p4015_p7, %p4552_p8 }
  0x40   : > { %p4018_p4 = pneg %p4017_p9 }
  0x42   : > { %p4023_p3 = pnand %p4021_p1, %p4018_p4 }
  0x44   : > { %4026 = shalt.err (!%p4023_p3)
}
  0x45   : > { %s4027_s27 = scalar_lea.vmem %s4540_s29, 64  ;;  %p4035_p13 = scmp.lt.s32.totalorder %s4540_s29, %s4540_s29 }
  0x46   : > { %p4028_p10 = scmp.ne.s32.totalorder %s4540_s29, %s4027_s27  ;;  %p4036_p0 = scmp.lt.s32.totalorder %s4027_s27, %s4027_s27 }
  0x48   : > { %p4030_p11 = pnand %p4028_p10, %p4552_p8  ;;  %p4037_p2 = por %p4036_p0, %p4035_p13 }
  0x4a   : > { %p4031_p12 = pneg %p4030_p11 }
  0x4c   : > { %p4038_p5 = pnand %p4037_p2, %p4031_p12 }
  0x4e   : > { %4041 = shalt.err (!%p4038_p5)
}
  0x4f   : > { %3696 = dma.hbm_to_vmem [thread:$0]  (!%p4536_p6), %s5852_s3, 64, %s4540_s29, [#allocation18]  }
  0x50   : > { %s4042_s11 = scalar_lea.hbm %s5823_s5, 512 }
  0x51   : > { %p4043_p7 = scmp.ne.s32.totalorder %s5823_s5, %s4042_s11  ;;  %p4049_p1 = scmp.lt.u32.totalorder %s4042_s11, %s5823_s5 }
  0x53   : > { %p4045_p9 = pnand %p4043_p7, %p4552_p8 }
  0x55   : > { %p4046_p4 = pneg %p4045_p9 }
  0x57   : > { %p4051_p3 = pnand %p4049_p1, %p4046_p4 }
  0x59   : > { %4054 = shalt.err (!%p4051_p3)
}
  0x5a   : > { %s4055_s27 = scalar_lea.vmem %s374_s13, 512  ;;  %p4063_p13 = scmp.lt.s32.totalorder %s374_s13, %s374_s13 }
  0x5b   : > { %p4056_p10 = scmp.ne.s32.totalorder %s374_s13, %s4055_s27  ;;  %p4064_p0 = scmp.lt.s32.totalorder %s4055_s27, %s4055_s27 }
  0x5d   : > { %p4058_p11 = pnand %p4056_p10, %p4552_p8  ;;  %p4065_p2 = por %p4064_p0, %p4063_p13 }
  0x5f   : > { %p4059_p12 = pneg %p4058_p11 }
  0x61   : > { %p4066_p5 = pnand %p4065_p2, %p4059_p12 }
  0x63   : > { %4069 = shalt.err (!%p4066_p5)
}
  0x64   : > { %s4403_s29 = smov 64   ;;  %s4404_s20 = smov 4  }
  0x65   : > { %3702 = dma.hbm_to_vmem [thread:$0]  (!%p4536_p6), %s5823_s5, 512, %s374_s13, [#allocation21], %s4403_s29, %s4403_s29, %s4404_s20  }
  0x66   : > { %s4405_s26 = smov [#allocation23]   ;;  %s4406_s16 = smov [#allocation26]  }
  0x67   : > { %s398_s11 = sshll.u32 %s4405_s26, 4  ;;  %s422_s12 = sshll.u32 %s4406_s16, 4  ;;  %s399_s11 = int_to_ptr.vmem [resolvable:$true] %s398_s11  ;;  %s423_s12 = int_to_ptr.vmem [resolvable:$true] %s422_s12 }
  0x68   : > { %s4070_s27 = scalar_lea.hbm %s5825_s7, 16 }
  0x69   : > { %p4071_p7 = scmp.ne.s32.totalorder %s5825_s7, %s4070_s27  ;;  %p4077_p1 = scmp.lt.u32.totalorder %s4070_s27, %s5825_s7 }
  0x6b   : > { %p4073_p9 = pnand %p4071_p7, %p4552_p8 }
  0x6d   : > { %p4074_p4 = pneg %p4073_p9 }
  0x6f   : > { %p4079_p3 = pnand %p4077_p1, %p4074_p4 }
  0x71   : > { %4082 = shalt.err (!%p4079_p3)
}
  0x72   : > { %s4083_s13 = scalar_lea.vmem %s399_s11, 16  ;;  %s4090_s25 = scalar_lea.vmem %s399_s11, 32 }
  0x73   : > { %p4084_p10 = scmp.ne.s32.totalorder %s399_s11, %s4083_s13  ;;  %p4091_p13 = scmp.lt.s32.totalorder %s399_s11, %s399_s11 }
  0x74   : > { %p4092_p0 = scmp.lt.s32.totalorder %s4090_s25, %s4083_s13 }
  0x75   : > { %p4086_p11 = pnand %p4084_p10, %p4552_p8 }
  0x76   : > { %p4093_p2 = por %p4092_p0, %p4091_p13 }
  0x77   : > { %p4087_p12 = pneg %p4086_p11 }
  0x79   : > { %p4094_p5 = pnand %p4093_p2, %p4087_p12 }
  0x7b   : > { %4097 = shalt.err (!%p4094_p5)
}
  0x7c   : > { %3708 = dma.hbm_to_vmem [thread:$0]  (!%p4536_p6), %s5825_s7, 16, %s399_s11, [#allocation24]  }
  0x7d   : > { %s4098_s15 = scalar_lea.hbm %s5827_s9, 16 }
  0x7e   : > { %p4099_p7 = scmp.ne.s32.totalorder %s5827_s9, %s4098_s15  ;;  %p4105_p1 = scmp.lt.u32.totalorder %s4098_s15, %s5827_s9 }
  0x80   : > { %p4101_p9 = pnand %p4099_p7, %p4552_p8 }
  0x82   : > { %p4102_p4 = pneg %p4101_p9 }
  0x84   : > { %p4107_p3 = pnand %p4105_p1, %p4102_p4 }
  0x86   : > { %4110 = shalt.err (!%p4107_p3)
}
  0x87   : > { %s4111_s27 = scalar_lea.vmem %s423_s12, 16  ;;  %s4118_s11 = scalar_lea.vmem %s423_s12, 32 }
  0x88   : > { %p4112_p10 = scmp.ne.s32.totalorder %s423_s12, %s4111_s27  ;;  %p4119_p13 = scmp.lt.s32.totalorder %s423_s12, %s423_s12 }
  0x89   : > { %p4120_p0 = scmp.lt.s32.totalorder %s4118_s11, %s4111_s27 }
  0x8a   : > { %p4114_p11 = pnand %p4112_p10, %p4552_p8 }
  0x8b   : > { %p4121_p2 = por %p4120_p0, %p4119_p13 }
  0x8c   : > { %p4115_p12 = pneg %p4114_p11 }
  0x8e   : > { %p4122_p5 = pnand %p4121_p2, %p4115_p12 }
  0x90   : > { %4125 = shalt.err (!%p4122_p5)
}
  0x91   : > { %3714 = dma.hbm_to_vmem [thread:$0]  (!%p4536_p6), %s5827_s9, 16, %s423_s12, [#allocation27]  }
  0x92   : > { %s4407_s1 = smov [#allocation16]   ;;  %s4408_s0 = smov [#allocation19]  }
  0x93   : > { %s338_s3 = sshll.u32 %s4407_s1, 4  ;;  %s363_s24 = sshll.u32 %s4408_s0, 4  ;;  %s339_s3 = int_to_ptr.vmem [resolvable:$true] %s338_s3  ;;  %s364_s24 = int_to_ptr.vmem [resolvable:$true] %s363_s24 }
  0x94   : > { %s4126_s16 = scalar_lea.hbm %s5820_s2, 256 }
  0x95   : > { %p4127_p7 = scmp.ne.s32.totalorder %s5820_s2, %s4126_s16  ;;  %p4133_p1 = scmp.lt.u32.totalorder %s4126_s16, %s5820_s2 }
  0x97   : > { %p4129_p9 = pnand %p4127_p7, %p4552_p8 }
  0x99   : > { %p4130_p4 = pneg %p4129_p9 }
  0x9b   : > { %p4135_p3 = pnand %p4133_p1, %p4130_p4 }
  0x9d   : > { %4138 = shalt.err (!%p4135_p3)
}
  0x9e   : > { %s4139_s12 = scalar_lea.vmem %s339_s3, 256  ;;  %p4147_p13 = scmp.lt.s32.totalorder %s339_s3, %s339_s3 }
  0x9f   : > { %p4140_p10 = scmp.ne.s32.totalorder %s339_s3, %s4139_s12  ;;  %p4148_p0 = scmp.lt.s32.totalorder %s4139_s12, %s4139_s12 }
  0xa1   : > { %p4142_p11 = pnand %p4140_p10, %p4552_p8  ;;  %p4149_p2 = por %p4148_p0, %p4147_p13 }
  0xa3   : > { %p4143_p12 = pneg %p4142_p11 }
  0xa5   : > { %p4150_p5 = pnand %p4149_p2, %p4143_p12 }
  0xa7   : > { %4153 = shalt.err (!%p4150_p5)
}
  0xa8   : > { %3693 = dma.hbm_to_vmem [thread:$0]  (!%p4536_p6), %s5820_s2, 256, %s339_s3, [#allocation15], %s4403_s29, %s4403_s29, %s4404_s20  }
  0xa9   : > { %s4154_s15 = scalar_lea.hbm %s5822_s4, 16 }
  0xaa   : > { %p4155_p7 = scmp.ne.s32.totalorder %s5822_s4, %s4154_s15  ;;  %p4161_p1 = scmp.lt.u32.totalorder %s4154_s15, %s5822_s4 }
  0xac   : > { %p4157_p9 = pnand %p4155_p7, %p4552_p8 }
  0xae   : > { %p4158_p4 = pneg %p4157_p9 }
  0xb0   : > { %p4163_p3 = pnand %p4161_p1, %p4158_p4 }
  0xb2   : > { %4166 = shalt.err (!%p4163_p3)
}
  0xb3   : > { %s4167_s27 = scalar_lea.vmem %s364_s24, 16  ;;  %s4174_s3 = scalar_lea.vmem %s364_s24, 32 }
  0xb4   : > { %p4168_p10 = scmp.ne.s32.totalorder %s364_s24, %s4167_s27  ;;  %p4175_p13 = scmp.lt.s32.totalorder %s364_s24, %s364_s24 }
  0xb5   : > { %p4176_p0 = scmp.lt.s32.totalorder %s4174_s3, %s4167_s27 }
  0xb6   : > { %p4170_p11 = pnand %p4168_p10, %p4552_p8 }
  0xb7   : > { %p4177_p2 = por %p4176_p0, %p4175_p13 }
  0xb8   : > { %p4171_p12 = pneg %p4170_p11 }
  0xba   : > { %p4178_p5 = pnand %p4177_p2, %p4171_p12 }
  0xbc   : > { %4181 = shalt.err (!%p4178_p5)
}
  0xbd   : > { %3699 = dma.hbm_to_vmem [thread:$0]  (!%p4536_p6), %s5822_s4, 16, %s364_s24, [#allocation18]  }
  0xbe   : > { %s4409_s13 = smov [#allocation22]   ;;  %s4410_s1 = smov [#allocation25]  }
  0xbf   : > { %s387_s25 = sshll.u32 %s4409_s13, 4  ;;  %s408_s0 = sshll.u32 %s4410_s1, 4  ;;  %s388_s25 = int_to_ptr.vmem [resolvable:$true] %s387_s25  ;;  %s409_s0 = int_to_ptr.vmem [resolvable:$true] %s408_s0 }
  0xc0   : > { %s4182_s16 = scalar_lea.hbm %s5824_s6, 16 }
  0xc1   : > { %p4183_p7 = scmp.ne.s32.totalorder %s5824_s6, %s4182_s16  ;;  %p4189_p1 = scmp.lt.u32.totalorder %s4182_s16, %s5824_s6 }
  0xc3   : > { %p4185_p9 = pnand %p4183_p7, %p4552_p8 }
  0xc5   : > { %p4186_p4 = pneg %p4185_p9 }
  0xc7   : > { %p4191_p3 = pnand %p4189_p1, %p4186_p4 }
  0xc9   : > { %4194 = shalt.err (!%p4191_p3)
}
  0xca   : > { %s4195_s24 = scalar_lea.vmem %s388_s25, 16  ;;  %s4202_s11 = scalar_lea.vmem %s388_s25, 32 }
  0xcb   : > { %p4196_p10 = scmp.ne.s32.totalorder %s388_s25, %s4195_s24  ;;  %p4203_p13 = scmp.lt.s32.totalorder %s388_s25, %s388_s25 }
  0xcc   : > { %p4204_p0 = scmp.lt.s32.totalorder %s4202_s11, %s4195_s24 }
  0xcd   : > { %p4198_p11 = pnand %p4196_p10, %p4552_p8 }
  0xce   : > { %p4205_p2 = por %p4204_p0, %p4203_p13 }
  0xcf   : > { %p4199_p12 = pneg %p4198_p11 }
  0xd1   : > { %p4206_p5 = pnand %p4205_p2, %p4199_p12 }
  0xd3   : > { %4209 = shalt.err (!%p4206_p5)
}
  0xd4   : > { %3705 = dma.hbm_to_vmem [thread:$0]  (!%p4536_p6), %s5824_s6, 16, %s388_s25, [#allocation21]  }
  0xd5   : > { %s4210_s26 = scalar_lea.hbm %s5826_s8, 256 }
  0xd6   : > { %p4211_p7 = scmp.ne.s32.totalorder %s5826_s8, %s4210_s26  ;;  %p4217_p1 = scmp.lt.u32.totalorder %s4210_s26, %s5826_s8 }
  0xd8   : > { %p4213_p9 = pnand %p4211_p7, %p4552_p8 }
  0xda   : > { %p4214_p4 = pneg %p4213_p9 }
  0xdc   : > { %p4219_p3 = pnand %p4217_p1, %p4214_p4 }
  0xde   : > { %4222 = shalt.err (!%p4219_p3)
}
  0xdf   : > { %s4223_s3 = scalar_lea.vmem %s409_s0, 256  ;;  %p4231_p13 = scmp.lt.s32.totalorder %s409_s0, %s409_s0 }
  0xe0   : > { %p4224_p10 = scmp.ne.s32.totalorder %s409_s0, %s4223_s3  ;;  %p4232_p0 = scmp.lt.s32.totalorder %s4223_s3, %s4223_s3 }
  0xe2   : > { %p4226_p11 = pnand %p4224_p10, %p4552_p8  ;;  %p4233_p2 = por %p4232_p0, %p4231_p13 }
  0xe4   : > { %p4227_p12 = pneg %p4226_p11 }
  0xe6   : > { %p4234_p5 = pnand %p4233_p2, %p4227_p12 }
  0xe8   : > { %4237 = shalt.err (!%p4234_p5)
}
  0xe9   : > { %s4411_s25 = smov 128   ;;  %s4412_s24 = smov 8  }
  0xea   : > { %3711 = dma.hbm_to_vmem [thread:$0]  (!%p4536_p6), %s5826_s8, 256, %s409_s0, [#allocation24], %s4411_s25, %s4411_s25, %s4412_s24  }
  0xeb   : > { %s4413_s13 = smov [#allocation28]   ;;  %s4238_s16 = scalar_lea.hbm %s5828_s10, 512 }
  0xec   : > { %s432_s1 = sshll.u32 %s4413_s13, 4  ;;  %p4239_p7 = scmp.ne.s32.totalorder %s5828_s10, %s4238_s16  ;;  %s433_s1 = int_to_ptr.vmem [resolvable:$true] %s432_s1 }
  0xed   : > { %p4245_p1 = scmp.lt.u32.totalorder %s4238_s16, %s5828_s10 }
  0xee   : > { %p4241_p9 = pnand %p4239_p7, %p4552_p8 }
  0xf0   : > { %p4242_p4 = pneg %p4241_p9 }
  0xf2   : > { %p4247_p3 = pnand %p4245_p1, %p4242_p4 }
  0xf4   : > { %4250 = shalt.err (!%p4247_p3)
}
  0xf5   : > { %s4251_s0 = scalar_lea.vmem %s433_s1, 512  ;;  %p4259_p13 = scmp.lt.s32.totalorder %s433_s1, %s433_s1 }
  0xf6   : > { %p4252_p10 = scmp.ne.s32.totalorder %s433_s1, %s4251_s0  ;;  %p4260_p0 = scmp.lt.s32.totalorder %s4251_s0, %s4251_s0 }
  0xf8   : > { %p4254_p11 = pnand %p4252_p10, %p4552_p8  ;;  %p4261_p2 = por %p4260_p0, %p4259_p13 }
  0xfa   : > { %p4255_p12 = pneg %p4254_p11 }
  0xfc   : > { %p4262_p5 = pnand %p4261_p2, %p4255_p12 }
  0xfe   : > { %4265 = shalt.err (!%p4262_p5)
}
  0xff   : > { %s5853_s28 = sld [smem:[#allocation38_spill]]  ;;  %s3519_s30 = sadd.s32 4294967294, %s4398_s22  }
 0x100   : > { %3717 = dma.hbm_to_vmem [thread:$0]  (!%p4536_p6), %s5828_s10, 512, %s433_s1, [#allocation27], %s4403_s29, %s4403_s29, %s4404_s20  }
 0x101   : > { %s41_s11 = sadd.s32 1, %s4394_s21  ;;  %s53_s12 = sadd.s32 1, %s4386_s19 }
 0x102   : > { %p42_p8 = scmp.ge.s32.totalorder %s41_s11, 2  ;;  %p60_p7 = scmp.ne.s32.totalorder %s4386_s19, %s4382_s18 }
 0x103   : > { %p61_p9 = scmp.eq.s32.totalorder %s4398_s22, 0  ;;  %p66_p1 = scmp.ne.s32.totalorder %s4382_s18, %s4378_s17 }
 0x104   : > { %s5878_s11 = smov (%p42_p8, %s41_s11), 0  ;;  %s5855_s20 = sadd.s32 4294967295, %s4398_s22  }
 0x105   : > { %p4753_p4 = por %p61_p9, %p60_p7  ;;  %s48_s29 = ssub.s32 %s4394_s21, %s5878_s11 }
 0x106   : > { %p302_p6 = scmp.eq.s32.totalorder %s5855_s20, 1  ;;  %p51_p3 = scmp.eq.s32.totalorder %s48_s29, 0 }
 0x107   : > { %p5856_p10 = scmp.ne.s32.totalorder %s5853_s28, 0  ;;  %p308_p13 = scmp.eq.s32.totalorder %s3519_s30, 1 }
 0x108   : > { %p4769_p12 = por %p302_p6, %p60_p7  ;;  %p3736_p2 = scmp.lt.s32.totalorder %s4398_s22, 2 }
 0x109   : > { %p4765_p11 = por %p5856_p10, %p66_p1  ;;  %p4776_p0 = por %p308_p13, %p66_p1 }
 0x10a   : > { %s5858_s15 = scalar_select %p4769_p12, 1, 0 }
 0x10b   : > { %s4774_s26 = scalar_select %p51_p3, %s4386_s19, %s53_s12  }
 0x10c   : > { %s5859_s16 = scalar_select %p4776_p0, 1, 0 }
 0x10d   : > { %s446_s14 = sand.u32 1, %s4386_s19   ;;  %s3588_s23 = sshll.u32 %s4394_s21, 8 }
 0x10e   : > { %s3532_s27 = sshll.u32 %s446_s14, 4  ;;  %s5860_s25 = sld [smem:[#allocation40_spill]] }
 0x10f   : > { %s450_s28 = scalar_lea.vmem [#allocation11], %s3532_s27  ;;  %p4790_p5 = pnand %p3736_p2, %p4753_p4 }
 0x110   : > { %s458_s30 = sshll.u32 %s450_s28, 4  ;;  %s4796_s29 = scalar_lea.sflag [#allocation12], %s446_s14  ;;  %s4794_s30 = int_to_ptr.vmem [resolvable:$true] %s458_s30 }
 0x111   : > { %p4268_p7 = pneg %p4790_p5 }
 0x114   : > { %s4786_s24 = scalar_lea.hbm %s5860_s25, %s3588_s23  ;;  %s4271_s27 = scalar_lea.hbm %s5860_s25, 512 }
 0x115   : > { %s4266_s20 = scalar_lea.hbm %s4786_s24, 256  ;;  %p4272_p4 = scmp.lt.u32.totalorder %s4786_s24, %s5860_s25 }
 0x116   : > { %p4267_p8 = scmp.ne.s32.totalorder %s4786_s24, %s4266_s20  ;;  %p4273_p6 = scmp.lt.u32.totalorder %s4271_s27, %s4266_s20 }
 0x117   : > { %p4275_p10 = scmp.lt.u32.totalorder %s4266_s20, %s4786_s24 }
 0x118   : > { %p4269_p9 = pnand %p4268_p7, %p4267_p8  ;;  %p4274_p3 = por %p4273_p6, %p4272_p4 }
 0x11a   : > { %p4270_p1 = pneg %p4269_p9  ;;  %p4276_p13 = por %p4275_p10, %p4274_p3 }
 0x11c   : > { %p4277_p2 = pnand %p4276_p13, %p4270_p1 }
 0x11e   : > { %4280 = shalt.err (!%p4277_p2)
}
 0x11f   : > { %s4281_s14 = scalar_lea.vmem %s4794_s30, 256  ;;  %s4414_s28 = smov [#allocation11]  }
 0x120   : > { %p4282_p8 = scmp.ne.s32.totalorder %s4794_s30, %s4281_s14  ;;  %s4286_s23 = sshll.u32 %s4414_s28, 4  ;;  %s4287_s23 = int_to_ptr.vmem [resolvable:$false] %s4286_s23 }
 0x121   : > { %s4288_s13 = scalar_lea.vmem %s4287_s23, 512  ;;  %p4289_p12 = scmp.lt.s32.totalorder %s4794_s30, %s4287_s23 }
 0x122   : > { %p4284_p9 = pnand %p4282_p8, %p4268_p7  ;;  %p4290_p4 = scmp.lt.s32.totalorder %s4288_s13, %s4281_s14 }
 0x124   : > { %p4285_p0 = pneg %p4284_p9  ;;  %p4291_p6 = por %p4290_p4, %p4289_p12 }
 0x126   : > { %p4292_p3 = pnand %p4291_p6, %p4285_p0 }
 0x128   : > { %4295 = shalt.err (!%p4292_p3)
}
 0x129   : > { %s4415_s20 = smov 32   ;;  %s4416_s27 = smov 2  }
 0x12a   : > { %3721 = dma.hbm_to_vmem [thread:$0]  (!%p4790_p5), %s4786_s24, 256, %s4794_s30, %s4796_s29, %s4415_s20, %s4415_s20, %s4416_s27  }
 0x12b   : > { %s5862_s3 = sld [smem:[#allocation39_spill]] }
 0x131   : > { %p5863_p7 = scmp.ne.s32.totalorder %s5862_s3, 0 }
 0x132   : > { %s4827_s0 = sand.u32 (!%p5863_p7), 1, %s4382_s18  }
 0x133   : > { %470 = sbr.rel (%p5863_p7) target bundleno = 1695 (0x69f), region = 64  ;;  %s3536_s14 = sshll.u32 (!%p5863_p7), %s4827_s0, 4 }
 0x134   : > { %s473_s28 = scalar_lea.sflag (!%p5863_p7), [#allocation12], %s4827_s0  ;;  %s4831_s23 = scalar_lea.vmem (!%p5863_p7), [#allocation11], %s3536_s14 }
 0x13a   : > { %4349 = dma.done.wait (%p4765_p11), %s473_s28, 256  }
 0x13b   : > { %4351 = vsyncadd (%p4765_p11), %s473_s28, 4294967040  ;;  %s5864_s12 = sld [smem:[#allocation38_spill]] }
 0x141   : > { %p5865_p12 = scmp.ne.s32.totalorder %s5864_s12, 0 }
 0x143   : > { %4353 = dma.done.wait (%p5865_p12), [#allocation15], 272  }
 0x144   : > { %4355 = vsyncadd (%p5865_p12), [#allocation15], 4294967024 }
 0x145   : > { %4357 = dma.done.wait (%p5865_p12), [#allocation18], 80  }
 0x146   : > { %4359 = vsyncadd (%p5865_p12), [#allocation18], 4294967216 }
 0x147   : > { %4361 = dma.done.wait (%p5865_p12), [#allocation21], 528  }
 0x148   : > { %4363 = vsyncadd (%p5865_p12), [#allocation21], 4294966768 }
 0x149   : > { %4365 = dma.done.wait (%p5865_p12), [#allocation24], 272  }
 0x14a   : > { %4367 = vsyncadd (%p5865_p12), [#allocation24], 4294967024 }
 0x14b   : > { %4369 = dma.done.wait (%p5865_p12), [#allocation27], 528  }
 0x14c   : > { %4371 = vsyncadd (%p5865_p12), [#allocation27], 4294966768  ;;  %s4857_s1 = scalar_lea.vmem [#allocation29], %s3536_s14  ;;  %s5866_s24 = sld [smem:[#allocation37_spill]] }
 0x152   : > { %p3548_p11 = scmp.ne.s32.totalorder %s5866_s24, 0 }
 0x153   : > { %vm562_vm0 = vcmask (!%p3548_p11), 523264   ;;  %vm567_vm1 = vcmask (!%p3548_p11), 517120   ;;  %v4417_v0 = vmov (!%p3548_p11), 0.0  }
 0x154   : > { %561 = sbr.rel (%p3548_p11) target bundleno = 347 (0x15b), region = 112  ;;  %563 = vst.msk [vmem:[#allocation9] sm:$0xff] (!%p3548_p11), %vm562_vm0, %v4417_v0  ;;  %564 = vst.msk [vmem:[#allocation9 + $0x8] sm:$0xff] (!%p3548_p11), %vm562_vm0, %v4417_v0 }
 0x155   : > { %565 = vst.msk [vmem:[#allocation9 + $0x10] sm:$0xff] (!%p3548_p11), %vm562_vm0, %v4417_v0  ;;  %566 = vst.msk [vmem:[#allocation9 + $0x18] sm:$0xff] (!%p3548_p11), %vm562_vm0, %v4417_v0 }
 0x156   : > { %568 = vst.msk [vmem:[#allocation10] sm:$0x3] (!%p3548_p11), %vm567_vm1, %v4417_v0  ;;  %569 = vst.msk [vmem:[#allocation10 + $0x2] sm:$0x3] (!%p3548_p11), %vm567_vm1, %v4417_v0 }
 0x157   : > { %570 = vst.msk [vmem:[#allocation10 + $0x4] sm:$0x3] (!%p3548_p11), %vm567_vm1, %v4417_v0 }
 0x15b PF: > { %v4861_v1 = vld [vmem:[%s4831_s23 + $0x4] sm:$0x3]  ;;  %vm588_vm2 = vcmask 254976   ;;  %v4864_v2 = vld [vmem:[%s4831_s23] sm:$0x3]  ;;  %v4418_v26 = vmov 0.0   ;;  %v673_v60 = vlaneseq }
 0x15c   : > { %v582_v3 = vmul.f32 %v4861_v1, %v4861_v1  ;;  %v580_v4 = vmul.f32 %v4864_v2, %v4864_v2  ;;  %v4871_v5 = vld [vmem:[%s4831_s23 + $0x6] sm:$0x3]  ;;  %v4874_v6 = vld [vmem:[%s4831_s23 + $0x2] sm:$0x3]  ;;  %v4877_v7 = vld [vmem:[%s4831_s23 + $0xa] sm:$0x3]  ;;  %3605 = vmatprep.subr.bf16.mxu1 %v4418_v26  ;;  %3625 = vmatprep.subr.bf16.mxu0 %v4418_v26 }
 0x15d   : > { %v583_v8 = vmul.f32 %v4871_v5, %v4871_v5  ;;  %v581_v9 = vmul.f32 %v4874_v6, %v4874_v6  ;;  %v585_v10 = vmul.f32 %v4877_v7, %v4877_v7  ;;  %v4886_v11 = vld [vmem:[%s4831_s23 + $0x8] sm:$0x3]  ;;  %v4893_v15 = vld [vmem:[%s4831_s23 + $0xe] sm:$0x3]  ;;  %v4896_v16 = vld [vmem:[%s4831_s23 + $0xc] sm:$0x3] }
 0x15e   : > { %v595_v12 = vsel %vm588_vm2, %v582_v3, 0.0  ;;  %v589_v13 = vsel %vm588_vm2, %v580_v4, 0.0  ;;  %v584_v14 = vmul.f32 %v4886_v11, %v4886_v11  ;;  %v587_v21 = vmul.f32 %v4893_v15, %v4893_v15  ;;  %v3822_v25 = vld [vmem:[#allocation16] sm:$0xff]   ;;  %v3823_v27 = vld [vmem:[#allocation16 + $0x8] sm:$0xff]   ;;  %v3549_v3 = vld [vmem:[#allocation14] ss:$0 sm:$0xff] }
 0x15f   : > { %596 = vadd.xlane.f32.xlu1 %v595_v12  ;;  %590 = vadd.xlane.f32.xlu0 %v589_v13  ;;  %v598_v17 = vsel %vm588_vm2, %v583_v8, 0.0  ;;  %v592_v18 = vsel %vm588_vm2, %v581_v9, 0.0  ;;  %v604_v19 = vsel %vm588_vm2, %v585_v10, 0.0  ;;  %v586_v22 = vmul.f32 %v4896_v16, %v4896_v16  ;;  %s4422_s30 = smov 64   ;;  %s4423_s29 = smov 126  }
 0x160   : > { %v601_v20 = vsel %vm588_vm2, %v584_v14, 0.0  ;;  %v610_v23 = vsel %vm588_vm2, %v587_v21, 0.0  ;;  %vm4419_vm3 = vmmov 0   ;;  %3606 = vmatpush3.bf16.msra.mxu1 %v3822_v25  ;;  %v4420_v56 = vmov 1983009808   ;;  %s4424_s13 = smov 110  }
 0x161   : > { %v607_v24 = vsel %vm588_vm2, %v586_v22, 0.0  ;;  %3609 = vmatprep.mubr.msk.bf16.mxu1 %vm4419_vm3, %v4418_v26  ;;  %3607 = vmatprep.subr.bf16.mxu1 %v4418_v26  ;;  %v671_v57 = vunpack.c.l.s4 %v4420_v56  ;;  %v4922_v13 = vshrl.u32 %v673_v60, 7  ;;  %vm721_vm4 = vcmask 261120   ;;  %s5867_s20 = sld [smem:[#allocation37_spill]]  ;;  %s3338_s3 = sshll.u32 %s4857_s1, 4  ;;  %s5761_s3 = int_to_ptr.vmem [resolvable:$true] %s3338_s3 }
 0x162   : > { %3627 = vmatprep.mubr.msk.bf16.mxu0 %vm4419_vm3, %v4418_v26  ;;  %vm974_vm5 = vcmask 517120   ;;  %vm1253_vm6 = vcmask 523264   ;;  %vm962_vm7 = vcmask 516096   ;;  %vm1311_vm8 = vcmask 1040384   ;;  %s5868_s12 = sld [smem:[#allocation43_spill]]  ;;  %p5869_p5 = scmp.ne.s32.totalorder %s5858_s15, 0 }
 0x163   : > { %599 = vadd.xlane.f32.xlu1 %v598_v17  ;;  %593 = vadd.xlane.f32.xlu0 %v592_v18  ;;  %v672_v8 = vunpack.c.0.s8 %v671_v57  ;;  %vm1307_vm9 = vcmask 15360   ;;  %vm1558_vm10 = vcmask 123904   ;;  %vm3013_vm11 = vcmask 1041409  }
 0x164   : > { %3608 = vmatpush3.bf16.msra.mxu1 %v3823_v27 }
 0x165   : > { %3613 = vmatprep.subr.bf16.mxu1 %v4418_v26 }
 0x167   : > { %605 = vadd.xlane.f32.xlu1 %v604_v19  ;;  %602 = vadd.xlane.f32.xlu0 %v601_v20  ;;  %s3589_s27 = sshll.u32 %s5867_s20, 8 }
 0x168   : > { %s5759_s24 = scalar_lea.hbm %s5868_s12, %s3589_s27 }
 0x16b   : > { %611 = vadd.xlane.f32.xlu1 %v610_v23  ;;  %608 = vadd.xlane.f32.xlu0 %v607_v24 }
 0x1ec   : > { %v597_v28 = vpop.xlane.xlu1 %596  ;;  %v591_v29 = vpop.xlane.xlu0 %590 }
 0x1ed   : > { %v616_v30 = vmul.f32 0.03125, %v597_v28  ;;  %v614_v31 = vmul.f32 0.03125, %v591_v29 }
 0x1ef   : > { %v624_v32 = vadd.f32 1e-05, %v616_v30  ;;  %v622_v33 = vadd.f32 1e-05, %v614_v31  ;;  %v971_v31 = vld [vmem:[#allocation10] sm:$0x3] }
 0x1f0   : > { %v600_v34 = vpop.xlane.xlu1 %599  ;;  %v594_v35 = vpop.xlane.xlu0 %593  ;;  %975 = vst.msk [vmem:[#allocation2] sm:$0x3] %vm974_vm5, %v971_v31 }
 0x1f1   : > { %v617_v36 = vmul.f32 0.03125, %v600_v34  ;;  %v615_v37 = vmul.f32 0.03125, %v594_v35  ;;  %3832 = vrsqrt.f32 %v624_v32  ;;  %v972_v32 = vld [vmem:[#allocation10 + $0x2] sm:$0x3]  ;;  %v3825_v35 = vld [vmem:[#allocation20 + $0x8] sm:$0xff]  }
 0x1f2   : > { %3834 = vrsqrt.f32 %v622_v33  ;;  %976 = vst.msk [vmem:[#allocation2 + $0x2] sm:$0x3] %vm974_vm5, %v972_v32  ;;  %v973_v33 = vld [vmem:[#allocation10 + $0x4] sm:$0x3] }
 0x1f3   : > { %v625_v38 = vadd.f32 1e-05, %v617_v36  ;;  %v623_v39 = vadd.f32 1e-05, %v615_v37  ;;  %977 = vst.msk [vmem:[#allocation2 + $0x4] sm:$0x3] %vm974_vm5, %v973_v33 }
 0x1f4   : > { %v606_v40 = vpop.xlane.xlu1 %605  ;;  %v603_v41 = vpop.xlane.xlu0 %602  ;;  %v3824_v34 = vld [vmem:[#allocation20] sm:$0xff]   ;;  %v3826_v36 = vld [vmem:[#allocation20 + $0x10] sm:$0xff]   ;;  %v3827_v37 = vld [vmem:[#allocation20 + $0x18] sm:$0xff]  }
 0x1f5   : > { %3836 = vrsqrt.f32 %v625_v38  ;;  %v619_v42 = vmul.f32 0.03125, %v606_v40  ;;  %v618_v43 = vmul.f32 0.03125, %v603_v41  ;;  %v4942_v38 = vsub.s32 0, %v4922_v13  ;;  %v990_v40 = vld [vmem:[#allocation17] sm:$0xf] }
 0x1f6   : > { %3838 = vrsqrt.f32 %v623_v39  ;;  %v4945_v39 = vsub.s32 1, %v4922_v13  ;;  %v4421_v41 = vmov 1966171168  }
 0x1f7   : > { %v627_v44 = vadd.f32 1e-05, %v619_v42  ;;  %v626_v45 = vadd.f32 1e-05, %v618_v43  ;;  %v827_v42 = vunpack.c.l.s4 %v4421_v41  ;;  %v4948_v43 = vrot.slane %v990_v40, %v4942_v38 }
 0x1f8   : > { %v612_v46 = vpop.xlane.xlu1 %611  ;;  %v609_v47 = vpop.xlane.xlu0 %608 }
 0x1f9   : > { %3840 = vrsqrt.f32 %v627_v44  ;;  %v621_v48 = vmul.f32 0.03125, %v612_v46  ;;  %v620_v49 = vmul.f32 0.03125, %v609_v47  ;;  %v4951_v44 = vrot.slane %v990_v40, %v4945_v39  ;;  %v1020_v46 = vld [vmem:[#allocation2 + $0x2] sm:$0x3] }
 0x1fa   : > { %3842 = vrsqrt.f32 %v626_v45  ;;  %v991_v45 = vld [vmem:[#allocation2] sm:$0x3]  ;;  %v1059_v47 = vsub.s32 2, %v4922_v13 }
 0x1fb   : > { %v629_v50 = vadd.f32 1e-05, %v621_v48  ;;  %v628_v51 = vadd.f32 1e-05, %v620_v49  ;;  %v3833_v52 = vpop.eup %3832  ;;  %v828_v48 = vunpack.c.0.s8 %v827_v42  ;;  %v992_v49 = vld [vmem:[#allocation2 + $0x2] sm:$0x3] }
 0x1fc   : > { %v3835_v53 = vpop.eup %3834  ;;  %v640_v62 = vmul.f32 %v3833_v52, %v4861_v1  ;;  %v1032_v52 = vmul.f32 %v4951_v44, %v1020_v46  ;;  %v4958_v56 = vrot.slane %v990_v40, %v1059_v47 }
 0x1fd   : > { %3844 = vrsqrt.f32 %v629_v50  ;;  %v638_v63 = vmul.f32 %v3835_v53, %v4864_v2  ;;  %v1021_v50 = vld [vmem:[#allocation2 + $0x4] sm:$0x3]  ;;  %v4961_v57 = vsub.s32 %v828_v48, %v4922_v13 }
 0x1fe   : > { %3846 = vrsqrt.f32 %v628_v51  ;;  %v654_v14 = vmul.f32 %v3549_v3, %v640_v62  ;;  %v1003_v51 = vmul.f32 %v4948_v43, %v991_v45  ;;  %v1049_v62 = vld [vmem:[#allocation2 + $0x4] sm:$0x3] }
 0x1ff   : > { %v3837_v54 = vpop.eup %3836 }
 0x200   : > { %v3839_v55 = vpop.eup %3838  ;;  %v641_v58 = vmul.f32 %v3837_v54, %v4871_v5  ;;  %v1004_v54 = vmul.f32 %v4948_v43, %v992_v49 }
 0x201   : > { %v639_v59 = vmul.f32 %v3839_v55, %v4874_v6  ;;  %v652_v6 = vmul.f32 %v3549_v3, %v638_v63  ;;  %v1033_v55 = vmul.f32 %v4951_v44, %v1021_v50 }
 0x202   : > { %v655_v9 = vmul.f32 %v3549_v3, %v641_v58 }
 0x203   : > { %v3841_v61 = vpop.eup %3840  ;;  %v653_v10 = vmul.f32 %v3549_v3, %v639_v59 }
 0x204   : > { %v3843_v0 = vpop.eup %3842  ;;  %v643_v4 = vmul.f32 %v3841_v61, %v4877_v7  ;;  %v669_v21 = vcombine.low %v654_v14, %v655_v9  ;;  %v4927_v7 = vsub.s32 %v672_v8, %v4922_v13  ;;  %v993_v61 = vld [vmem:[#allocation2 + $0x4] sm:$0x3] }
 0x205   : > { %v642_v12 = vmul.f32 %v3843_v0, %v4886_v11  ;;  %v668_v20 = vcombine.low %v652_v6, %v653_v10  ;;  %v1040_v0 = vadd.f32 %v1032_v52, %v1003_v51  ;;  %v4969_v14 = vmul.f32 %v4948_v43, %v993_v61 }
 0x206   : > { %v657_v17 = vmul.f32 %v3549_v3, %v643_v4  ;;  %v683_v25 = vrot.slane %v669_v21, %v4927_v7  ;;  %v4971_v6 = vadd.f32 %v1033_v55, %v1004_v54 }
 0x207   : > { %v3845_v5 = vpop.eup %3844  ;;  %v656_v18 = vmul.f32 %v3549_v3, %v642_v12  ;;  %v676_v24 = vrot.slane %v668_v20, %v4927_v7 }
 0x208   : > { %v3847_v19 = vpop.eup %3846  ;;  %v645_v1 = vmul.f32 %v3845_v5, %v4893_v15 }
 0x209   : > { %v644_v2 = vmul.f32 %v3847_v19, %v4896_v16  ;;  %v685_v11 = vcombine.low %v656_v18, %v657_v17  ;;  %v684_v15 = vcombine.low %v676_v24, %v683_v25  ;;  %v1061_v17 = vmul.f32 %v4958_v56, %v1049_v62 }
 0x20a   : > { %v659_v22 = vmul.f32 %v3549_v3, %v645_v1 }
 0x20b   : > { %v658_v23 = vmul.f32 %v3549_v3, %v644_v2  ;;  %v693_v28 = vrot.slane %v685_v11, %v4927_v7  ;;  %v1087_v3 = vsub.s32 3, %v4922_v13  ;;  %v4995_v32 = vadd.f32 %v1061_v17, %v1040_v0 }
 0x20d   : > { %v686_v27 = vcombine.low %v658_v23, %v659_v22  ;;  %v4979_v22 = vrot.slane %v990_v40, %v1087_v3 }
 0x20f   : > { %v700_v29 = vrot.slane %v686_v27, %v4927_v7 }
 0x211   : > { %v701_v30 = vcombine.low %v693_v28, %v700_v29 }
 0x213   : > { %v704_v16 = vpack.c.bf16 %v701_v30, %v684_v15 }
 0x215   : > { %3610 = vmatmul.mubr.msk.bf16.vlgmr.msra.gmra.mrb[0].mxu1 %vm721_vm4, %v704_v16 }
 0x216   : > { %3621 = vmatprep.mubr.msk.bf16.mxu1 %vm4419_vm3, %v4418_v26  ;;  %3614 = vmatpush3.bf16.msra.mxu1 %v3824_v34 }
 0x217   : > { %3615 = vmatprep.subr.bf16.mxu1 %v4418_v26 }
 0x21a   : > { %3616 = vmatpush3.bf16.msra.mxu1 %v3825_v35 }
 0x21b   : > { %3617 = vmatprep.subr.bf16.mxu1 %v4418_v26 }
 0x21e   : > { %3618 = vmatpush3.bf16.msra.mxu1 %v3826_v36 }
 0x21f   : > { %3619 = vmatprep.subr.bf16.mxu1 %v4418_v26 }
 0x222   : > { %3620 = vmatpush3.bf16.msra.mxu1 %v3827_v37 }
 0x2e8   : > { %v759_v53 = vpop.f32.mrb[0].mxu1 }
 0x2e9   : > { %v768_v58 = vcombine.high %v759_v53, %v759_v53  ;;  %v775_v59 = vrot.slane %v759_v53, %v4927_v7  ;;  %v3611_v60 = vpop.f32.mrb[1].mxu1 }
 0x2ea   : > { %v762_v63 = vpop.f32.mrb[2].mxu1 }
 0x2eb   : > { %v782_v4 = vrot.slane %v768_v58, %v4927_v7  ;;  %v783_v8 = vcombine.high %v775_v59, %v775_v59  ;;  %v810_v9 = vpack.c.bf16 %v775_v59, %v775_v59  ;;  %979 = vst.msk [vmem:[#allocation2 + $0x6] sm:$0x3] %vm974_vm5, %v775_v59  ;;  %v785_v10 = vcombine.high %v762_v63, %v762_v63  ;;  %v3612_v12 = vpop.f32.mrb[3].mxu1 }
 0x2ec   : > { %v792_v5 = vrot.slane %v762_v63, %v4927_v7 }
 0x2ed   : > { %v784_v18 = vcombine.high %v782_v4, %v782_v4  ;;  %980 = vst.msk [vmem:[#allocation2 + $0x8] sm:$0x3] %vm974_vm5, %v783_v8  ;;  %981 = vst.msk [vmem:[#allocation2 + $0xa] sm:$0x3] %vm974_vm5, %v782_v4  ;;  %v799_v13 = vrot.slane %v785_v10, %v4927_v7  ;;  %v832_v19 = vrot.slane %v810_v9, %v4961_v57 }
 0x2ee   : > { %v811_v1 = vpack.c.bf16 %v783_v8, %v783_v8  ;;  %v800_v2 = vcombine.high %v792_v5, %v792_v5  ;;  %v814_v20 = vpack.c.bf16 %v792_v5, %v792_v5  ;;  %983 = vst.msk [vmem:[#allocation2 + $0xe] sm:$0x3] %vm974_vm5, %v792_v5  ;;  %v812_v21 = vpack.c.bf16 %v782_v4, %v782_v4 }
 0x2ef   : > { %982 = vst.msk [vmem:[#allocation2 + $0xc] sm:$0x3] %vm974_vm5, %v784_v18  ;;  %v801_v23 = vcombine.high %v799_v13, %v799_v13  ;;  %985 = vst.msk [vmem:[#allocation2 + $0x12] sm:$0x3] %vm974_vm5, %v799_v13  ;;  %v839_v11 = vrot.slane %v832_v19, %v4961_v57  ;;  %v813_v25 = vpack.c.bf16 %v784_v18, %v784_v18 }
 0x2f0   : > { %988 = vst.msk [vmem:[#allocation10 + $0x2] sm:$0x3] %vm974_vm5, %v799_v13  ;;  %v846_v24 = vrot.slane %v811_v1, %v4961_v57  ;;  %984 = vst.msk [vmem:[#allocation2 + $0x10] sm:$0x3] %vm974_vm5, %v800_v2  ;;  %v860_v27 = vrot.slane %v812_v21, %v4961_v57  ;;  %v888_v28 = vrot.slane %v814_v20, %v4961_v57 }
 0x2f1   : > { %987 = vst.msk [vmem:[#allocation10] sm:$0x3] %vm974_vm5, %v800_v2  ;;  %v815_v29 = vpack.c.bf16 %v800_v2, %v800_v2  ;;  %v816_v15 = vpack.c.bf16 %v799_v13, %v799_v13  ;;  %986 = vst.msk [vmem:[#allocation2 + $0x14] sm:$0x3] %vm974_vm5, %v801_v23  ;;  %938 = vrot.lane.b32.xlu0 %v839_v11, %s4422_s30  ;;  %v874_v16 = vrot.slane %v813_v25, %v4961_v57 }
 0x2f2   : > { %989 = vst.msk [vmem:[#allocation10 + $0x4] sm:$0x3] %vm974_vm5, %v801_v23  ;;  %v853_v30 = vrot.slane %v846_v24, %v4961_v57  ;;  %v817_v31 = vpack.c.bf16 %v801_v23, %v801_v23  ;;  %v867_v33 = vrot.slane %v860_v27, %v4961_v57  ;;  %v895_v34 = vrot.slane %v888_v28, %v4961_v57  ;;  %v994_v37 = vld [vmem:[#allocation2 + $0x6] sm:$0x3] }
 0x2f3   : > { %v5000_v35 = vrot.slane %v815_v29, %v4961_v57  ;;  %v5003_v36 = vrot.slane %v816_v15, %v4961_v57  ;;  %v1022_v40 = vld [vmem:[#allocation2 + $0x6] sm:$0x3]  ;;  %v881_v42 = vrot.slane %v874_v16, %v4961_v57  ;;  %v1006_v46 = vmul.f32 %v4948_v43, %v994_v37 }
 0x2f4   : > { %v1050_v41 = vld [vmem:[#allocation2 + $0x6] sm:$0x3]  ;;  %940 = vrot.lane.b32.xlu1 %v853_v30, %s4422_s30  ;;  %v5008_v45 = vrot.slane %v817_v31, %v4961_v57  ;;  %v1034_v47 = vmul.f32 %v4951_v44, %v1022_v40  ;;  %v995_v51 = vld [vmem:[#allocation2 + $0x8] sm:$0x3]  ;;  %v996_v52 = vld [vmem:[#allocation2 + $0xa] sm:$0x3] }
 0x2f5   : > { %v1077_v48 = vld [vmem:[#allocation2 + $0x6] sm:$0x3]  ;;  %v909_v49 = vrot.slane %v5000_v35, %v4961_v57  ;;  %v923_v50 = vrot.slane %v5003_v36, %v4961_v57  ;;  %v1023_v53 = vld [vmem:[#allocation2 + $0x8] sm:$0x3]  ;;  %v1062_v54 = vmul.f32 %v4958_v56, %v1050_v41  ;;  %942 = vrot.lane.b32.xlu0 %v867_v33, %s4422_s30  ;;  %v998_v59 = vld [vmem:[#allocation2 + $0xe] sm:$0x3]  ;;  %v1007_v60 = vmul.f32 %v4948_v43, %v995_v51 }
 0x2f6   : > { %v1089_v55 = vmul.f32 %v4979_v22, %v1077_v48  ;;  %v937_v58 = vrot.slane %v5008_v45, %v4961_v57  ;;  %v1008_v61 = vmul.f32 %v4948_v43, %v996_v52  ;;  %v1024_v62 = vld [vmem:[#allocation2 + $0xa] sm:$0x3]  ;;  %v1026_v63 = vld [vmem:[#allocation2 + $0xe] sm:$0x3]  ;;  %v1035_v0 = vmul.f32 %v4951_v44, %v1023_v53  ;;  %v997_v3 = vld [vmem:[#allocation2 + $0xc] sm:$0x3] }
 0x2f7   : > { %v1010_v4 = vmul.f32 %v4948_v43, %v998_v59  ;;  %v1025_v8 = vld [vmem:[#allocation2 + $0xc] sm:$0x3]  ;;  %v1036_v9 = vmul.f32 %v4951_v44, %v1024_v62  ;;  %v1038_v10 = vmul.f32 %v4951_v44, %v1026_v63  ;;  %v1042_v12 = vadd.f32 %v1034_v47, %v4969_v14  ;;  %v1051_v5 = vld [vmem:[#allocation2 + $0x8] sm:$0x3]  ;;  %v1027_v18 = vld [vmem:[#allocation2 + $0x10] sm:$0x3] }
 0x2f8   : > { %944 = vrot.lane.b32.xlu1 %v881_v42, %s4422_s30  ;;  %v1009_v17 = vmul.f32 %v4948_v43, %v997_v3  ;;  %v1037_v13 = vmul.f32 %v4951_v44, %v1025_v8  ;;  %v1043_v19 = vadd.f32 %v1035_v0, %v1006_v46  ;;  %v1052_v1 = vld [vmem:[#allocation2 + $0xa] sm:$0x3]  ;;  %v1053_v2 = vld [vmem:[#allocation2 + $0xc] sm:$0x3]  ;;  %v1063_v20 = vmul.f32 %v4958_v56, %v1051_v5  ;;  %v1054_v11 = vld [vmem:[#allocation2 + $0xe] sm:$0x3] }
 0x2f9   : > { %v1039_v21 = vmul.f32 %v4951_v44, %v1027_v18  ;;  %v1044_v23 = vadd.f32 %v1036_v9, %v1007_v60  ;;  %v1055_v24 = vld [vmem:[#allocation2 + $0x10] sm:$0x3]  ;;  %v1056_v25 = vld [vmem:[#allocation2 + $0x12] sm:$0x3]  ;;  %v1064_v14 = vmul.f32 %v4958_v56, %v1052_v1  ;;  %v1065_v27 = vmul.f32 %v4958_v56, %v1053_v2  ;;  %946 = vrot.lane.b32.xlu0 %v895_v34, %s4422_s30  ;;  %v1078_v30 = vld [vmem:[#allocation2 + $0x8] sm:$0x3] }
 0x2fa   : > { %v1045_v43 = vadd.f32 %v1037_v13, %v1008_v61  ;;  %v1046_v28 = vadd.f32 %v1038_v10, %v1009_v17  ;;  %v1066_v29 = vmul.f32 %v4958_v56, %v1054_v11  ;;  %v1067_v15 = vmul.f32 %v4958_v56, %v1055_v24  ;;  %v1079_v16 = vld [vmem:[#allocation2 + $0xa] sm:$0x3]  ;;  %v1080_v31 = vld [vmem:[#allocation2 + $0xc] sm:$0x3]  ;;  %v1081_v37 = vld [vmem:[#allocation2 + $0xe] sm:$0x3] }
 0x2fb   : > { %v1047_v44 = vadd.f32 %v1039_v21, %v1010_v4  ;;  %v1068_v33 = vmul.f32 %v4958_v56, %v1056_v25  ;;  %v1070_v35 = vadd.f32 %v1062_v54, %v4971_v6  ;;  %v1071_v36 = vadd.f32 %v1063_v20, %v1042_v12  ;;  %v1082_v40 = vld [vmem:[#allocation2 + $0x10] sm:$0x3]  ;;  %v1083_v41 = vld [vmem:[#allocation2 + $0x12] sm:$0x3]  ;;  %v1084_v48 = vld [vmem:[#allocation2 + $0x14] sm:$0x3] }
 0x2fc   : > { %948 = vrot.lane.b32.xlu1 %v909_v49, %s4422_s30  ;;  %v1072_v34 = vadd.f32 %v1064_v14, %v1043_v19  ;;  %v1073_v42 = vadd.f32 %v1065_v27, %v1044_v23  ;;  %v1074_v46 = vadd.f32 %v1066_v29, %v1045_v43  ;;  %v1075_v47 = vadd.f32 %v1067_v15, %v1046_v28  ;;  %v3553_v60 = vld [vmem:[#allocation19] ss:$0 sm:$0xff] }
 0x2fd   : > { %v1076_v51 = vadd.f32 %v1068_v33, %v1047_v44  ;;  %v1090_v52 = vmul.f32 %v4979_v22, %v1078_v30  ;;  %v1091_v53 = vmul.f32 %v4979_v22, %v1079_v16  ;;  %v1092_v56 = vmul.f32 %v4979_v22, %v1080_v31  ;;  %950 = vrot.lane.b32.xlu0 %v923_v50, %s4422_s30 }
 0x2fe   : > { %v1093_v6 = vmul.f32 %v4979_v22, %v1081_v37  ;;  %v1094_v54 = vmul.f32 %v4979_v22, %v1082_v40  ;;  %v1095_v49 = vmul.f32 %v4979_v22, %v1083_v41  ;;  %v1096_v59 = vmul.f32 %v4979_v22, %v1084_v48  ;;  %v3561_v48 = vld [vmem:[#allocation26] ss:$0 sm:$0xff] }
 0x2ff   : > { %v1097_v61 = vadd.f32 %v1089_v55, %v4995_v32  ;;  %v1098_v62 = vadd.f32 %v1090_v52, %v1070_v35  ;;  %v1099_v63 = vadd.f32 %v1091_v53, %v1071_v36  ;;  %v1100_v0 = vadd.f32 %v1092_v56, %v1072_v34 }
 0x300   : > { %952 = vrot.lane.b32.xlu1 %v937_v58, %s4422_s30  ;;  %v1101_v50 = vadd.f32 %v1093_v6, %v1073_v42  ;;  %v1102_v3 = vadd.f32 %v1094_v54, %v1074_v46  ;;  %v1103_v4 = vadd.f32 %v1095_v49, %v1075_v47  ;;  %v1104_v8 = vadd.f32 %v1096_v59, %v1076_v51  ;;  %s4296_s30 = scalar_lea.vmem %s5761_s3, 256 }
 0x301   : > { %v1112_v9 = vadd.f32 %v3553_v60, %v1097_v61  ;;  %v1113_v10 = vadd.f32 %v3553_v60, %v1098_v62  ;;  %v1114_v12 = vadd.f32 %v3553_v60, %v1099_v63  ;;  %v5054_v5 = vadd.f32 %v3553_v60, %v1100_v0  ;;  %p4297_p0 = scmp.ne.s32.totalorder %s5761_s3, %s4296_s30 }
 0x302   : > { %v5056_v22 = vadd.f32 %v3553_v60, %v1101_v50  ;;  %v5058_v32 = vadd.f32 %v3553_v60, %v1102_v3  ;;  %v5060_v55 = vadd.f32 %v3553_v60, %v1103_v4  ;;  %v5062_v17 = vadd.f32 %v3553_v60, %v1104_v8 }
 0x303   : > { %v1120_v18 = vsub.f32 0.0, %v1112_v9  ;;  %v1121_v45 = vsub.f32 0.0, %v1113_v10  ;;  %v1122_v58 = vsub.f32 0.0, %v1114_v12  ;;  %v1123_v13 = vsub.f32 0.0, %v5054_v5  ;;  %p4298_p1 = pnand %p4297_p0, %p5869_p5 }
 0x304   : > { %v1124_v19 = vsub.f32 0.0, %v5056_v22  ;;  %v1125_v1 = vsub.f32 0.0, %v5058_v32  ;;  %v1126_v2 = vsub.f32 0.0, %v5060_v55  ;;  %v1127_v11 = vsub.f32 0.0, %v5062_v17 }
 0x305   : > { %v1128_v20 = vmul.f32 1.442695, %v1120_v18  ;;  %v1130_v21 = vmul.f32 1.442695, %v1121_v45  ;;  %v1132_v23 = vmul.f32 1.442695, %v1122_v58  ;;  %p4299_p10 = pneg %p4298_p1 }
 0x306   : > { %v1134_v24 = vmul.f32 1.442695, %v1123_v13  ;;  %v1136_v25 = vmul.f32 1.442695, %v1124_v19  ;;  %v1138_v14 = vmul.f32 1.442695, %v1125_v1 }
 0x307   : > { %3848 = vpow2.f32 %v1128_v20  ;;  %v1140_v27 = vmul.f32 1.442695, %v1126_v2  ;;  %v1142_v43 = vmul.f32 1.442695, %v1127_v11 }
 0x308   : > { %3850 = vpow2.f32 %v1130_v21 }
 0x309   : > { %3852 = vpow2.f32 %v1132_v23 }
 0x30a   : > { %3854 = vpow2.f32 %v1134_v24 }
 0x30b   : > { %3856 = vpow2.f32 %v1136_v25 }
 0x30c   : > { %3858 = vpow2.f32 %v1138_v14 }
 0x30d   : > { %3860 = vpow2.f32 %v1140_v27 }
 0x30e   : > { %3862 = vpow2.f32 %v1142_v43 }
 0x311   : > { %v3849_v28 = vpop.eup %3848 }
 0x312   : > { %v3851_v29 = vpop.eup %3850  ;;  %v1144_v15 = vadd.f32 1.0, %v3849_v28 }
 0x313   : > { %v3853_v30 = vpop.eup %3852  ;;  %v1145_v16 = vadd.f32 1.0, %v3851_v29  ;;  %v1299_v29 = vld [vmem:[#allocation22] sm:$0x1] }
 0x314   : > { %v3855_v31 = vpop.eup %3854  ;;  %v1146_v44 = vadd.f32 1.0, %v3853_v30  ;;  %3864 = vrcp.f32 %v1144_v15  ;;  %v1313_v15 = vsel %vm1311_vm8, %v1299_v29, 0 }
 0x315   : > { %v3857_v33 = vpop.eup %3856  ;;  %v1147_v35 = vadd.f32 1.0, %v3855_v31  ;;  %3866 = vrcp.f32 %v1145_v16  ;;  %3626 = vmatpush3.bf16.msra.mxu0 %v1313_v15 }
 0x316   : > { %v3859_v36 = vpop.eup %3858  ;;  %v1148_v37 = vadd.f32 1.0, %v3857_v33  ;;  %3868 = vrcp.f32 %v1146_v44  ;;  %3631 = vmatprep.subr.bf16.mxu0 %v4418_v26 }
 0x317   : > { %v3861_v40 = vpop.eup %3860  ;;  %v1149_v41 = vadd.f32 1.0, %v3859_v36  ;;  %3870 = vrcp.f32 %v1147_v35 }
 0x318   : > { %v3863_v34 = vpop.eup %3862  ;;  %v1150_v42 = vadd.f32 1.0, %v3861_v40  ;;  %3872 = vrcp.f32 %v1148_v37 }
 0x319   : > { %v1151_v46 = vadd.f32 1.0, %v3863_v34  ;;  %3874 = vrcp.f32 %v1149_v41 }
 0x31a   : > { %3876 = vrcp.f32 %v1150_v42 }
 0x31b   : > { %3878 = vrcp.f32 %v1151_v46 }
 0x31e   : > { %v3865_v47 = vpop.eup %3864 }
 0x31f   : > { %v3867_v51 = vpop.eup %3866  ;;  %v5069_v52 = vmul.f32 %v3865_v47, %v1112_v9 }
 0x320   : > { %v3869_v53 = vpop.eup %3868  ;;  %v5071_v56 = vmul.f32 %v3867_v51, %v1113_v10 }
 0x321   : > { %v3871_v6 = vpop.eup %3870  ;;  %v5073_v54 = vmul.f32 %v3869_v53, %v1114_v12  ;;  %v1606_v49 = vmul.f32 %v3561_v48, %v5069_v52 }
 0x322   : > { %v3873_v59 = vpop.eup %3872  ;;  %v5077_v60 = vmul.f32 %v3871_v6, %v5054_v5  ;;  %v1607_v61 = vmul.f32 %v3561_v48, %v5071_v56 }
 0x323   : > { %v3875_v62 = vpop.eup %3874  ;;  %v5081_v63 = vmul.f32 %v3873_v59, %v5056_v22  ;;  %1614 = vst.msk [vmem:[#allocation5] sm:$0x3] %vm974_vm5, %v1606_v49  ;;  %v1608_v0 = vmul.f32 %v3561_v48, %v5073_v54  ;;  %v1184_v22 = vcombine.low %v5069_v52, %v5071_v56 }
 0x324   : > { %v3877_v50 = vpop.eup %3876  ;;  %v5086_v3 = vmul.f32 %v3875_v62, %v5058_v32  ;;  %v1185_v4 = vcombine.low %v5073_v54, %v5077_v60  ;;  %1615 = vst.msk [vmem:[#allocation5 + $0x2] sm:$0x3] %vm974_vm5, %v1607_v61  ;;  %v1609_v8 = vmul.f32 %v3561_v48, %v5077_v60 }
 0x325   : > { %v3879_v9 = vpop.eup %3878  ;;  %v5093_v10 = vmul.f32 %v3877_v50, %v5060_v55  ;;  %v1610_v12 = vmul.f32 %v3561_v48, %v5081_v63  ;;  %1616 = vst.msk [vmem:[#allocation5 + $0x4] sm:$0x3] %vm974_vm5, %v1608_v0  ;;  %v1192_v19 = vrot.slane %v1184_v22, %v4927_v7 }
 0x326   : > { %v5098_v5 = vmul.f32 %v3879_v9, %v5062_v17  ;;  %v1201_v32 = vcombine.low %v5081_v63, %v5086_v3  ;;  %1617 = vst.msk [vmem:[#allocation5 + $0x6] sm:$0x3] %vm974_vm5, %v1609_v8  ;;  %v1611_v18 = vmul.f32 %v3561_v48, %v5086_v3  ;;  %v1199_v45 = vrot.slane %v1185_v4, %v4927_v7 }
 0x327   : > { %1618 = vst.msk [vmem:[#allocation5 + $0x8] sm:$0x3] %vm974_vm5, %v1610_v12  ;;  %v1612_v55 = vmul.f32 %v3561_v48, %v5093_v10 }
 0x328   : > { %v1202_v17 = vcombine.low %v5093_v10, %v5098_v5  ;;  %v1209_v58 = vrot.slane %v1201_v32, %v4927_v7  ;;  %1619 = vst.msk [vmem:[#allocation5 + $0xa] sm:$0x3] %vm974_vm5, %v1611_v18  ;;  %v1613_v13 = vmul.f32 %v3561_v48, %v5098_v5  ;;  %v1200_v2 = vcombine.low %v1192_v19, %v1199_v45 }
 0x329   : > { %1620 = vst.msk [vmem:[#allocation5 + $0xc] sm:$0x3] %vm974_vm5, %v1612_v55 }
 0x32a   : > { %v1216_v1 = vrot.slane %v1202_v17, %v4927_v7  ;;  %1621 = vst.msk [vmem:[#allocation5 + $0xe] sm:$0x3] %vm974_vm5, %v1613_v13 }
 0x32c   : > { %v1217_v20 = vcombine.low %v1209_v58, %v1216_v1 }
 0x32e   : > { %v1220_v21 = vpack.c.bf16 %v1217_v20, %v1200_v2 }
 0x330   : > { %3622 = vmatmul.mubr.msk.bf16.vlgmr.msra.gmra.mrb[4].mxu1 %vm1253_vm6, %v1220_v21 }
 0x363   : > { %v939_v23 = vpop.permute.xlu0 %938 }
 0x364   : > { %963 = vst.msk [vmem:[#allocation3] sm:$0x1] %vm962_vm7, %v939_v23 }
 0x366   : > { %v941_v11 = vpop.permute.xlu1 %940 }
 0x367   : > { %964 = vst.msk [vmem:[#allocation3 + $0x1] sm:$0x1] %vm962_vm7, %v941_v11  ;;  %v943_v24 = vpop.permute.xlu0 %942 }
 0x368   : > { %965 = vst.msk [vmem:[#allocation3 + $0x2] sm:$0x1] %vm962_vm7, %v943_v24 }
 0x36a   : > { %v945_v25 = vpop.permute.xlu1 %944 }
 0x36b   : > { %966 = vst.msk [vmem:[#allocation3 + $0x3] sm:$0x1] %vm962_vm7, %v945_v25  ;;  %v947_v14 = vpop.permute.xlu0 %946 }
 0x36c   : > { %967 = vst.msk [vmem:[#allocation3 + $0x4] sm:$0x1] %vm962_vm7, %v947_v14 }
 0x36e   : > { %v949_v27 = vpop.permute.xlu1 %948 }
 0x36f   : > { %968 = vst.msk [vmem:[#allocation3 + $0x5] sm:$0x1] %vm962_vm7, %v949_v27  ;;  %v951_v43 = vpop.permute.xlu0 %950 }
 0x370   : > { %969 = vst.msk [vmem:[#allocation3 + $0x6] sm:$0x1] %vm962_vm7, %v951_v43 }
 0x372   : > { %v953_v28 = vpop.permute.xlu1 %952 }
 0x373   : > { %970 = vst.msk [vmem:[#allocation3 + $0x7] sm:$0x1] %vm962_vm7, %v953_v28 }
 0x403   : > { %v1291_v30 = vpop.f32.mrb[4].mxu1 }
 0x404   : > { %v1444_v16 = vcombine.high %v1291_v30, %v1291_v30  ;;  %v1451_v31 = vrot.slane %v1291_v30, %v4927_v7  ;;  %v3623_v44 = vpop.f32.mrb[5].mxu1 }
 0x405   : > { %v1294_v33 = vpop.f32.mrb[6].mxu1 }
 0x406   : > { %v1459_v35 = vcombine.high %v1451_v31, %v1451_v31  ;;  %v1298_v36 = vpack.c.bf16 %v1294_v33, %v1291_v30  ;;  %v3624_v37 = vpop.f32.mrb[7].mxu1  ;;  %v1484_v40 = vrot.slane %v1451_v31, %v4927_v7  ;;  %v1458_v41 = vrot.slane %v1444_v16, %v4927_v7 }
 0x407   : > { %v1468_v42 = vrot.slane %v1294_v33, %v4927_v7  ;;  %v1461_v51 = vcombine.high %v1294_v33, %v1294_v33 }
 0x408   : > { %3628 = vmatmul.mubr.msk.bf16.vlgmr.msra.gmra.mrb[0].mxu0 %vm1307_vm9, %v1298_v36  ;;  %v1491_v34 = vrot.slane %v1459_v35, %v4927_v7  ;;  %1534 = vrot.lane.b32.xlu0 %v1484_v40, %s4423_s29  ;;  %v1498_v46 = vrot.slane %v1458_v41, %v4927_v7  ;;  %v1460_v48 = vcombine.high %v1458_v41, %v1458_v41 }
 0x409   : > { %3639 = vmatprep.mubr.msk.bf16.mxu0 %vm4419_vm3, %v4418_v26  ;;  %v1512_v47 = vrot.slane %v1468_v42, %v4927_v7  ;;  %v1476_v53 = vcombine.high %v1468_v42, %v1468_v42  ;;  %v1475_v49 = vrot.slane %v1461_v51, %v4927_v7 }
 0x40a   : > { %1536 = vrot.lane.b32.xlu1 %v1491_v34, %s4423_s29  ;;  %v1505_v6 = vrot.slane %v1460_v48, %v4927_v7 }
 0x40b   : > { %v1519_v59 = vrot.slane %v1476_v53, %v4927_v7  ;;  %v1526_v61 = vrot.slane %v1475_v49, %v4927_v7  ;;  %v1477_v62 = vcombine.high %v1475_v49, %v1475_v49 }
 0x40c   : > { %1567 = vrot.lane.b32.xlu0 %v1484_v40, %s4424_s13 }
 0x40d   : > { %v1533_v0 = vrot.slane %v1477_v62, %v4927_v7  ;;  %v3559_v62 = vld [vmem:[#allocation23] ss:$0 sm:$0xff] }
 0x40e   : > { %1538 = vrot.lane.b32.xlu1 %v1498_v46, %s4423_s29 }
 0x410   : > { %1542 = vrot.lane.b32.xlu0 %v1512_v47, %s4423_s29 }
 0x412   : > { %1569 = vrot.lane.b32.xlu1 %v1491_v34, %s4424_s13 }
 0x414   : > { %1571 = vrot.lane.b32.xlu0 %v1498_v46, %s4424_s13 }
 0x416   : > { %1540 = vrot.lane.b32.xlu1 %v1505_v6, %s4423_s29 }
 0x418   : > { %1575 = vrot.lane.b32.xlu0 %v1512_v47, %s4424_s13 }
 0x41a   : > { %1544 = vrot.lane.b32.xlu1 %v1519_v59, %s4423_s29 }
 0x41c   : > { %1546 = vrot.lane.b32.xlu0 %v1526_v61, %s4423_s29 }
 0x41e   : > { %1573 = vrot.lane.b32.xlu1 %v1505_v6, %s4424_s13 }
 0x420   : > { %1579 = vrot.lane.b32.xlu0 %v1526_v61, %s4424_s13 }
 0x422   : > { %1577 = vrot.lane.b32.xlu1 %v1519_v59, %s4424_s13 }
 0x426   : > { %1548 = vrot.lane.b32.xlu1 %v1533_v0, %s4423_s29  ;;  %s4425_s29 = smov [#allocation29]  }
 0x42a   : > { %1581 = vrot.lane.b32.xlu1 %v1533_v0, %s4424_s13  ;;  %s4300_s13 = sshll.u32 %s4425_s29, 4  ;;  %s4301_s13 = int_to_ptr.vmem [resolvable:$false] %s4300_s13 }
 0x42b   : > { %s4302_s20 = scalar_lea.vmem %s4301_s13, 512  ;;  %p4303_p13 = scmp.lt.s32.totalorder %s5761_s3, %s4301_s13 }
 0x42c   : > { %p4304_p2 = scmp.lt.s32.totalorder %s4302_s20, %s4296_s30 }
 0x42e   : > { %p4305_p8 = por %p4304_p2, %p4303_p13 }
 0x430   : > { %p4306_p9 = pnand %p4305_p8, %p4299_p10 }
 0x47a   : > { %v1535_v50 = vpop.permute.xlu0 %1534 }
 0x47b   : > { %1559 = vst.msk [vmem:[#allocation6] sm:$0x3] %vm1558_vm10, %v1535_v50 }
 0x47c   : > { %v1537_v4 = vpop.permute.xlu1 %1536 }
 0x47d   : > { %1560 = vst.msk [vmem:[#allocation6 + $0x2] sm:$0x3] %vm1558_vm10, %v1537_v4 }
 0x47e   : > { %v1568_v8 = vpop.permute.xlu0 %1567 }
 0x47f   : > { %1591 = vst.msk [vmem:[#allocation7] sm:$0x3] %vm1558_vm10, %v1568_v8 }
 0x480   : > { %v1539_v9 = vpop.permute.xlu1 %1538 }
 0x481   : > { %1561 = vst.msk [vmem:[#allocation6 + $0x4] sm:$0x3] %vm1558_vm10, %v1539_v9 }
 0x482   : > { %v1543_v12 = vpop.permute.xlu0 %1542  ;;  %v1644_v22 = vld [vmem:[#allocation6] sm:$0x3] }
 0x483   : > { %1563 = vst.msk [vmem:[#allocation6 + $0x8] sm:$0x3] %vm1558_vm10, %v1543_v12  ;;  %v1655_v18 = vrot.slane %v1644_v22, %v4942_v38  ;;  %v1666_v17 = vrot.slane %v1644_v22, %v4945_v39 }
 0x484   : > { %v1570_v32 = vpop.permute.xlu1 %1569  ;;  %v1645_v23 = vld [vmem:[#allocation6 + $0x2] sm:$0x3] }
 0x485   : > { %1592 = vst.msk [vmem:[#allocation7 + $0x2] sm:$0x3] %vm1558_vm10, %v1570_v32  ;;  %1657 = vbcast.lane.b32.xlu0 %v1655_v18, 256  ;;  %1661 = vbcast.lane.b32.xlu1 %v1655_v18, 264  ;;  %v1677_v25 = vrot.slane %v1645_v23, %v4942_v38  ;;  %v1688_v27 = vrot.slane %v1645_v23, %v4945_v39 }
 0x486   : > { %v1572_v55 = vpop.permute.xlu0 %1571  ;;  %v2596_v58 = vld [vmem:[#allocation7] sm:$0x3] }
 0x487   : > { %1593 = vst.msk [vmem:[#allocation7 + $0x4] sm:$0x3] %vm1558_vm10, %v1572_v55  ;;  %v2607_v1 = vrot.slane %v2596_v58, %v4942_v38  ;;  %v2618_v21 = vrot.slane %v2596_v58, %v4945_v39 }
 0x488   : > { %v1541_v45 = vpop.permute.xlu1 %1540  ;;  %v1646_v43 = vld [vmem:[#allocation6 + $0x4] sm:$0x3] }
 0x489   : > { %1562 = vst.msk [vmem:[#allocation6 + $0x6] sm:$0x3] %vm1558_vm10, %v1541_v45  ;;  %1668 = vbcast.lane.b32.xlu0 %v1666_v17, 256  ;;  %1672 = vbcast.lane.b32.xlu1 %v1666_v17, 264  ;;  %v1699_v29 = vrot.slane %v1646_v43, %v4942_v38  ;;  %v1710_v15 = vrot.slane %v1646_v43, %v4945_v39 }
 0x48a   : > { %v1576_v13 = vpop.permute.xlu0 %1575  ;;  %v1648_v30 = vld [vmem:[#allocation6 + $0x8] sm:$0x3] }
 0x48b   : > { %1595 = vst.msk [vmem:[#allocation7 + $0x8] sm:$0x3] %vm1558_vm10, %v1576_v13  ;;  %v1743_v16 = vrot.slane %v1648_v30, %v4942_v38  ;;  %v1754_v31 = vrot.slane %v1648_v30, %v4945_v39 }
 0x48c   : > { %v1545_v19 = vpop.permute.xlu1 %1544  ;;  %v2597_v44 = vld [vmem:[#allocation7 + $0x2] sm:$0x3] }
 0x48d   : > { %1564 = vst.msk [vmem:[#allocation6 + $0xa] sm:$0x3] %vm1558_vm10, %v1545_v19  ;;  %2609 = vbcast.lane.b32.xlu0 %v2607_v1, 256  ;;  %2613 = vbcast.lane.b32.xlu1 %v2607_v1, 264  ;;  %v2629_v33 = vrot.slane %v2597_v44, %v4942_v38  ;;  %v2640_v35 = vrot.slane %v2597_v44, %v4945_v39 }
 0x48e   : > { %v1547_v2 = vpop.permute.xlu0 %1546  ;;  %v2598_v36 = vld [vmem:[#allocation7 + $0x4] sm:$0x3] }
 0x48f   : > { %1565 = vst.msk [vmem:[#allocation6 + $0xc] sm:$0x3] %vm1558_vm10, %v1547_v2  ;;  %v2651_v37 = vrot.slane %v2598_v36, %v4942_v38  ;;  %v2662_v40 = vrot.slane %v2598_v36, %v4945_v39 }
 0x490   : > { %v1574_v20 = vpop.permute.xlu1 %1573  ;;  %v1647_v46 = vld [vmem:[#allocation6 + $0x6] sm:$0x3] }
 0x491   : > { %1594 = vst.msk [vmem:[#allocation7 + $0x6] sm:$0x3] %vm1558_vm10, %v1574_v20  ;;  %2620 = vbcast.lane.b32.xlu0 %v2618_v21, 256  ;;  %2624 = vbcast.lane.b32.xlu1 %v2618_v21, 264  ;;  %v1721_v47 = vrot.slane %v1647_v46, %v4942_v38  ;;  %v1732_v48 = vrot.slane %v1647_v46, %v4945_v39 }
 0x492   : > { %v1580_v11 = vpop.permute.xlu0 %1579  ;;  %v2600_v41 = vld [vmem:[#allocation7 + $0x8] sm:$0x3] }
 0x493   : > { %1597 = vst.msk [vmem:[#allocation7 + $0xc] sm:$0x3] %vm1558_vm10, %v1580_v11  ;;  %v2695_v34 = vrot.slane %v2600_v41, %v4942_v38  ;;  %v2706_v42 = vrot.slane %v2600_v41, %v4945_v39 }
 0x494   : > { %v1578_v24 = vpop.permute.xlu1 %1577  ;;  %v1649_v51 = vld [vmem:[#allocation6 + $0xa] sm:$0x3] }
 0x495   : > { %1596 = vst.msk [vmem:[#allocation7 + $0xa] sm:$0x3] %vm1558_vm10, %v1578_v24  ;;  %1679 = vbcast.lane.b32.xlu0 %v1677_v25, 256  ;;  %1683 = vbcast.lane.b32.xlu1 %v1677_v25, 264  ;;  %v1765_v53 = vrot.slane %v1649_v51, %v4942_v38  ;;  %v1776_v6 = vrot.slane %v1649_v51, %v4945_v39 }
 0x496   : > { %v1650_v49 = vld [vmem:[#allocation6 + $0xc] sm:$0x3] }
 0x497   : > { %v1787_v59 = vrot.slane %v1650_v49, %v4942_v38  ;;  %v1798_v61 = vrot.slane %v1650_v49, %v4945_v39 }
 0x498   : > { %v1549_v14 = vpop.permute.xlu1 %1548  ;;  %v2599_v0 = vld [vmem:[#allocation7 + $0x6] sm:$0x3] }
 0x499   : > { %1566 = vst.msk [vmem:[#allocation6 + $0xe] sm:$0x3] %vm1558_vm10, %v1549_v14  ;;  %1690 = vbcast.lane.b32.xlu0 %v1688_v27, 256  ;;  %1694 = vbcast.lane.b32.xlu1 %v1688_v27, 264  ;;  %v2673_v9 = vrot.slane %v2599_v0, %v4942_v38  ;;  %v2684_v17 = vrot.slane %v2599_v0, %v4945_v39 }
 0x49a   : > { %v2602_v21 = vld [vmem:[#allocation7 + $0xc] sm:$0x3] }
 0x49b   : > { %v2739_v23 = vrot.slane %v2602_v21, %v4942_v38  ;;  %v2750_v30 = vrot.slane %v2602_v21, %v4945_v39 }
 0x49c   : > { %v1582_v28 = vpop.permute.xlu1 %1581  ;;  %v2601_v58 = vld [vmem:[#allocation7 + $0xa] sm:$0x3] }
 0x49d   : > { %1598 = vst.msk [vmem:[#allocation7 + $0xe] sm:$0x3] %vm1558_vm10, %v1582_v28  ;;  %1701 = vbcast.lane.b32.xlu0 %v1699_v29, 256  ;;  %1705 = vbcast.lane.b32.xlu1 %v1699_v29, 264  ;;  %v2717_v2 = vrot.slane %v2601_v58, %v4942_v38  ;;  %v2728_v20 = vrot.slane %v2601_v58, %v4945_v39 }
 0x4a0   : > { %v1651_v11 = vld [vmem:[#allocation6 + $0xe] sm:$0x3] }
 0x4a1   : > { %1712 = vbcast.lane.b32.xlu0 %v1710_v15, 256  ;;  %1716 = vbcast.lane.b32.xlu1 %v1710_v15, 264  ;;  %v1809_v27 = vrot.slane %v1651_v11, %v4942_v38  ;;  %v1820_v28 = vrot.slane %v1651_v11, %v4945_v39 }
 0x4a5   : > { %1745 = vbcast.lane.b32.xlu0 %v1743_v16, 256  ;;  %1749 = vbcast.lane.b32.xlu1 %v1743_v16, 264  ;;  %v2603_v16 = vld [vmem:[#allocation7 + $0xe] sm:$0x3] }
 0x4a9   : > { %1756 = vbcast.lane.b32.xlu0 %v1754_v31, 256  ;;  %1760 = vbcast.lane.b32.xlu1 %v1754_v31, 264 }
 0x4ad   : > { %2631 = vbcast.lane.b32.xlu0 %v2629_v33, 256  ;;  %2635 = vbcast.lane.b32.xlu1 %v2629_v33, 264 }
 0x4b1   : > { %2642 = vbcast.lane.b32.xlu0 %v2640_v35, 256  ;;  %2646 = vbcast.lane.b32.xlu1 %v2640_v35, 264 }
 0x4b5   : > { %2653 = vbcast.lane.b32.xlu0 %v2651_v37, 256  ;;  %2657 = vbcast.lane.b32.xlu1 %v2651_v37, 264  ;;  %v2761_v37 = vrot.slane %v2603_v16, %v4942_v38 }
 0x4b9   : > { %2664 = vbcast.lane.b32.xlu0 %v2662_v40, 256  ;;  %2668 = vbcast.lane.b32.xlu1 %v2662_v40, 264 }
 0x4bd   : > { %2697 = vbcast.lane.b32.xlu0 %v2695_v34, 256  ;;  %2701 = vbcast.lane.b32.xlu1 %v2695_v34, 264 }
 0x4c1   : > { %2708 = vbcast.lane.b32.xlu0 %v2706_v42, 256  ;;  %2712 = vbcast.lane.b32.xlu1 %v2706_v42, 264 }
 0x4c5   : > { %1723 = vbcast.lane.b32.xlu0 %v1721_v47, 256  ;;  %1727 = vbcast.lane.b32.xlu1 %v1721_v47, 264 }
 0x4c9   : > { %1734 = vbcast.lane.b32.xlu0 %v1732_v48, 256  ;;  %1738 = vbcast.lane.b32.xlu1 %v1732_v48, 264 }
 0x4cd   : > { %1767 = vbcast.lane.b32.xlu0 %v1765_v53, 256  ;;  %1771 = vbcast.lane.b32.xlu1 %v1765_v53, 264 }
 0x4d1   : > { %1778 = vbcast.lane.b32.xlu0 %v1776_v6, 256  ;;  %1782 = vbcast.lane.b32.xlu1 %v1776_v6, 264  ;;  %v2772_v6 = vrot.slane %v2603_v16, %v4945_v39 }
 0x4d5   : > { %1789 = vbcast.lane.b32.xlu0 %v1787_v59, 256  ;;  %1793 = vbcast.lane.b32.xlu1 %v1787_v59, 264 }
 0x4d9   : > { %1800 = vbcast.lane.b32.xlu0 %v1798_v61, 256  ;;  %1804 = vbcast.lane.b32.xlu1 %v1798_v61, 264 }
 0x4db   : > { %v1349_v50 = vpop.f32.mrb[0].mxu0 }
 0x4dc   : > { %v1350_v4 = vadd.f32 %v3559_v62, %v1349_v50  ;;  %v3629_v8 = vpop.f32.mrb[1].mxu0 }
 0x4dd   : > { %v1352_v12 = vpop.f32.mrb[2].mxu0  ;;  %2675 = vbcast.lane.b32.xlu0 %v2673_v9, 256  ;;  %2679 = vbcast.lane.b32.xlu1 %v2673_v9, 264 }
 0x4de   : > { %v1358_v22 = vand.u32 2147483647, %v1350_v4  ;;  %v1353_v32 = vadd.f32 %v3559_v62, %v1352_v12  ;;  %v3630_v18 = vpop.f32.mrb[3].mxu0  ;;  %v1356_v44 = vmax.f32 %v1350_v4, 0.0 }
 0x4e0   : > { %v1360_v55 = vsub.f32 0.0, %v1358_v22  ;;  %v1359_v45 = vand.u32 2147483647, %v1353_v32  ;;  %v1357_v34 = vmax.f32 %v1353_v32, 0.0 }
 0x4e1   : > { %2686 = vbcast.lane.b32.xlu0 %v2684_v17, 256  ;;  %2690 = vbcast.lane.b32.xlu1 %v2684_v17, 264  ;;  %v5239_v17 = vld [vmem:[#allocation25] sm:$0xff] }
 0x4e2   : > { %v1362_v13 = vmul.f32 1.442695, %v1360_v55  ;;  %v1361_v19 = vsub.f32 0.0, %v1359_v45 }
 0x4e4   : > { %3880 = vpow2.f32 %v1362_v13  ;;  %v1364_v1 = vmul.f32 1.442695, %v1361_v19  ;;  %v5241_v13 = vld [vmem:[#allocation25 + $0x8] sm:$0xff] }
 0x4e5   : > { %2719 = vbcast.lane.b32.xlu0 %v2717_v2, 256  ;;  %2723 = vbcast.lane.b32.xlu1 %v2717_v2, 264 }
 0x4e6   : > { %3882 = vpow2.f32 %v1364_v1 }
 0x4e9   : > { %2730 = vbcast.lane.b32.xlu0 %v2728_v20, 256  ;;  %2734 = vbcast.lane.b32.xlu1 %v2728_v20, 264 }
 0x4ed   : > { %2741 = vbcast.lane.b32.xlu0 %v2739_v23, 256  ;;  %2745 = vbcast.lane.b32.xlu1 %v2739_v23, 264 }
 0x4ee   : > { %v3881_v24 = vpop.eup %3880 }
 0x4ef   : > { %v1366_v25 = vadd.f32 1.0, %v3881_v24 }
 0x4f0   : > { %v3883_v14 = vpop.eup %3882 }
 0x4f1   : > { %3884 = vlog2.f32 %v1366_v25  ;;  %v1367_v43 = vadd.f32 1.0, %v3883_v14  ;;  %1815 = vbcast.lane.b32.xlu1 %v1809_v27, 264  ;;  %1811 = vbcast.lane.b32.xlu0 %v1809_v27, 256 }
 0x4f3   : > { %3886 = vlog2.f32 %v1367_v43 }
 0x4f5   : > { %1826 = vbcast.lane.b32.xlu1 %v1820_v28, 264  ;;  %1822 = vbcast.lane.b32.xlu0 %v1820_v28, 256 }
 0x4f7   : > { %v5187_v29 = vpop.permute.xlu0 %1657  ;;  %v5189_v15 = vpop.permute.xlu1 %1661 }
 0x4f9   : > { %2756 = vbcast.lane.b32.xlu1 %v2750_v30, 264  ;;  %2752 = vbcast.lane.b32.xlu0 %v2750_v30, 256 }
 0x4fb   : > { %v3885_v31 = vpop.eup %3884  ;;  %v5192_v35 = vpop.permute.xlu0 %1668 }
 0x4fc   : > { %v1369_v33 = vmul.f32 0.6931472, %v3885_v31  ;;  %v5194_v36 = vpop.permute.xlu1 %1672 }
 0x4fd   : > { %v3887_v40 = vpop.eup %3886  ;;  %2767 = vbcast.lane.b32.xlu1 %v2761_v37, 264  ;;  %2763 = vbcast.lane.b32.xlu0 %v2761_v37, 256 }
 0x4fe   : > { %v1372_v41 = vadd.f32 %v1369_v33, %v1356_v44  ;;  %v1371_v42 = vmul.f32 0.6931472, %v3887_v40 }
 0x4ff   : > { %v5198_v51 = vpop.permute.xlu0 %2609 }
 0x500   : > { %v1376_v46 = vcombine.high %v1372_v41, %v1372_v41  ;;  %v1383_v47 = vrot.slane %v1372_v41, %v4927_v7  ;;  %v1373_v48 = vadd.f32 %v1371_v42, %v1357_v34  ;;  %v5200_v53 = vpop.permute.xlu1 %2613 }
 0x501   : > { %2778 = vbcast.lane.b32.xlu1 %v2772_v6, 264  ;;  %2774 = vbcast.lane.b32.xlu0 %v2772_v6, 256 }
 0x502   : > { %v1390_v49 = vrot.slane %v1376_v46, %v4927_v7  ;;  %v1391_v59 = vcombine.high %v1383_v47, %v1383_v47  ;;  %1418 = vst.msk [vmem:[#allocation4] sm:$0x3] %vm974_vm5, %v1383_v47  ;;  %v1426_v61 = vmul.f32 %v1383_v47, %v5069_v52  ;;  %v1393_v62 = vcombine.high %v1373_v48, %v1373_v48 }
 0x503   : > { %v1400_v0 = vrot.slane %v1373_v48, %v4927_v7  ;;  %v5213_v9 = vpop.permute.xlu0 %2620 }
 0x504   : > { %v1392_v50 = vcombine.high %v1390_v49, %v1390_v49  ;;  %1419 = vst.msk [vmem:[#allocation4 + $0x2] sm:$0x3] %vm974_vm5, %v1391_v59  ;;  %1420 = vst.msk [vmem:[#allocation4 + $0x4] sm:$0x3] %vm974_vm5, %v1390_v49  ;;  %v1427_v4 = vmul.f32 %v1391_v59, %v5071_v56  ;;  %v1428_v39 = vmul.f32 %v1390_v49, %v5073_v54  ;;  %v5215_v52 = vpop.permute.xlu1 %2624 }
 0x505   : > { %1434 = vst.msk [vmem:[#allocation2] sm:$0x3] %vm974_vm5, %v1426_v61  ;;  %v1407_v8 = vrot.slane %v1393_v62, %v4927_v7  ;;  %v1408_v12 = vcombine.high %v1400_v0, %v1400_v0  ;;  %1422 = vst.msk [vmem:[#allocation4 + $0x8] sm:$0x3] %vm974_vm5, %v1400_v0  ;;  %v1430_v22 = vmul.f32 %v1400_v0, %v5081_v63 }
 0x506   : > { %1421 = vst.msk [vmem:[#allocation4 + $0x6] sm:$0x3] %vm974_vm5, %v1392_v50  ;;  %v1429_v32 = vmul.f32 %v1392_v50, %v5077_v60  ;;  %1435 = vst.msk [vmem:[#allocation2 + $0x2] sm:$0x3] %vm974_vm5, %v1427_v4 }
 0x507   : > { %1436 = vst.msk [vmem:[#allocation2 + $0x4] sm:$0x3] %vm974_vm5, %v1428_v39  ;;  %v1409_v56 = vcombine.high %v1407_v8, %v1407_v8  ;;  %1424 = vst.msk [vmem:[#allocation4 + $0xc] sm:$0x3] %vm974_vm5, %v1407_v8  ;;  %v1432_v54 = vmul.f32 %v1407_v8, %v5093_v10  ;;  %v1431_v18 = vmul.f32 %v1408_v12, %v5086_v3  ;;  %v5232_v63 = vpop.permute.xlu0 %1679 }
 0x508   : > { %1423 = vst.msk [vmem:[#allocation4 + $0xa] sm:$0x3] %vm974_vm5, %v1408_v12  ;;  %1438 = vst.msk [vmem:[#allocation2 + $0x8] sm:$0x3] %vm974_vm5, %v1430_v22  ;;  %v5234_v55 = vpop.permute.xlu1 %1683 }
 0x509   : > { %1437 = vst.msk [vmem:[#allocation2 + $0x6] sm:$0x3] %vm974_vm5, %v1429_v32  ;;  %1425 = vst.msk [vmem:[#allocation4 + $0xe] sm:$0x3] %vm974_vm5, %v1409_v56  ;;  %v1433_v60 = vmul.f32 %v1409_v56, %v5098_v5 }
 0x50a   : > { %1440 = vst.msk [vmem:[#allocation2 + $0xc] sm:$0x3] %vm974_vm5, %v1432_v54  ;;  %1439 = vst.msk [vmem:[#allocation2 + $0xa] sm:$0x3] %vm974_vm5, %v1431_v18 }
 0x50b   : > { %v3562_v10 = vld.sshfl [vmem:[#allocation4] sm:$0x11 pattern:$0x75316420]  ;;  %1441 = vst.msk [vmem:[#allocation2 + $0xe] sm:$0x3] %vm974_vm5, %v1433_v60  ;;  %v5246_v21 = vpop.permute.xlu0 %1690 }
 0x50c   : > { %v1850_v3 = vrot.slane %v3562_v10, %v4961_v57  ;;  %v1843_v45 = vcombine.high %v3562_v10, %v3562_v10  ;;  %v3570_v58 = vld.sshfl [vmem:[#allocation2] sm:$0x11 pattern:$0x75316420]  ;;  %v5248_v23 = vpop.permute.xlu1 %1694 }
 0x50d   : > { %v2210_v19 = vrot.slane %v3570_v58, %v4961_v57  ;;  %v2203_v2 = vcombine.high %v3570_v58, %v3570_v58  ;;  %v3563_v20 = vld.sshfl [vmem:[#allocation4 + $0x2] sm:$0x11 pattern:$0x75316420] }
 0x50e   : > { %v2015_v5 = vrot.slane %v1850_v3, %v4942_v38  ;;  %v1857_v1 = vrot.slane %v1843_v45, %v4961_v57  ;;  %v1872_v11 = vrot.slane %v3563_v20, %v4961_v57  ;;  %v1865_v24 = vcombine.high %v3563_v20, %v3563_v20  ;;  %v3571_v43 = vld.sshfl [vmem:[#allocation2 + $0x2] sm:$0x11 pattern:$0x75316420] }
 0x50f   : > { %v2375_v28 = vrot.slane %v2210_v19, %v4942_v38  ;;  %v2217_v33 = vrot.slane %v2203_v2, %v4961_v57  ;;  %v1702_v37 = vpop.permute.xlu0 %1701  ;;  %v2232_v46 = vrot.slane %v3571_v43, %v4961_v57  ;;  %v3564_v47 = vld.sshfl [vmem:[#allocation4 + $0x4] sm:$0x11 pattern:$0x75316420]  ;;  %v2225_v32 = vcombine.high %v3571_v43, %v3571_v43  ;;  %v2485_v43 = vld [vmem:[#allocation9 + $0x8] sm:$0xff] }
 0x510   : > { %v2092_v25 = vmul.f32 %v2015_v5, %v5239_v17  ;;  %v2093_v14 = vmul.f32 %v2015_v5, %v5241_v13  ;;  %v2019_v27 = vrot.slane %v1857_v1, %v4942_v38  ;;  %v2023_v30 = vrot.slane %v1872_v11, %v4942_v38  ;;  %v5258_v40 = vpop.permute.xlu1 %1705  ;;  %v3572_v49 = vld.sshfl [vmem:[#allocation2 + $0x4] sm:$0x11 pattern:$0x75316420] }
 0x511   : > { %v1879_v16 = vrot.slane %v1865_v24, %v4961_v57  ;;  %v5267_v59 = vmul.f32 %v2375_v28, %v5187_v29  ;;  %v5270_v0 = vmul.f32 %v2375_v28, %v5189_v15  ;;  %v2379_v50 = vrot.slane %v2217_v33, %v4942_v38  ;;  %v2484_v11 = vld [vmem:[#allocation9] sm:$0xff] }
 0x512   : > { %v2124_v31 = vmul.f32 1.442695, %v2092_v25  ;;  %v2126_v44 = vmul.f32 1.442695, %v2093_v14  ;;  %v2094_v41 = vmul.f32 %v2019_v27, %v5239_v17  ;;  %v2095_v34 = vmul.f32 %v2019_v27, %v5241_v13 }
 0x513   : > { %v2096_v42 = vmul.f32 %v2023_v30, %v5239_v17  ;;  %v2097_v48 = vmul.f32 %v2023_v30, %v5241_v13  ;;  %v2027_v6 = vrot.slane %v1879_v16, %v4942_v38  ;;  %v5273_v8 = vpop.permute.xlu0 %1712  ;;  %v2383_v22 = vrot.slane %v2232_v46, %v4942_v38  ;;  %v5294_v27 = vld.sshfl [vmem:[#allocation2 + $0x8] sm:$0x11 pattern:$0x75316420] }
 0x514   : > { %3888 = vpow2.f32 %v2124_v31  ;;  %v2128_v61 = vmul.f32 1.442695, %v2094_v41  ;;  %v2130_v62 = vmul.f32 1.442695, %v2095_v34  ;;  %v5275_v12 = vpop.permute.xlu1 %1716  ;;  %v1894_v15 = vrot.slane %v3564_v47, %v4961_v57 }
 0x515   : > { %3890 = vpow2.f32 %v2126_v44  ;;  %v2132_v4 = vmul.f32 1.442695, %v2096_v42  ;;  %v2134_v39 = vmul.f32 1.442695, %v2097_v48  ;;  %v2098_v29 = vmul.f32 %v2027_v6, %v5239_v17  ;;  %v2486_v48 = vld [vmem:[#allocation9 + $0x10] sm:$0xff] }
 0x516   : > { %3892 = vpow2.f32 %v2128_v61  ;;  %v2099_v56 = vmul.f32 %v2027_v6, %v5241_v13  ;;  %v2254_v54 = vrot.slane %v3572_v49, %v4961_v57  ;;  %v2239_v60 = vrot.slane %v2225_v32, %v4961_v57 }
 0x517   : > { %3894 = vpow2.f32 %v2130_v62  ;;  %v2136_v18 = vmul.f32 1.442695, %v2098_v29  ;;  %v1887_v10 = vcombine.high %v3564_v47, %v3564_v47  ;;  %v2031_v45 = vrot.slane %v1894_v15, %v4942_v38  ;;  %v5285_v5 = vpop.permute.xlu0 %1745 }
 0x518   : > { %3896 = vpow2.f32 %v2132_v4  ;;  %v2138_v3 = vmul.f32 1.442695, %v2099_v56  ;;  %v2391_v58 = vrot.slane %v2254_v54, %v4942_v38  ;;  %v5287_v19 = vpop.permute.xlu1 %1749  ;;  %v2454_v1 = vmul.f32 %v2379_v50, %v5192_v35 }
 0x519   : > { %3898 = vpow2.f32 %v2134_v39  ;;  %v1901_v2 = vrot.slane %v1887_v10, %v4961_v57  ;;  %v2247_v20 = vcombine.high %v3572_v49, %v3572_v49  ;;  %v2387_v24 = vrot.slane %v2239_v60, %v4942_v38  ;;  %v5326_v10 = vld.sshfl [vmem:[#allocation4 + $0x8] sm:$0x11 pattern:$0x75316420] }
 0x51a   : > { %3900 = vpow2.f32 %v2136_v18  ;;  %v2100_v25 = vmul.f32 %v2031_v45, %v5239_v17  ;;  %v2101_v14 = vmul.f32 %v2031_v45, %v5241_v13  ;;  %v2455_v28 = vmul.f32 %v2379_v50, %v5194_v36  ;;  %v5315_v50 = vld.sshfl [vmem:[#allocation4 + $0x6] sm:$0x11 pattern:$0x75316420] }
 0x51b   : > { %3902 = vpow2.f32 %v2138_v3  ;;  %v2456_v30 = vmul.f32 %v2383_v22, %v5232_v63  ;;  %v5299_v35 = vmul.f32 %v2383_v22, %v5234_v55  ;;  %v2035_v16 = vrot.slane %v1901_v2, %v4942_v38  ;;  %v5305_v42 = vpop.permute.xlu0 %1756  ;;  %v3828_v3 = vld [vmem:[#allocation28] sm:$0xff]  }
 0x51c   : > { %v2140_v44 = vmul.f32 1.442695, %v2100_v25  ;;  %v5302_v33 = vmul.f32 %v2391_v58, %v1702_v37  ;;  %v2142_v41 = vmul.f32 1.442695, %v2101_v14  ;;  %v2261_v34 = vrot.slane %v2247_v20, %v4961_v57  ;;  %v5307_v46 = vpop.permute.xlu1 %1760  ;;  %v2487_v37 = vld [vmem:[#allocation9 + $0x18] sm:$0xff]  ;;  %3632 = vmatpush3.bf16.msra.mxu0 %v3828_v3 }
 0x51d   : > { %v2102_v63 = vmul.f32 %v2035_v16, %v5239_v17  ;;  %v2103_v55 = vmul.f32 %v2035_v16, %v5241_v13  ;;  %v2298_v6 = vrot.slane %v5294_v27, %v4961_v57  ;;  %v2458_v61 = vmul.f32 %v2387_v24, %v5246_v21  ;;  %v3829_v14 = vld [vmem:[#allocation28 + $0x8] sm:$0xff]   ;;  %3633 = vmatprep.subr.bf16.mxu0 %v4418_v26 }
 0x51e   : > { %v3889_v31 = vpop.eup %3888  ;;  %3904 = vpow2.f32 %v2140_v44  ;;  %v2395_v62 = vrot.slane %v2261_v34, %v4942_v38  ;;  %v2459_v54 = vmul.f32 %v2387_v24, %v5248_v23  ;;  %v2291_v21 = vcombine.high %v5294_v27, %v5294_v27 }
 0x51f   : > { %v3891_v47 = vpop.eup %3890  ;;  %v2488_v36 = vmul.f32 %v3889_v31, %v2484_v11  ;;  %3906 = vpow2.f32 %v2142_v41  ;;  %v2144_v22 = vmul.f32 1.442695, %v2102_v63  ;;  %v2146_v29 = vmul.f32 1.442695, %v2103_v55  ;;  %v5322_v18 = vpop.permute.xlu0 %2631 }
 0x520   : > { %v2489_v49 = vmul.f32 %v3891_v47, %v2485_v43  ;;  %v3893_v4 = vpop.eup %3892  ;;  %v5324_v60 = vpop.permute.xlu1 %2635  ;;  %v5330_v2 = vmul.f32 %v2391_v58, %v5258_v40  ;;  %v2407_v23 = vrot.slane %v2298_v6, %v4942_v38  ;;  %v5337_v25 = vmul.f32 %v2395_v62, %v5273_v8  ;;  %3634 = vmatpush3.bf16.msra.mxu0 %v3829_v14 }
 0x521   : > { %v2492_v39 = vadd.f32 %v2488_v36, %v5267_v59  ;;  %v3895_v32 = vpop.eup %3894  ;;  %v2490_v15 = vmul.f32 %v3893_v4, %v2486_v48  ;;  %3908 = vpow2.f32 %v2144_v22  ;;  %v1916_v58 = vrot.slane %v5315_v50, %v4961_v57  ;;  %3635 = vmatprep.subr.bf16.mxu0 %v4418_v26 }
 0x522   : > { %v2493_v56 = vadd.f32 %v2489_v49, %v5270_v0  ;;  %v3897_v59 = vpop.eup %3896  ;;  %v2491_v45 = vmul.f32 %v3895_v32, %v2487_v37  ;;  %v5333_v0 = vld.sshfl [vmem:[#allocation2 + $0x6] sm:$0x11 pattern:$0x75316420]  ;;  %3910 = vpow2.f32 %v2146_v29  ;;  %v1938_v16 = vrot.slane %v5326_v10, %v4961_v57 }
 0x523   : > { %2496 = vst.msk [vmem:[#allocation8] sm:$0xff] %vm1253_vm6, %v2492_v39  ;;  %v3899_v20 = vpop.eup %3898  ;;  %v2494_v11 = vadd.f32 %v2490_v15, %v2454_v1  ;;  %v2500_v24 = vmul.f32 %v3897_v59, %v2492_v39  ;;  %v2305_v44 = vrot.slane %v2291_v21, %v4961_v57  ;;  %v5346_v41 = vpop.permute.xlu0 %2642  ;;  %v2039_v48 = vrot.slane %v1916_v58, %v4942_v38  ;;  %v3830_v37 = vld [vmem:[#allocation28 + $0x10] sm:$0xff]  }
 0x524   : > { %2497 = vst.msk [vmem:[#allocation8 + $0x8] sm:$0xff] %vm1253_vm6, %v2493_v56  ;;  %v3901_v27 = vpop.eup %3900  ;;  %v2495_v43 = vadd.f32 %v2491_v45, %v2455_v28  ;;  %v2501_v40 = vmul.f32 %v3899_v20, %v2493_v56  ;;  %v5348_v34 = vpop.permute.xlu1 %2646  ;;  %v2276_v28 = vrot.slane %v5333_v0, %v4961_v57  ;;  %v2047_v63 = vrot.slane %v1938_v16, %v4942_v38 }
 0x525   : > { %v3903_v31 = vpop.eup %3902  ;;  %2498 = vst.msk [vmem:[#allocation8 + $0x10] sm:$0xff] %vm1253_vm6, %v2494_v11  ;;  %v2504_v1 = vadd.f32 %v2500_v24, %v2456_v30  ;;  %v2502_v8 = vmul.f32 %v3901_v27, %v2494_v11  ;;  %v5358_v55 = vmul.f32 %v2395_v62, %v5275_v12  ;;  %v5361_v6 = vmul.f32 %v2407_v23, %v5285_v5 }
 0x526   : > { %2499 = vst.msk [vmem:[#allocation8 + $0x18] sm:$0xff] %vm1253_vm6, %v2495_v43  ;;  %v2505_v47 = vadd.f32 %v2501_v40, %v5299_v35  ;;  %v2503_v36 = vmul.f32 %v3903_v31, %v2495_v43  ;;  %v5364_v49 = vmul.f32 %v2407_v23, %v5287_v19  ;;  %v2104_v4 = vmul.f32 %v2039_v48, %v5239_v17 }
 0x527   : > { %2509 = vst.msk [vmem:[#allocation8 + $0x20] sm:$0xff] %vm1253_vm6, %v2504_v1  ;;  %v2506_v30 = vadd.f32 %v2502_v8, %v2458_v61  ;;  %v2108_v39 = vmul.f32 %v2047_v63, %v5239_v17  ;;  %v2105_v61 = vmul.f32 %v2039_v48, %v5241_v13  ;;  %v5373_v5 = vrot.slane %v2305_v44, %v4942_v38  ;;  %v5375_v19 = vpop.permute.xlu0 %2653 }
 0x528   : > { %2510 = vst.msk [vmem:[#allocation8 + $0x28] sm:$0xff] %vm1253_vm6, %v2505_v47  ;;  %v2507_v35 = vadd.f32 %v2503_v36, %v2459_v54  ;;  %v3905_v12 = vpop.eup %3904  ;;  %v5377_v22 = vpop.permute.xlu1 %2657  ;;  %v5380_v29 = vrot.slane %v2276_v28, %v4942_v38  ;;  %v2109_v32 = vmul.f32 %v2047_v63, %v5241_v13  ;;  %v1909_v56 = vcombine.high %v5315_v50, %v5315_v50  ;;  %v3831_v50 = vld [vmem:[#allocation28 + $0x18] sm:$0xff]  }
 0x529   : > { %2511 = vst.msk [vmem:[#allocation8 + $0x30] sm:$0xff] %vm1253_vm6, %v2506_v30  ;;  %v3907_v15 = vpop.eup %3906  ;;  %v2513_v3 = vmul.f32 %v3905_v12, %v2504_v1  ;;  %v2148_v59 = vmul.f32 1.442695, %v2104_v4  ;;  %v1931_v45 = vcombine.high %v5326_v10, %v5326_v10  ;;  %v2156_v11 = vmul.f32 1.442695, %v2108_v39  ;;  %3636 = vmatpush3.bf16.msra.mxu0 %v3830_v37 }
 0x52a   : > { %v2780_v62 = vld [vmem:[#allocation8] sm:$0xff]  ;;  %2512 = vst.msk [vmem:[#allocation8 + $0x38] sm:$0xff] %vm1253_vm6, %v2507_v35  ;;  %v2514_v20 = vmul.f32 %v3907_v15, %v2505_v47  ;;  %v2269_v24 = vcombine.high %v5333_v0, %v5333_v0  ;;  %v2150_v40 = vmul.f32 1.442695, %v2105_v61  ;;  %3637 = vmatprep.subr.bf16.mxu0 %v4418_v26  ;;  %v2158_v36 = vmul.f32 1.442695, %v2109_v32 }
 0x52b   : > { %v2812_v54 = vmul.f32 %v2780_v62, %v5198_v51  ;;  %v2781_v21 = vld [vmem:[#allocation8 + $0x8] sm:$0xff]  ;;  %v3909_v14 = vpop.eup %3908  ;;  %v5394_v43 = vadd.f32 %v2513_v3, %v5302_v33  ;;  %3912 = vpow2.f32 %v2148_v59  ;;  %v5402_v8 = vpop.permute.xlu0 %2664  ;;  %v1945_v15 = vrot.slane %v1931_v45, %v4961_v57 }
 0x52c   : > { %v2813_v23 = vmul.f32 %v2781_v21, %v5200_v53  ;;  %v2782_v27 = vld [vmem:[#allocation8 + $0x10] sm:$0xff]  ;;  %v3911_v10 = vpop.eup %3910  ;;  %v5400_v31 = vadd.f32 %v2514_v20, %v5330_v2  ;;  %v2515_v1 = vmul.f32 %v3909_v14, %v2506_v30  ;;  %v5404_v44 = vpop.permute.xlu1 %2668  ;;  %v1923_v30 = vrot.slane %v1909_v56, %v4961_v57 }
 0x52d   : > { %v2844_v51 = vsel %vm1253_vm6, %v2812_v54, 0.0  ;;  %v2814_v58 = vmul.f32 %v2782_v27, %v5213_v9  ;;  %v2783_v16 = vld [vmem:[#allocation8 + $0x18] sm:$0xff]  ;;  %2522 = vst.msk [vmem:[#allocation8 + $0x40] sm:$0xff] %vm1253_vm6, %v5394_v43  ;;  %v2516_v26 = vmul.f32 %v3911_v10, %v2507_v35  ;;  %3638 = vmatpush3.bf16.msra.mxu0 %v3831_v50  ;;  %3914 = vpow2.f32 %v2150_v40 }
 0x52e   : > { %v2845_v53 = vsel %vm1253_vm6, %v2813_v23, 0.0  ;;  %v2815_v28 = vmul.f32 %v2783_v16, %v5215_v52  ;;  %v2784_v47 = vld [vmem:[#allocation8 + $0x20] sm:$0xff]  ;;  %2523 = vst.msk [vmem:[#allocation8 + $0x48] sm:$0xff] %vm1253_vm6, %v5400_v31  ;;  %v5413_v2 = vadd.f32 %v2515_v1, %v5337_v25  ;;  %v5437_v3 = vrot.slane %v1923_v30, %v4942_v38 }
 0x52f   : > { %v2846_v33 = vadd.f32 %v2845_v53, %v2844_v51  ;;  %v2853_v9 = vsel %vm1253_vm6, %v2814_v58, 0.0  ;;  %v2816_v48 = vmul.f32 %v2784_v47, %v5322_v18  ;;  %v2785_v63 = vld [vmem:[#allocation8 + $0x28] sm:$0xff]  ;;  %v5419_v35 = vadd.f32 %v2516_v26, %v5358_v55  ;;  %v5426_v62 = vpop.permute.xlu0 %2697 }
 0x530   : > { %v2854_v37 = vsel %vm1253_vm6, %v2815_v28, 0.0  ;;  %v2817_v4 = vmul.f32 %v2785_v63, %v5324_v60  ;;  %v2786_v39 = vld [vmem:[#allocation8 + $0x30] sm:$0xff]  ;;  %2524 = vst.msk [vmem:[#allocation8 + $0x50] sm:$0xff] %vm1253_vm6, %v5413_v2  ;;  %v5428_v32 = vpop.permute.xlu1 %2701  ;;  %3916 = vpow2.f32 %v2156_v11  ;;  %v5441_v20 = vrot.slane %v1945_v15, %v4942_v38 }
 0x531   : > { %v2847_v52 = vrot.slane %v2846_v33, 4  ;;  %v2855_v61 = vadd.f32 %v2854_v37, %v2853_v9  ;;  %v2862_v25 = vsel %vm1253_vm6, %v2816_v48, 0.0  ;;  %v2818_v18 = vmul.f32 %v2786_v39, %v5346_v41  ;;  %v2787_v12 = vld [vmem:[#allocation8 + $0x38] sm:$0xff]  ;;  %2525 = vst.msk [vmem:[#allocation8 + $0x58] sm:$0xff] %vm1253_vm6, %v5419_v35 }
 0x532   : > { %v2863_v60 = vsel %vm1253_vm6, %v2817_v4, 0.0  ;;  %v2819_v55 = vmul.f32 %v2787_v12, %v5348_v34  ;;  %v2106_v40 = vmul.f32 %v5437_v3, %v5239_v17  ;;  %3918 = vpow2.f32 %v2158_v36 }
 0x533   : > { %v2848_v56 = vadd.f32 %v2847_v52, %v2846_v33  ;;  %v2856_v54 = vrot.slane %v2855_v61, 4  ;;  %v2864_v21 = vadd.f32 %v2863_v60, %v2862_v25  ;;  %v2871_v41 = vsel %vm1253_vm6, %v2818_v18, 0.0  ;;  %v5443_v45 = vpop.permute.xlu0 %2708 }
 0x534   : > { %v2872_v23 = vsel %vm1253_vm6, %v2819_v55, 0.0  ;;  %v2788_v51 = vld [vmem:[#allocation8 + $0x40] sm:$0xff]  ;;  %v5445_v27 = vpop.permute.xlu1 %2712  ;;  %v2110_v11 = vmul.f32 %v5441_v20, %v5239_v17  ;;  %v2152_v30 = vmul.f32 1.442695, %v2106_v40 }
 0x535   : > { %v2849_v59 = vrot.slane %v2848_v56, 2  ;;  %v2857_v50 = vadd.f32 %v2856_v54, %v2855_v61  ;;  %v2865_v14 = vrot.slane %v2864_v21, 4  ;;  %v2873_v34 = vadd.f32 %v2872_v23, %v2871_v41  ;;  %v3913_v10 = vpop.eup %3912  ;;  %v2789_v16 = vld [vmem:[#allocation8 + $0x48] sm:$0xff] }
 0x536   : > { %v2820_v58 = vmul.f32 %v2788_v51, %v5375_v19  ;;  %v2821_v26 = vmul.f32 %v2789_v16, %v5377_v22  ;;  %v2526_v63 = vmul.f32 %v3913_v10, %v5394_v43  ;;  %3920 = vpow2.f32 %v2152_v30 }
 0x537   : > { %v2850_v53 = vadd.f32 %v2849_v59, %v2848_v56  ;;  %v2858_v1 = vrot.slane %v2857_v50, 2  ;;  %v2866_v33 = vadd.f32 %v2865_v14, %v2864_v21  ;;  %v2874_v28 = vrot.slane %v2873_v34, 4  ;;  %v2790_v48 = vld [vmem:[#allocation8 + $0x50] sm:$0xff]  ;;  %v1724_v39 = vpop.permute.xlu0 %1723  ;;  %v3915_v56 = vpop.eup %3914 }
 0x538   : > { %v2880_v9 = vsel %vm1253_vm6, %v2820_v58, 0.0  ;;  %v2881_v36 = vsel %vm1253_vm6, %v2821_v26, 0.0  ;;  %v2791_v4 = vld [vmem:[#allocation8 + $0x58] sm:$0xff]  ;;  %v1728_v61 = vpop.permute.xlu1 %1727  ;;  %v2822_v12 = vmul.f32 %v2790_v48, %v5402_v8  ;;  %v2464_v43 = vmul.f32 %v5380_v29, %v1724_v39  ;;  %v2989_v58 = vld [vmem:[#allocation5] sm:$0x3] }
 0x539   : > { %v2851_v47 = vrot.slane %v2850_v53, 1  ;;  %v2859_v52 = vadd.f32 %v2858_v1, %v2857_v50  ;;  %v2867_v37 = vrot.slane %v2866_v33, 2  ;;  %v2875_v19 = vadd.f32 %v2874_v28, %v2873_v34 }
 0x53a   : > { %v2882_v18 = vadd.f32 %v2881_v36, %v2880_v9  ;;  %v2823_v22 = vmul.f32 %v2791_v4, %v5404_v44  ;;  %v2889_v21 = vsel %vm1253_vm6, %v2822_v12, 0.0  ;;  %v2465_v59 = vmul.f32 %v5380_v29, %v1728_v61  ;;  %v3917_v44 = vpop.eup %3916  ;;  %v2990_v36 = vld [vmem:[#allocation5 + $0x2] sm:$0x3] }
 0x53b   : > { %v2852_v25 = vadd.f32 %v2851_v47, %v2850_v53  ;;  %v2860_v60 = vrot.slane %v2859_v52, 1  ;;  %v2868_v55 = vadd.f32 %v2867_v37, %v2866_v33  ;;  %v2876_v15 = vrot.slane %v2875_v19, 2  ;;  %v1735_v8 = vpop.permute.xlu0 %1734  ;;  %v3567_v61 = vld.sshfl [vmem:[#allocation4 + $0xa] sm:$0x11 pattern:$0x75316420] }
 0x53c   : > { %v2883_v54 = vrot.slane %v2882_v18, 4  ;;  %v2890_v41 = vsel %vm1253_vm6, %v2823_v22, 0.0  ;;  %v1739_v51 = vpop.permute.xlu1 %1738  ;;  %v2530_v10 = vadd.f32 %v2526_v63, %v2464_v43  ;;  %v2527_v53 = vmul.f32 %v3915_v56, %v5400_v31  ;;  %v3919_v28 = vpop.eup %3918  ;;  %v3575_v12 = vld.sshfl [vmem:[#allocation2 + $0xa] sm:$0x11 pattern:$0x75316420] }
 0x53d   : > { %v2861_v23 = vadd.f32 %v2860_v60, %v2859_v52  ;;  %v2869_v50 = vrot.slane %v2868_v55, 1  ;;  %v2877_v14 = vadd.f32 %v2876_v15, %v2875_v19  ;;  %v2891_v34 = vadd.f32 %v2890_v41, %v2889_v21  ;;  %v5493_v21 = vld.sshfl [vmem:[#allocation4 + $0xc] sm:$0x11 pattern:$0x75316420] }
 0x53e   : > { %v2884_v40 = vadd.f32 %v2883_v54, %v2882_v18  ;;  %v2283_v29 = vrot.slane %v2269_v24, %v4961_v57  ;;  %2535 = vst.msk [vmem:[#allocation8 + $0x60] sm:$0xff] %vm1253_vm6, %v2530_v10  ;;  %v2531_v48 = vadd.f32 %v2527_v53, %v2465_v59  ;;  %v2539_v30 = vmul.f32 %v3917_v44, %v2530_v10 }
 0x53f   : > { %v3014_v16 = vsel %vm3013_vm11, %v2861_v23, %v2852_v25  ;;  %v2878_v1 = vrot.slane %v2877_v14, 1  ;;  %v2892_v33 = vrot.slane %v2891_v34, 4  ;;  %v2870_v47 = vadd.f32 %v2869_v50, %v2868_v55  ;;  %v5469_v37 = vpop.permute.xlu0 %1767 }
 0x540   : > { %v3030_v26 = vadd.f32 %v3014_v16, %v2989_v58  ;;  %v2885_v9 = vrot.slane %v2884_v40, 2  ;;  %v2160_v52 = vmul.f32 1.442695, %v2110_v11  ;;  %v5471_v19 = vpop.permute.xlu1 %1771  ;;  %2536 = vst.msk [vmem:[#allocation8 + $0x68] sm:$0xff] %vm1253_vm6, %v2531_v48  ;;  %v2540_v24 = vmul.f32 %v3919_v28, %v2531_v48  ;;  %v3921_v44 = vpop.eup %3920 }
 0x541   : > { %v2879_v63 = vadd.f32 %v2878_v1, %v2877_v14  ;;  %v2893_v31 = vadd.f32 %v2892_v33, %v2891_v34  ;;  %v2107_v4 = vmul.f32 %v5437_v3, %v5241_v13  ;;  %v2111_v39 = vmul.f32 %v5441_v20, %v5241_v13  ;;  %v5521_v28 = vld.sshfl [vmem:[#allocation2 + $0xc] sm:$0x11 pattern:$0x75316420] }
 0x542   : > { %3038 = vst.msk [vmem:[#allocation5] sm:$0x3] %vm974_vm5, %v3030_v26  ;;  %v2886_v0 = vadd.f32 %v2885_v9, %v2884_v40  ;;  %v5481_v11 = vmul.f32 %v5373_v5, %v5305_v42  ;;  %3922 = vpow2.f32 %v2160_v52  ;;  %v2403_v60 = vrot.slane %v2283_v29, %v4942_v38  ;;  %v2991_v26 = vld [vmem:[#allocation5 + $0x4] sm:$0x3] }
 0x543   : > { %v3015_v25 = vsel %vm3013_vm11, %v2879_v63, %v2870_v47  ;;  %v2894_v18 = vrot.slane %v2893_v31, 2  ;;  %v2154_v55 = vmul.f32 1.442695, %v2107_v4  ;;  %v2162_v3 = vmul.f32 1.442695, %v2111_v39  ;;  %v5489_v54 = vpop.permute.xlu0 %1778 }
 0x544   : > { %v3031_v22 = vadd.f32 %v3015_v25, %v2990_v36  ;;  %v2887_v56 = vrot.slane %v2886_v0, 1  ;;  %v1960_v43 = vrot.slane %v3567_v61, %v4961_v57  ;;  %v5487_v20 = vadd.f32 %v2539_v30, %v5361_v6  ;;  %v5491_v42 = vpop.permute.xlu1 %1782 }
 0x545   : > { %v2895_v15 = vadd.f32 %v2894_v18, %v2893_v31  ;;  %3924 = vpow2.f32 %v2154_v55  ;;  %v2320_v41 = vrot.slane %v3575_v12, %v4961_v57  ;;  %v5498_v59 = vadd.f32 %v2540_v24, %v5364_v49 }
 0x546   : > { %3039 = vst.msk [vmem:[#allocation5 + $0x2] sm:$0x3] %vm974_vm5, %v3031_v22  ;;  %v1953_v23 = vcombine.high %v3567_v61, %v3567_v61  ;;  %v5502_v50 = vmul.f32 %v5373_v5, %v5307_v46  ;;  %v2466_v14 = vmul.f32 %v2403_v60, %v1735_v8  ;;  %v2055_v34 = vrot.slane %v1960_v43, %v4942_v38 }
 0x547   : > { %v2896_v6 = vrot.slane %v2895_v15, 1  ;;  %2548 = vst.msk [vmem:[#allocation8 + $0x80] sm:$0xff] %vm1253_vm6, %v5487_v20  ;;  %v2467_v40 = vmul.f32 %v2403_v60, %v1739_v51  ;;  %2549 = vst.msk [vmem:[#allocation8 + $0x88] sm:$0xff] %vm1253_vm6, %v5498_v59  ;;  %v2313_v10 = vcombine.high %v3575_v12, %v3575_v12  ;;  %v1982_v53 = vrot.slane %v5493_v21, %v4961_v57  ;;  %v5514_v16 = vpop.permute.xlu0 %1789 }
 0x548   : > { %v1967_v49 = vrot.slane %v1953_v23, %v4961_v57  ;;  %v2888_v46 = vadd.f32 %v2887_v56, %v2886_v0  ;;  %v2528_v8 = vmul.f32 %v3921_v44, %v5413_v2  ;;  %v2112_v58 = vmul.f32 %v2055_v34, %v5239_v17  ;;  %v5516_v1 = vpop.permute.xlu1 %1793 }
 0x549   : > { %v2897_v5 = vadd.f32 %v2896_v6, %v2895_v15  ;;  %3926 = vpow2.f32 %v2162_v3  ;;  %v2415_v51 = vrot.slane %v2320_v41, %v4942_v38  ;;  %v2113_v33 = vmul.f32 %v2055_v34, %v5241_v13 }
 0x54a   : > { %v2059_v29 = vrot.slane %v1967_v49, %v4942_v38  ;;  %v2532_v9 = vadd.f32 %v2528_v8, %v2466_v14  ;;  %v2164_v2 = vmul.f32 1.442695, %v2112_v58  ;;  %v2063_v48 = vrot.slane %v1982_v53, %v4942_v38 }
 0x54b   : > { %v3016_v47 = vsel %vm3013_vm11, %v2897_v5, %v2888_v46  ;;  %v2166_v31 = vmul.f32 1.442695, %v2113_v33  ;;  %v2327_v52 = vrot.slane %v2313_v10, %v4961_v57  ;;  %v2342_v4 = vrot.slane %v5521_v28, %v4961_v57  ;;  %v5532_v39 = vpop.permute.xlu0 %1800  ;;  %v2792_v46 = vld [vmem:[#allocation8 + $0x60] sm:$0xff]  ;;  %v2793_v5 = vld [vmem:[#allocation8 + $0x68] sm:$0xff] }
 0x54c   : > { %v3032_v63 = vadd.f32 %v3016_v47, %v2991_v26  ;;  %v2114_v30 = vmul.f32 %v2059_v29, %v5239_v17  ;;  %v3923_v36 = vpop.eup %3922  ;;  %2537 = vst.msk [vmem:[#allocation8 + $0x70] sm:$0xff] %vm1253_vm6, %v2532_v9  ;;  %3928 = vpow2.f32 %v2164_v2  ;;  %v2115_v0 = vmul.f32 %v2059_v29, %v5241_v13  ;;  %v5534_v61 = vpop.permute.xlu1 %1804  ;;  %v5559_v26 = vld.sshfl [vmem:[#allocation4 + $0xe] sm:$0x11 pattern:$0x75316420] }
 0x54d   : > { %v2116_v24 = vmul.f32 %v2063_v48, %v5239_v17  ;;  %v2541_v25 = vmul.f32 %v3923_v36, %v2532_v9  ;;  %v5538_v18 = vmul.f32 %v2415_v51, %v5469_v37  ;;  %3930 = vpow2.f32 %v2166_v31 }
 0x54e   : > { %3040 = vst.msk [vmem:[#allocation5 + $0x4] sm:$0x3] %vm974_vm5, %v3032_v63  ;;  %v2796_v12 = vld [vmem:[#allocation8 + $0x80] sm:$0xff]  ;;  %v2168_v22 = vmul.f32 1.442695, %v2114_v30  ;;  %v5542_v60 = vmul.f32 %v2415_v51, %v5471_v19  ;;  %v2797_v55 = vld [vmem:[#allocation8 + $0x88] sm:$0xff]  ;;  %v2419_v23 = vrot.slane %v2327_v52, %v4942_v38  ;;  %v1975_v49 = vcombine.high %v5493_v21, %v5493_v21 }
 0x54f   : > { %v2828_v56 = vmul.f32 %v2796_v12, %v5426_v62  ;;  %v2170_v15 = vmul.f32 1.442695, %v2115_v0  ;;  %v2172_v3 = vmul.f32 1.442695, %v2116_v24  ;;  %v3925_v43 = vpop.eup %3924  ;;  %v2829_v41 = vmul.f32 %v2797_v55, %v5428_v32  ;;  %v2676_v19 = vpop.permute.xlu0 %2675 }
 0x550   : > { %3932 = vpow2.f32 %v2168_v22  ;;  %v2545_v37 = vadd.f32 %v2541_v25, %v5481_v11  ;;  %v2529_v6 = vmul.f32 %v3925_v43, %v5419_v35  ;;  %v2117_v62 = vmul.f32 %v2063_v48, %v5241_v13  ;;  %v2680_v34 = vpop.permute.xlu1 %2679 }
 0x551   : > { %v2916_v14 = vsel %vm1253_vm6, %v2828_v56, 0.0  ;;  %3934 = vpow2.f32 %v2170_v15  ;;  %v2917_v44 = vsel %vm1253_vm6, %v2829_v41, 0.0  ;;  %v2423_v32 = vrot.slane %v2342_v4, %v4942_v38 }
 0x552   : > { %2550 = vst.msk [vmem:[#allocation8 + $0x90] sm:$0xff] %vm1253_vm6, %v2545_v37  ;;  %3936 = vpow2.f32 %v2172_v3  ;;  %v2533_v11 = vadd.f32 %v2529_v6, %v2467_v40  ;;  %v2918_v10 = vadd.f32 %v2917_v44, %v2916_v14  ;;  %v2474_v35 = vmul.f32 %v2419_v23, %v5489_v54 }
 0x553   : > { %v2174_v53 = vmul.f32 1.442695, %v2117_v62  ;;  %v3927_v8 = vpop.eup %3926  ;;  %v1989_v58 = vrot.slane %v1975_v49, %v4961_v57  ;;  %v2335_v51 = vcombine.high %v5521_v28, %v5521_v28  ;;  %v2824_v33 = vmul.f32 %v2792_v46, %v2676_v19  ;;  %v2687_v54 = vpop.permute.xlu0 %2686  ;;  %v2794_v12 = vld [vmem:[#allocation8 + $0x70] sm:$0xff] }
 0x554   : > { %v2825_v29 = vmul.f32 %v2793_v5, %v2680_v34  ;;  %2538 = vst.msk [vmem:[#allocation8 + $0x78] sm:$0xff] %vm1253_vm6, %v2533_v11  ;;  %v2542_v21 = vmul.f32 %v3927_v8, %v2533_v11  ;;  %v2919_v40 = vrot.slane %v2918_v10, 4  ;;  %v2475_v47 = vmul.f32 %v2419_v23, %v5491_v42  ;;  %v2691_v9 = vpop.permute.xlu1 %2690 }
 0x555   : > { %3938 = vpow2.f32 %v2174_v53  ;;  %v2476_v2 = vmul.f32 %v2423_v32, %v5514_v16  ;;  %v2067_v48 = vrot.slane %v1989_v58, %v4942_v38  ;;  %v2898_v63 = vsel %vm1253_vm6, %v2824_v33, 0.0  ;;  %v5589_v58 = vld.sshfl [vmem:[#allocation2 + $0xe] sm:$0x11 pattern:$0x75316420] }
 0x556   : > { %v2899_v28 = vsel %vm1253_vm6, %v2825_v29, 0.0  ;;  %v3929_v31 = vpop.eup %3928  ;;  %v2920_v30 = vadd.f32 %v2919_v40, %v2918_v10  ;;  %v2546_v52 = vadd.f32 %v2542_v21, %v5502_v50  ;;  %v2004_v0 = vrot.slane %v5559_v26, %v4961_v57 }
 0x557   : > { %v2900_v36 = vadd.f32 %v2899_v28, %v2898_v63  ;;  %v3931_v42 = vpop.eup %3930  ;;  %v2552_v24 = vmul.f32 %v3929_v31, %v5487_v20  ;;  %v2118_v4 = vmul.f32 %v2067_v48, %v5239_v17  ;;  %v2349_v16 = vrot.slane %v2335_v51, %v4961_v57  ;;  %v5577_v3 = vpop.permute.xlu0 %2719 }
 0x558   : > { %v2119_v25 = vmul.f32 %v2067_v48, %v5241_v13  ;;  %v2553_v22 = vmul.f32 %v3931_v42, %v5498_v59  ;;  %v2921_v56 = vrot.slane %v2920_v30, 2  ;;  %2551 = vst.msk [vmem:[#allocation8 + $0x98] sm:$0xff] %vm1253_vm6, %v2546_v52  ;;  %v2477_v50 = vmul.f32 %v2423_v32, %v5516_v1  ;;  %v5579_v43 = vpop.permute.xlu1 %2723 }
 0x559   : > { %v2798_v55 = vld [vmem:[#allocation8 + $0x90] sm:$0xff]  ;;  %v2826_v15 = vmul.f32 %v2794_v12, %v2687_v54  ;;  %v2556_v41 = vadd.f32 %v2552_v24, %v5538_v18  ;;  %v2176_v6 = vmul.f32 1.442695, %v2118_v4  ;;  %v2901_v44 = vrot.slane %v2900_v36, 4 }
 0x55a   : > { %v3933_v20 = vpop.eup %3932  ;;  %v2830_v23 = vmul.f32 %v2798_v55, %v5443_v45  ;;  %v2178_v14 = vmul.f32 1.442695, %v2119_v25  ;;  %v2557_v59 = vadd.f32 %v2553_v22, %v5542_v60  ;;  %v2922_v19 = vadd.f32 %v2921_v56, %v2920_v30 }
 0x55b   : > { %v3935_v62 = vpop.eup %3934  ;;  %v2554_v34 = vmul.f32 %v3933_v20, %v2545_v37  ;;  %2561 = vst.msk [vmem:[#allocation8 + $0xa0] sm:$0xff] %vm1253_vm6, %v2556_v41  ;;  %3940 = vpow2.f32 %v2176_v6  ;;  %v2427_v32 = vrot.slane %v2349_v16, %v4942_v38  ;;  %v2071_v11 = vrot.slane %v2004_v0, %v4942_v38  ;;  %v2795_v60 = vld [vmem:[#allocation8 + $0x78] sm:$0xff]  ;;  %v2731_v53 = vpop.permute.xlu0 %2730 }
 0x55c   : > { %v3937_v49 = vpop.eup %3936  ;;  %v2555_v1 = vmul.f32 %v3935_v62, %v2546_v52  ;;  %2562 = vst.msk [vmem:[#allocation8 + $0xa8] sm:$0xff] %vm1253_vm6, %v2557_v59  ;;  %3942 = vpow2.f32 %v2178_v14  ;;  %v2907_v10 = vsel %vm1253_vm6, %v2826_v15, 0.0  ;;  %v2735_v37 = vpop.permute.xlu1 %2734  ;;  %v2902_v5 = vadd.f32 %v2901_v44, %v2900_v36 }
 0x55d   : > { %v2558_v45 = vadd.f32 %v2554_v34, %v2474_v35  ;;  %v2565_v18 = vmul.f32 %v3937_v49, %v2556_v41  ;;  %v2827_v8 = vmul.f32 %v2795_v60, %v2691_v9  ;;  %v2120_v51 = vmul.f32 %v2071_v11, %v5239_v17 }
 0x55e   : > { %v2559_v46 = vadd.f32 %v2555_v1, %v2475_v47  ;;  %v2923_v29 = vrot.slane %v2922_v19, 1  ;;  %v2925_v35 = vsel %vm1253_vm6, %v2830_v23, 0.0  ;;  %v2121_v40 = vmul.f32 %v2071_v11, %v5241_v13 }
 0x55f   : > { %v3939_v33 = vpop.eup %3938  ;;  %2563 = vst.msk [vmem:[#allocation8 + $0xb0] sm:$0xff] %vm1253_vm6, %v2558_v45  ;;  %v5594_v21 = vadd.f32 %v2565_v18, %v2476_v2  ;;  %v2799_v54 = vld [vmem:[#allocation8 + $0x98] sm:$0xff]  ;;  %v2903_v48 = vrot.slane %v2902_v5, 2  ;;  %v2908_v9 = vsel %vm1253_vm6, %v2827_v8, 0.0  ;;  %v2180_v63 = vmul.f32 1.442695, %v2120_v51  ;;  %v2742_v31 = vpop.permute.xlu0 %2741 }
 0x560   : > { %2564 = vst.msk [vmem:[#allocation8 + $0xb8] sm:$0xff] %vm1253_vm6, %v2559_v46  ;;  %v2566_v47 = vmul.f32 %v3939_v33, %v2557_v59  ;;  %v2831_v17 = vmul.f32 %v2799_v54, %v5445_v27  ;;  %v2909_v28 = vadd.f32 %v2908_v9, %v2907_v10  ;;  %v2746_v30 = vpop.permute.xlu1 %2745  ;;  %v2364_v2 = vrot.slane %v5589_v58, %v4961_v57 }
 0x561   : > { %2574 = vst.msk [vmem:[#allocation8 + $0xc0] sm:$0xff] %vm1253_vm6, %v5594_v21  ;;  %v2182_v13 = vmul.f32 1.442695, %v2121_v40  ;;  %v2904_v36 = vadd.f32 %v2903_v48, %v2902_v5  ;;  %3944 = vpow2.f32 %v2180_v63  ;;  %v1997_v0 = vcombine.high %v5559_v26, %v5559_v26 }
 0x562   : > { %v5604_v52 = vadd.f32 %v2566_v47, %v2477_v50  ;;  %v2926_v42 = vsel %vm1253_vm6, %v2831_v17, 0.0  ;;  %v2478_v27 = vmul.f32 %v2427_v32, %v5532_v39  ;;  %v2910_v24 = vrot.slane %v2909_v28, 4  ;;  %v2800_v4 = vld [vmem:[#allocation8 + $0xa0] sm:$0xff] }
 0x563   : > { %3946 = vpow2.f32 %v2182_v13  ;;  %v2927_v16 = vadd.f32 %v2926_v42, %v2925_v35  ;;  %v2479_v25 = vmul.f32 %v2427_v32, %v5534_v61  ;;  %v2905_v12 = vrot.slane %v2904_v36, 1  ;;  %v2801_v56 = vld [vmem:[#allocation8 + $0xa8] sm:$0xff]  ;;  %v1812_v15 = vpop.permute.xlu0 %1811 }
 0x564   : > { %2575 = vst.msk [vmem:[#allocation8 + $0xc8] sm:$0xff] %vm1253_vm6, %v5604_v52  ;;  %v2832_v22 = vmul.f32 %v2800_v4, %v5577_v3  ;;  %v5614_v55 = vadd.f32 %v2923_v29, %v2922_v19  ;;  %v2911_v26 = vadd.f32 %v2910_v24, %v2909_v28  ;;  %v2833_v50 = vmul.f32 %v2801_v56, %v5579_v43  ;;  %v1816_v20 = vpop.permute.xlu1 %1815 }
 0x565   : > { %v2431_v39 = vrot.slane %v2364_v2, %v4942_v38  ;;  %v3941_v41 = vpop.eup %3940  ;;  %v2928_v23 = vrot.slane %v2927_v16, 4  ;;  %v2906_v6 = vadd.f32 %v2905_v12, %v2904_v36  ;;  %v2011_v61 = vrot.slane %v1997_v0, %v4961_v57 }
 0x566   : > { %v2934_v14 = vsel %vm1253_vm6, %v2832_v22, 0.0  ;;  %v2802_v62 = vld [vmem:[#allocation8 + $0xb0] sm:$0xff]  ;;  %v3943_v59 = vpop.eup %3942  ;;  %v2567_v3 = vmul.f32 %v3941_v41, %v2558_v45  ;;  %v2912_v34 = vrot.slane %v2911_v26, 2  ;;  %v2935_v19 = vsel %vm1253_vm6, %v2833_v50, 0.0  ;;  %v3984_v41 = vld [vmem:[#allocation25] sm:$0xff] }
 0x567   : > { %v2834_v44 = vmul.f32 %v2802_v62, %v2731_v53  ;;  %v2803_v49 = vld [vmem:[#allocation8 + $0xb8] sm:$0xff]  ;;  %v2929_v43 = vadd.f32 %v2928_v23, %v2927_v16  ;;  %v2568_v1 = vmul.f32 %v3943_v59, %v2559_v46  ;;  %v2936_v32 = vadd.f32 %v2935_v19, %v2934_v14  ;;  %v5630_v54 = vpop.permute.xlu0 %1822 }
 0x568   : > { %v2835_v11 = vmul.f32 %v2803_v49, %v2735_v37  ;;  %v2804_v18 = vld [vmem:[#allocation8 + $0xc0] sm:$0xff]  ;;  %v5621_v10 = vadd.f32 %v2567_v3, %v2478_v27  ;;  %v2913_v60 = vadd.f32 %v2912_v34, %v2911_v26  ;;  %v2480_v40 = vmul.f32 %v2431_v39, %v1812_v15  ;;  %v5632_v47 = vpop.permute.xlu1 %1826  ;;  %v5640_v16 = vld [vmem:[#allocation3 + $0x1] sm:$0x1]  ;;  %v3985_v3 = vld [vmem:[#allocation25 + $0x8] sm:$0xff] }
 0x569   : > { %v2943_v5 = vsel %vm1253_vm6, %v2834_v44, 0.0  ;;  %v2836_v8 = vmul.f32 %v2804_v18, %v2742_v31  ;;  %v2930_v51 = vrot.slane %v2929_v43, 2  ;;  %v5624_v33 = vadd.f32 %v2568_v1, %v2479_v25  ;;  %v2992_v25 = vld [vmem:[#allocation5 + $0x6] sm:$0x3]  ;;  %v5651_v19 = vld [vmem:[#allocation3 + $0x2] sm:$0x1] }
 0x56a   : > { %v2937_v45 = vrot.slane %v2936_v32, 4  ;;  %v2944_v29 = vsel %vm1253_vm6, %v2835_v11, 0.0  ;;  %2576 = vst.msk [vmem:[#allocation8 + $0xd0] sm:$0xff] %vm1253_vm6, %v5621_v10  ;;  %v2914_v53 = vrot.slane %v2913_v60, 1  ;;  %v2481_v28 = vmul.f32 %v2431_v39, %v1816_v20  ;;  %v5653_v18 = vld [vmem:[#allocation3 + $0x3] sm:$0x1] }
 0x56b   : > { %v2945_v46 = vadd.f32 %v2944_v29, %v2943_v5  ;;  %v2952_v37 = vsel %vm1253_vm6, %v2836_v8, 0.0  ;;  %v2805_v35 = vld [vmem:[#allocation8 + $0xc8] sm:$0xff]  ;;  %v3945_v48 = vpop.eup %3944  ;;  %v2931_v9 = vadd.f32 %v2930_v51, %v2929_v43  ;;  %2577 = vst.msk [vmem:[#allocation8 + $0xd8] sm:$0xff] %vm1253_vm6, %v5624_v33  ;;  %v2075_v0 = vrot.slane %v2011_v61, %v4942_v38  ;;  %v2753_v23 = vpop.permute.xlu0 %2752 }
 0x56c   : > { %v2938_v63 = vadd.f32 %v2937_v45, %v2936_v32  ;;  %v2837_v17 = vmul.f32 %v2805_v35, %v2746_v30  ;;  %v2915_v2 = vadd.f32 %v2914_v53, %v2913_v60  ;;  %v2578_v36 = vmul.f32 %v3945_v48, %v5594_v21  ;;  %v2757_v14 = vpop.permute.xlu1 %2756  ;;  %v5658_v45 = vld [vmem:[#allocation3 + $0x5] sm:$0x1] }
 0x56d   : > { %v3947_v31 = vpop.eup %3946  ;;  %v2946_v13 = vrot.slane %v2945_v46, 4  ;;  %v2932_v42 = vrot.slane %v2931_v9, 1  ;;  %v3063_v62 = vunpack.c.l.bf16 %v5640_v16  ;;  %v2123_v34 = vmul.f32 %v3985_v3, %v2075_v0 }
 0x56e   : > { %v2939_v27 = vrot.slane %v2938_v63, 2  ;;  %v2953_v24 = vsel %vm1253_vm6, %v2837_v17, 0.0  ;;  %v2579_v4 = vmul.f32 %v3947_v31, %v5604_v52  ;;  %v3017_v12 = vsel %vm3013_vm11, %v2915_v2, %v2906_v6  ;;  %v2993_v6 = vld [vmem:[#allocation5 + $0x8] sm:$0x3]  ;;  %v2994_v17 = vld [vmem:[#allocation5 + $0xa] sm:$0x3] }
 0x56f   : > { %v2947_v30 = vadd.f32 %v2946_v13, %v2945_v46  ;;  %v2954_v22 = vadd.f32 %v2953_v24, %v2952_v37  ;;  %v2582_v56 = vadd.f32 %v2578_v36, %v2480_v40  ;;  %v2933_v26 = vadd.f32 %v2932_v42, %v2931_v9  ;;  %v5669_v31 = vld [vmem:[#allocation3 + $0x4] sm:$0x1]  ;;  %v5675_v42 = vld [vmem:[#allocation3 + $0x7] sm:$0x1] }
 0x570   : > { %v3033_v50 = vadd.f32 %v3017_v12, %v2992_v25  ;;  %v2940_v15 = vadd.f32 %v2939_v27, %v2938_v63  ;;  %v2583_v21 = vadd.f32 %v2579_v4, %v2481_v28  ;;  %v2122_v52 = vmul.f32 %v3984_v41, %v2075_v0  ;;  %v5673_v0 = vld [vmem:[#allocation3 + $0x6] sm:$0x1]  ;;  %v2764_v4 = vpop.permute.xlu0 %2763  ;;  %v2768_v12 = vpop.permute.xlu1 %2767 }
 0x571   : > { %v2948_v39 = vrot.slane %v2947_v30, 2  ;;  %v2955_v20 = vrot.slane %v2954_v22, 4  ;;  %2587 = vst.msk [vmem:[#allocation8 + $0xe0] sm:$0xff] %vm1253_vm6, %v2582_v56  ;;  %2591 = vst.msk [vmem:[#allocation9] sm:$0xff] %vm1253_vm6, %v2582_v56  ;;  %v3018_v61 = vsel %vm3013_vm11, %v2933_v26, %v5614_v55  ;;  %v2806_v32 = vld [vmem:[#allocation8 + $0xd0] sm:$0xff]  ;;  %v2357_v55 = vcombine.high %v5589_v58, %v5589_v58 }
 0x572   : > { %3041 = vst.msk [vmem:[#allocation5 + $0x6] sm:$0x3] %vm974_vm5, %v3033_v50  ;;  %v2941_v59 = vrot.slane %v2940_v15, 1  ;;  %v3034_v44 = vadd.f32 %v3018_v61, %v2993_v6  ;;  %v2184_v1 = vmul.f32 1.442695, %v2122_v52  ;;  %v2807_v11 = vld [vmem:[#allocation8 + $0xd8] sm:$0xff]  ;;  %v2838_v5 = vmul.f32 %v2806_v32, %v2753_v23 }
 0x573   : > { %2588 = vst.msk [vmem:[#allocation8 + $0xe8] sm:$0xff] %vm1253_vm6, %v2583_v21  ;;  %2592 = vst.msk [vmem:[#allocation9 + $0x8] sm:$0xff] %vm1253_vm6, %v2583_v21  ;;  %v2949_v49 = vadd.f32 %v2948_v39, %v2947_v30  ;;  %v2956_v43 = vadd.f32 %v2955_v20, %v2954_v22  ;;  %v2186_v60 = vmul.f32 1.442695, %v2123_v34  ;;  %v2839_v8 = vmul.f32 %v2807_v11, %v2757_v14  ;;  %v5665_v58 = vld [vmem:[#allocation3] sm:$0x1] }
 0x574   : > { %3042 = vst.msk [vmem:[#allocation5 + $0x8] sm:$0x3] %vm974_vm5, %v3034_v44  ;;  %3948 = vpow2.f32 %v2184_v1  ;;  %v3064_v29 = vunpack.c.l.bf16 %v5651_v19  ;;  %v3071_v53 = vsub.f32 0.0, %v3063_v62  ;;  %v2961_v46 = vsel %vm1253_vm6, %v2838_v5, 0.0 }
 0x575   : > { %v2950_v51 = vrot.slane %v2949_v49, 1  ;;  %3950 = vpow2.f32 %v2186_v60  ;;  %v2962_v37 = vsel %vm1253_vm6, %v2839_v8, 0.0  ;;  %v3065_v35 = vunpack.c.l.bf16 %v5653_v18 }
 0x576   : > { %v2942_v40 = vadd.f32 %v2941_v59, %v2940_v15  ;;  %v2957_v9 = vrot.slane %v2956_v43, 2  ;;  %v2963_v63 = vadd.f32 %v2962_v37, %v2961_v46  ;;  %v2371_v28 = vrot.slane %v2357_v55, %v4961_v57 }
 0x577   : > { %v2951_v48 = vadd.f32 %v2950_v51, %v2949_v49  ;;  %v3067_v2 = vunpack.c.l.bf16 %v5658_v45  ;;  %v3062_v27 = vunpack.c.l.bf16 %v5665_v58  ;;  %v3072_v57 = vsub.f32 0.0, %v3064_v29 }
 0x578   : > { %v2964_v36 = vrot.slane %v2963_v63, 4  ;;  %v2808_v25 = vld [vmem:[#allocation8 + $0xe0] sm:$0xff]  ;;  %v3073_v22 = vsub.f32 0.0, %v3065_v35  ;;  %v3080_v56 = vmul.f32 1.442695, %v3071_v53  ;;  %v2958_v26 = vadd.f32 %v2957_v9, %v2956_v43 }
 0x579   : > { %v3019_v13 = vsel %vm3013_vm11, %v2951_v48, %v2942_v40  ;;  %v3066_v15 = vunpack.c.l.bf16 %v5669_v31  ;;  %v2435_v21 = vrot.slane %v2371_v28, %v4942_v38  ;;  %v3068_v39 = vunpack.c.l.bf16 %v5673_v0 }
 0x57a   : > { %v3035_v24 = vadd.f32 %v3019_v13, %v2994_v17  ;;  %v2809_v30 = vld [vmem:[#allocation8 + $0xe8] sm:$0xff]  ;;  %v2965_v50 = vadd.f32 %v2964_v36, %v2963_v63  ;;  %v3069_v20 = vunpack.c.l.bf16 %v5675_v42  ;;  %v3075_v41 = vsub.f32 0.0, %v3067_v2 }
 0x57b   : > { %v2840_v23 = vmul.f32 %v2808_v25, %v2764_v4  ;;  %v2841_v14 = vmul.f32 %v2809_v30, %v2768_v12  ;;  %v3070_v6 = vsub.f32 0.0, %v3062_v27  ;;  %v2482_v61 = vmul.f32 %v2435_v21, %v5630_v54  ;;  %v2779_v4 = vpop.permute.xlu1 %2778 }
 0x57c   : > { %3043 = vst.msk [vmem:[#allocation5 + $0xa] sm:$0x3] %vm974_vm5, %v3035_v24  ;;  %v2966_v52 = vrot.slane %v2965_v50, 2  ;;  %3952 = vpow2.f32 %v3080_v56  ;;  %v3082_v59 = vmul.f32 1.442695, %v3072_v57  ;;  %v2959_v38 = vrot.slane %v2958_v26, 1  ;;  %v2775_v24 = vpop.permute.xlu0 %2774 }
 0x57d   : > { %v3084_v3 = vmul.f32 1.442695, %v3073_v22  ;;  %v2483_v44 = vmul.f32 %v2435_v21, %v5632_v47  ;;  %v3074_v43 = vsub.f32 0.0, %v3066_v15  ;;  %v3076_v11 = vsub.f32 0.0, %v3068_v39 }
 0x57e   : > { %v3949_v34 = vpop.eup %3948  ;;  %v2967_v49 = vadd.f32 %v2966_v52, %v2965_v50  ;;  %v3077_v54 = vsub.f32 0.0, %v3069_v20  ;;  %v3088_v55 = vmul.f32 1.442695, %v3075_v41  ;;  %v2970_v8 = vsel %vm1253_vm6, %v2840_v23, 0.0 }
 0x57f   : > { %v3951_v1 = vpop.eup %3950  ;;  %v2580_v32 = vmul.f32 %v3949_v34, %v5621_v10  ;;  %v2971_v47 = vsel %vm1253_vm6, %v2841_v14, 0.0  ;;  %v3078_v53 = vmul.f32 1.442695, %v3070_v6  ;;  %3954 = vpow2.f32 %v3084_v3 }
 0x580   : > { %v2581_v60 = vmul.f32 %v3951_v1, %v5624_v33  ;;  %v2968_v5 = vrot.slane %v2967_v49, 1  ;;  %v2960_v46 = vadd.f32 %v2959_v38, %v2958_v26  ;;  %v3086_v40 = vmul.f32 1.442695, %v3074_v43  ;;  %v2995_v33 = vld [vmem:[#allocation5 + $0xc] sm:$0x3] }
 0x581   : > { %v2584_v51 = vadd.f32 %v2580_v32, %v2482_v61  ;;  %v2972_v48 = vadd.f32 %v2971_v47, %v2970_v8  ;;  %3956 = vpow2.f32 %v3082_v59  ;;  %v3090_v9 = vmul.f32 1.442695, %v3076_v11 }
 0x582   : > { %v2585_v37 = vadd.f32 %v2581_v60, %v2483_v44  ;;  %v2969_v10 = vadd.f32 %v2968_v5, %v2967_v49  ;;  %3958 = vpow2.f32 %v3088_v55  ;;  %v3092_v17 = vmul.f32 1.442695, %v3077_v54 }
 0x583   : > { %2589 = vst.msk [vmem:[#allocation8 + $0xf0] sm:$0xff] %vm1253_vm6, %v2584_v51  ;;  %2593 = vst.msk [vmem:[#allocation9 + $0x10] sm:$0xff] %vm1253_vm6, %v2584_v51  ;;  %3960 = vpow2.f32 %v3078_v53  ;;  %v2973_v36 = vrot.slane %v2972_v48, 4 }
 0x584   : > { %2590 = vst.msk [vmem:[#allocation8 + $0xf8] sm:$0xff] %vm1253_vm6, %v2585_v37  ;;  %2594 = vst.msk [vmem:[#allocation9 + $0x18] sm:$0xff] %vm1253_vm6, %v2585_v37  ;;  %v3020_v63 = vsel %vm3013_vm11, %v2969_v10, %v2960_v46  ;;  %3962 = vpow2.f32 %v3086_v40  ;;  %v2996_v10 = vld [vmem:[#allocation5 + $0xe] sm:$0x3] }
 0x585   : > { %v3036_v28 = vadd.f32 %v3020_v63, %v2995_v33  ;;  %3964 = vpow2.f32 %v3090_v9  ;;  %v2974_v30 = vadd.f32 %v2973_v36, %v2972_v48  ;;  %v3049_v63 = vld [vmem:[#allocation5 + $0x6] sm:$0x3]  ;;  %v3047_v36 = vld [vmem:[#allocation5 + $0x2] sm:$0x3] }
 0x586   : > { %v3953_v13 = vpop.eup %3952  ;;  %3966 = vpow2.f32 %v3092_v17 }
 0x587   : > { %3044 = vst.msk [vmem:[#allocation5 + $0xc] sm:$0x3] %vm974_vm5, %v3036_v28  ;;  %v3095_v52 = vadd.f32 1.0, %v3953_v13  ;;  %v2975_v14 = vrot.slane %v2974_v30, 2 }
 0x589   : > { %v3955_v12 = vpop.eup %3954  ;;  %3968 = vrcp.f32 %v3095_v52  ;;  %v2976_v1 = vadd.f32 %v2975_v14, %v2974_v30 }
 0x58a   : > { %v2810_v25 = vld [vmem:[#allocation8 + $0xf0] sm:$0xff]  ;;  %v3097_v61 = vadd.f32 1.0, %v3955_v12 }
 0x58b   : > { %v2842_v57 = vmul.f32 %v2810_v25, %v2775_v24  ;;  %v2811_v22 = vld [vmem:[#allocation8 + $0xf8] sm:$0xff]  ;;  %v3957_v26 = vpop.eup %3956  ;;  %v2977_v5 = vrot.slane %v2976_v1, 1  ;;  %v3048_v24 = vld [vmem:[#allocation5 + $0x4] sm:$0x3] }
 0x58c   : > { %v2843_v56 = vmul.f32 %v2811_v22, %v2779_v4  ;;  %v3959_v21 = vpop.eup %3958  ;;  %v3096_v3 = vadd.f32 1.0, %v3957_v26  ;;  %3970 = vrcp.f32 %v3097_v61  ;;  %v3051_v4 = vld [vmem:[#allocation5 + $0xa] sm:$0x3]  ;;  %v3046_v26 = vld [vmem:[#allocation5] sm:$0x3] }
 0x58d   : > { %v2979_v50 = vsel %vm1253_vm6, %v2842_v57, 0.0  ;;  %v3961_v23 = vpop.eup %3960  ;;  %v3099_v44 = vadd.f32 1.0, %v3959_v21  ;;  %v2978_v51 = vadd.f32 %v2977_v5, %v2976_v1  ;;  %v3257_v1 = vld [vmem:[%s4831_s23 + $0x4] sm:$0x3] }
 0x58e   : > { %v2980_v41 = vsel %vm1253_vm6, %v2843_v56, 0.0  ;;  %v3963_v59 = vpop.eup %3962  ;;  %v3094_v43 = vadd.f32 1.0, %v3961_v23  ;;  %3972 = vrcp.f32 %v3096_v3 }
 0x58f   : > { %v2981_v6 = vadd.f32 %v2980_v41, %v2979_v50  ;;  %v3965_v34 = vpop.eup %3964  ;;  %v3098_v11 = vadd.f32 1.0, %v3963_v59  ;;  %3974 = vrcp.f32 %v3099_v44  ;;  %v3050_v50 = vld [vmem:[#allocation5 + $0x8] sm:$0x3] }
 0x590   : > { %v3967_v49 = vpop.eup %3966  ;;  %v3100_v54 = vadd.f32 1.0, %v3965_v34  ;;  %3976 = vrcp.f32 %v3094_v43  ;;  %v3255_v34 = vld [vmem:[%s4831_s23] sm:$0x3]  ;;  %v3256_v43 = vld [vmem:[%s4831_s23 + $0x2] sm:$0x3] }
 0x591   : > { %v2982_v38 = vrot.slane %v2981_v6, 4  ;;  %v3101_v60 = vadd.f32 1.0, %v3967_v49  ;;  %3978 = vrcp.f32 %v3098_v11 }
 0x592   : > { %3980 = vrcp.f32 %v3100_v54 }
 0x593   : > { %v2983_v32 = vadd.f32 %v2982_v38, %v2981_v6  ;;  %3982 = vrcp.f32 %v3101_v60  ;;  %v3969_v46 = vpop.eup %3968  ;;  %v3259_v60 = vld [vmem:[%s4831_s23 + $0x8] sm:$0x3] }
 0x594   : > { %v3119_v12 = vmul.f32 %v3969_v46, %v3063_v62  ;;  %v3052_v62 = vld [vmem:[#allocation5 + $0xc] sm:$0x3] }
 0x595   : > { %v2984_v55 = vrot.slane %v2983_v32, 2 }
 0x596   : > { %v3971_v37 = vpop.eup %3970  ;;  %v3127_v21 = vmul.f32 %v3119_v12, %v3047_v36 }
 0x597   : > { %v2985_v8 = vadd.f32 %v2984_v55, %v2983_v32  ;;  %v3121_v28 = vmul.f32 %v3971_v37, %v3065_v35 }
 0x598   : > { %v3973_v48 = vpop.eup %3972 }
 0x599   : > { %v2986_v47 = vrot.slane %v2985_v8, 1  ;;  %v3975_v33 = vpop.eup %3974  ;;  %v3120_v30 = vmul.f32 %v3973_v48, %v3064_v29  ;;  %v3129_v22 = vmul.f32 %v3121_v28, %v3049_v63 }
 0x59a   : > { %v3977_v17 = vpop.eup %3976  ;;  %v3123_v57 = vmul.f32 %v3975_v33, %v3067_v2 }
 0x59b   : > { %v2987_v53 = vadd.f32 %v2986_v47, %v2985_v8  ;;  %v3979_v13 = vpop.eup %3978  ;;  %v3118_v18 = vmul.f32 %v3977_v17, %v3062_v27  ;;  %v3128_v41 = vmul.f32 %v3120_v30, %v3048_v24  ;;  %v3258_v47 = vld [vmem:[%s4831_s23 + $0x6] sm:$0x3] }
 0x59c   : > { %v3981_v25 = vpop.eup %3980  ;;  %v3122_v35 = vmul.f32 %v3979_v13, %v3066_v15  ;;  %v3131_v16 = vmul.f32 %v3123_v57, %v3051_v4 }
 0x59d   : > { %v3021_v40 = vsel %vm3013_vm11, %v2987_v53, %v2978_v51  ;;  %v3983_v56 = vpop.eup %3982  ;;  %v3124_v19 = vmul.f32 %v3981_v25, %v3068_v39  ;;  %v3126_v29 = vmul.f32 %v3118_v18, %v3046_v26  ;;  %v3143_v52 = vcombine.low %v3128_v41, %v3129_v22  ;;  %v3261_v51 = vld [vmem:[%s4831_s23 + $0xc] sm:$0x3] }
 0x59e   : > { %v3037_v9 = vadd.f32 %v3021_v40, %v2996_v10  ;;  %v3125_v45 = vmul.f32 %v3983_v56, %v3069_v20  ;;  %v3130_v2 = vmul.f32 %v3122_v35, %v3050_v50  ;;  %v3260_v40 = vld [vmem:[%s4831_s23 + $0xa] sm:$0x3] }
 0x59f   : > { %v3132_v58 = vmul.f32 %v3124_v19, %v3052_v62  ;;  %v3142_v14 = vcombine.low %v3126_v29, %v3127_v21  ;;  %v3157_v15 = vrot.slane %v3143_v52, %v4927_v7 }
 0x5a0   : > { %3045 = vst.msk [vmem:[#allocation5 + $0xe] sm:$0x3] %vm974_vm5, %v3037_v9  ;;  %v3159_v31 = vcombine.low %v3130_v2, %v3131_v16  ;;  %v3262_v9 = vld [vmem:[%s4831_s23 + $0xe] sm:$0x3]  ;;  %s3324_s23 = scalar_lea.sflag [#allocation13], %s4827_s0 }
 0x5a1   : > { %v3150_v0 = vrot.slane %v3142_v14, %v4927_v7 }
 0x5a2   : > { %v3167_v39 = vrot.slane %v3159_v31, %v4927_v7 }
 0x5a3   : > { %v3158_v20 = vcombine.low %v3150_v0, %v3157_v15 }
 0x5a7   : > { %v3053_v23 = vld [vmem:[#allocation5 + $0xe] sm:$0x3] }
 0x5a8   : > { %v3133_v27 = vmul.f32 %v3125_v45, %v3053_v23 }
 0x5aa   : > { %v3160_v6 = vcombine.low %v3132_v58, %v3133_v27 }
 0x5ac   : > { %v3174_v42 = vrot.slane %v3160_v6, %v4927_v7 }
 0x5ae   : > { %v3175_v61 = vcombine.low %v3167_v39, %v3174_v42 }
 0x5b0   : > { %v3178_v59 = vpack.c.bf16 %v3175_v61, %v3158_v20 }
 0x5b2   : > { %3640 = vmatmul.mubr.msk.bf16.vlgmr.msra.gmra.mrb[4].mxu0 %vm1253_vm6, %v3178_v59 }
 0x685   : > { %v3248_v3 = vpop.f32.mrb[4].mxu0 }
 0x686   : > { %v3265_v38 = vcombine.high %v3248_v3, %v3248_v3  ;;  %v3272_v44 = vrot.slane %v3248_v3, %v4927_v7  ;;  %v3641_v49 = vpop.f32.mrb[5].mxu0 }
 0x687   : > { %v3251_v32 = vpop.f32.mrb[6].mxu0 }
 0x688   : > { %v3279_v11 = vrot.slane %v3265_v38, %v4927_v7  ;;  %v3280_v54 = vcombine.high %v3272_v44, %v3272_v44  ;;  %v3307_v55 = vadd.f32 %v3272_v44, %v3255_v34  ;;  %v3282_v5 = vcombine.high %v3251_v32, %v3251_v32  ;;  %v3642_v8 = vpop.f32.mrb[7].mxu0 }
 0x689   : > { %v3289_v53 = vrot.slane %v3251_v32, %v4927_v7 }
 0x68a   : > { %v3281_v46 = vcombine.high %v3279_v11, %v3279_v11  ;;  %v3308_v37 = vadd.f32 %v3280_v54, %v3256_v43  ;;  %v3309_v10 = vadd.f32 %v3279_v11, %v3257_v1  ;;  %3315 = vst.msk [vmem:[%s4857_s1] sm:$0x3] %vm588_vm2, %v3307_v55  ;;  %v3296_v48 = vrot.slane %v3282_v5, %v4927_v7 }
 0x68b   : > { %v3297_v33 = vcombine.high %v3289_v53, %v3289_v53  ;;  %v3311_v63 = vadd.f32 %v3289_v53, %v3259_v60 }
 0x68c   : > { %v3310_v17 = vadd.f32 %v3281_v46, %v3258_v47  ;;  %3316 = vst.msk [vmem:[%s4857_s1 + $0x2] sm:$0x3] %vm588_vm2, %v3308_v37  ;;  %3317 = vst.msk [vmem:[%s4857_s1 + $0x4] sm:$0x3] %vm588_vm2, %v3309_v10  ;;  %v3298_v28 = vcombine.high %v3296_v48, %v3296_v48  ;;  %v3313_v13 = vadd.f32 %v3296_v48, %v3261_v51 }
 0x68d   : > { %v3312_v36 = vadd.f32 %v3297_v33, %v3260_v40  ;;  %3319 = vst.msk [vmem:[%s4857_s1 + $0x8] sm:$0x3] %vm588_vm2, %v3311_v63 }
 0x68e   : > { %3318 = vst.msk [vmem:[%s4857_s1 + $0x6] sm:$0x3] %vm588_vm2, %v3310_v17  ;;  %v3314_v7 = vadd.f32 %v3298_v28, %v3262_v9  ;;  %3321 = vst.msk [vmem:[%s4857_s1 + $0xc] sm:$0x3] %vm588_vm2, %v3313_v13 }
 0x68f   : > { %3320 = vst.msk [vmem:[%s4857_s1 + $0xa] sm:$0x3] %vm588_vm2, %v3312_v36 }
 0x690   : > { %3322 = vst.msk [vmem:[%s4857_s1 + $0xe] sm:$0x3] %vm588_vm2, %v3314_v7 }
 0x691   : > { %4309 = shalt.err (!%p4306_p9)
}
 0x692   : > { %s4310_s1 = scalar_lea.hbm %s5759_s24, 256  ;;  %s4314_s28 = scalar_lea.hbm %s5868_s12, 512 }
 0x693   : > { %p4311_p4 = scmp.ne.s32.totalorder %s5759_s24, %s4310_s1  ;;  %p4315_p7 = scmp.lt.u32.totalorder %s5759_s24, %s5868_s12 }
 0x694   : > { %p4316_p12 = scmp.lt.u32.totalorder %s4314_s28, %s4310_s1  ;;  %p4318_p0 = scmp.lt.u32.totalorder %s4310_s1, %s5759_s24 }
 0x695   : > { %p4312_p6 = pnand %p4311_p4, %p5869_p5 }
 0x696   : > { %p4317_p11 = por %p4316_p12, %p4315_p7 }
 0x697   : > { %p4313_p3 = pneg %p4312_p6 }
 0x698   : > { %p4319_p1 = por %p4318_p0, %p4317_p11 }
 0x69a   : > { %p4320_p10 = pnand %p4319_p1, %p4313_p3 }
 0x69c   : > { %4323 = shalt.err (!%p4320_p10)
}
 0x69d   : > { %s4426_s30 = smov 32   ;;  %s4427_s20 = smov 2  }
 0x69e   : > { %3685 = dma.vmem_to_hbm [thread:$0]  (%p5869_p5), %s5761_s3, 256, %s5759_s24, %s3324_s23, %s4426_s30, %s4426_s30, %s4427_s20  }
 0x69f PF: > { %s3353_s27 = sand.u32 1, %s4378_s17   ;;  %p5870_p13 = scmp.ne.s32.totalorder %s5859_s16, 0 }
 0x6a0   : > { %p5871_p2 = scmp.ge.s32.totalorder %s4398_s22, 2  ;;  %s3354_s1 = scalar_lea.sflag [#allocation13], %s3353_s27 }
 0x6a2   : > { %p3723_p8 = pnand %p5871_p2, %p5870_p13 }
 0x6a4   : > { %4373 = dma.done.wait (!%p3723_p8), %s3354_s1, 256  }
 0x6a5   : > { %4375 = vsyncadd (!%p3723_p8), %s3354_s1, 4294967040  ;;  %s32_s22 = sadd.s32 1, %s4398_s22   ;;  %s5872_s17 = smov %s4382_s18 }
 0x6a6   : > { %p29_p9 = scmp.ge.s32.totalorder %s32_s22, 4   ;;  %s5873_s18 = smov %s4386_s19 }
 0x6a7   : > { %s5874_s19 = smov %s4774_s26  ;;  %s5875_s20 = smov %s4394_s21 }
 0x6a8   : > { %s5876_s21 = smov %s5878_s11  ;;  %31 = sbr.rel (!%p29_p9) target bundleno = 16 (0x10), region = 168 }
 0x6af   :  { %3359 = vsyncpa [#allocation12], 1 }
 0x6b0   :  { %3361 = vsyncpa [#allocation12 + $0x1], 1 }
 0x6b1   :  { %3362 = vsyncpa [#allocation15], 1 }
 0x6b2   :  { %3363 = vsyncpa [#allocation18], 1 }
 0x6b3   :  { %3364 = vsyncpa [#allocation21], 1 }
 0x6b4   :  { %3365 = vsyncpa [#allocation24], 1 }
 0x6b5   :  { %3366 = vsyncpa [#allocation27], 1 }
 0x6b6   :  { %3367 = vsyncpa [#allocation13], 1 }
 0x6b7   :  { %3369 = vsyncpa [#allocation13 + $0x1], 1 }

</bundles_post_ra>
